<compile_context>
chip_gen: v6e
topology: v6e:2x2x1
jax: 0.10.0
libtpu: 0.0.40
codegen_flags: <defaults>
</compile_context>

<pallas_src>
import functools

import jax
import jax.numpy as jnp
import numpy as np
from jax.experimental import pallas as pl
from jax.experimental.pallas import tpu as pltpu

PAD = 0  # Constants.PAD


def _round_up(x, m):
    return (x + m - 1) // m * m


def gru_chunk_kernel(gi_ref, whh_ref, bhn_ref, out_ref, h_ref, *,
                     t_chunk, hp, matmul_dtype):
    """One (batch_block, time_chunk) tile of the GRU recurrence.

    gi_ref : (B_BLK, T_CHUNK, 3*Hp) f32  precomputed x@W_ih + b_ih (+ b_hh r,z)
    whh_ref: (Hp, 3*Hp)  matmul_dtype    fused hidden-to-hidden weights (r,z,n)
    bhn_ref: (1, Hp)     f32             n-gate hidden bias (stays inside loop)
    out_ref: (B_BLK, T_CHUNK, Hp) f32    hidden states, batch-first layout
    h_ref  : (B_BLK, Hp) f32 VMEM scratch, carried across time chunks
    """
    b_blk = h_ref.shape[0]

    # Re-initialise the hidden state at the first time chunk of each batch block.
    @pl.when(pl.program_id(1) == 0)
    def _():
        h_ref[...] = jnp.zeros_like(h_ref)

    # Hoist loop-invariant loads / casts / broadcasts out of the unrolled loop.
    whh = whh_ref[...].astype(matmul_dtype)              # (Hp, 3Hp)
    bhn = jnp.broadcast_to(bhn_ref[...], (b_blk, hp))    # (B_BLK, Hp)
    h = h_ref[...]                                       # f32 carried state

    for tt in range(t_chunk):  # static unroll: all indices are compile-time
        gi = gi_ref[:, tt, :]                            # (B_BLK, 3Hp) f32
        # Single fused MXU push per step: (B_BLK, Hp) x (Hp, 3Hp), f32 accumulate.
        gh = jnp.dot(h.astype(matmul_dtype), whh,
                     preferred_element_type=jnp.float32)
        # PyTorch gate order: r, z, n.  Slices are 128-aligned (Hp % 128 == 0).
        r = jax.nn.sigmoid(gi[:, :hp] + gh[:, :hp])
        z = jax.nn.sigmoid(gi[:, hp:2 * hp] + gh[:, hp:2 * hp])
        n = jnp.tanh(gi[:, 2 * hp:] + r * (gh[:, 2 * hp:] + bhn))
        h = (1.0 - z) * n + z * h
        out_ref[:, tt, :] = h.astype(out_ref.dtype)      # full-lane store

    h_ref[...] = h


def gru_pallas(x_embs, w_ih, w_hh, b_ih, b_hh, *,
               matmul_dtype=jnp.bfloat16, t_chunk=8, b_blk=8):
    """x_embs: (B, T, D) f32.  Per-gate stacked params in PyTorch gate order
    (r, z, n): w_ih (3, D, H), w_hh (3, H, H), b_ih / b_hh (3, H).
    Returns batch-first (B, T, H) f32, matching torch.nn.GRU(batch_first=True)."""
    B, T, D = x_embs.shape
    H = w_hh.shape[-1]
    Hp = _round_up(H, 128)          # lane-dense gate dimension
    Bp = _round_up(B, b_blk)        # sublane-dense batch
    Tp = _round_up(T, t_chunk)

    pad_h = lambda a: jnp.pad(a, [(0, 0)] * (a.ndim - 1) + [(0, Hp - H)])

    # Fused + padded weights.  Zero padding keeps padded hidden channels at
    # exactly 0 through the recurrence, so slicing [:H] afterwards is exact.
    w_ih_f = jnp.concatenate([pad_h(w_ih[g]) for g in range(3)], axis=-1)      # (D, 3Hp)
    w_hh_f = jnp.concatenate(
        [jnp.pad(w_hh[g], ((0, Hp - H), (0, Hp - H))) for g in range(3)],
        axis=-1)                                                               # (Hp, 3Hp)
    # Biases that can be precomputed outside the loop: b_ih (all gates) and
    # b_hh for the r,z gates.  b_hh_n must stay inside (under r * (...)).
    gi_bias = jnp.concatenate(
        [pad_h(b_ih[0] + b_hh[0]), pad_h(b_ih[1] + b_hh[1]), pad_h(b_ih[2])],
        axis=-1)[None, :]                                                      # (1, 3Hp)
    b_hn = pad_h(b_hh[2])[None, :]                                             # (1, Hp)

    # Hoisted input projection: one big (B*T, D) x (D, 3Hp) matmul, outside the
    # sequential recurrence (plain XLA; it pipelines normally).
    gi = jnp.dot(x_embs.reshape(B * T, D).astype(matmul_dtype),
                 w_ih_f.astype(matmul_dtype),
                 preferred_element_type=jnp.float32) + gi_bias
    gi = gi.reshape(B, T, 3 * Hp)
    gi = jnp.pad(gi, ((0, Bp - B), (0, Tp - T), (0, 0)))                       # (Bp, Tp, 3Hp)

    w_hh_f = w_hh_f.astype(matmul_dtype)   # halves weight VMEM / HBM traffic in bf16

    kernel = functools.partial(gru_chunk_kernel, t_chunk=t_chunk, hp=Hp,
                               matmul_dtype=matmul_dtype)

    out = pl.pallas_call(
        kernel,
        out_shape=jax.ShapeDtypeStruct((Bp, Tp, Hp), jnp.float32),
        grid_spec=pltpu.PrefetchScalarGridSpec(
            num_scalar_prefetch=0,
            grid=(Bp // b_blk, Tp // t_chunk),   # batch (parallel) x time (sequential)
            in_specs=[
                pl.BlockSpec((b_blk, t_chunk, 3 * Hp), lambda b, c: (b, c, 0)),
                # Grid-invariant weights / bias.
                # TODO(synk): at production H, single-buffer these
                # (pipeline_mode=pl.Buffered(1)) and set vmem_limit_bytes for
                # the 64 MiB v7x VMEM budget.
                pl.BlockSpec((Hp, 3 * Hp), lambda b, c: (0, 0)),
                pl.BlockSpec((1, Hp), lambda b, c: (0, 0)),
            ],
            out_specs=pl.BlockSpec((b_blk, t_chunk, Hp), lambda b, c: (b, c, 0)),
            scratch_shapes=[pltpu.VMEM((b_blk, Hp), jnp.float32)],
        ),
        compiler_params=pltpu.CompilerParams(
            # Batch blocks are independent (megacore / v7x 2-TC sharding);
            # the time axis carries the recurrence and must stay sequential.
            dimension_semantics=("parallel", "arbitrary"),
        ),
    )(gi, w_hh_f, b_hn)

    return out[:B, :T, :H]


def gru_reference(x_embs, w_ih, w_hh, b_ih, b_hh):
    """Pure-JAX reference (lax.scan) matching torch.nn.GRU semantics."""
    B = x_embs.shape[0]
    H = w_hh.shape[-1]

    def step(h, x_t):
        gi = [x_t @ w_ih[g] + b_ih[g] for g in range(3)]
        gh = [h @ w_hh[g] + b_hh[g] for g in range(3)]
        r = jax.nn.sigmoid(gi[0] + gh[0])
        z = jax.nn.sigmoid(gi[1] + gh[1])
        n = jnp.tanh(gi[2] + r * gh[2])
        h_new = (1.0 - z) * n + z * h
        return h_new, h_new

    h0 = jnp.zeros((B, H), jnp.float32)
    _, ys = jax.lax.scan(step, h0, jnp.transpose(x_embs, (1, 0, 2)))
    return jnp.transpose(ys, (1, 0, 2))


def gru_encoder_forward(src_seq, emb_table, w_ih, w_hh, b_ih, b_hh, *,
                        matmul_dtype=jnp.bfloat16):
    """Mirrors GRUEncoder.forward: embedding lookup (padding_idx=PAD row is zero
    in emb_table) followed by the GRU; returns (gru_output,).

    non_pad_mask is computed in the PyTorch forward but never used in the
    returned value; we skip it (semantics unchanged)."""
    src_embs = jnp.take(emb_table, src_seq, axis=0)   # (B, T, D) glue gather, batch-first
    gru_out = gru_pallas(src_embs, w_ih, w_hh, b_ih, b_hh, matmul_dtype=matmul_dtype)
    return (gru_out,)


if __name__ == "__main__":
    n_src_vocab = 50
    d_model = 32          # D == H (nn.GRU(d_model, d_model))
    B, T = 10, 24         # exercises multiple batch blocks and time chunks

    key = jax.random.PRNGKey(0)
    k_emb, k_wih, k_whh, k_bih, k_bhh, k_seq = jax.random.split(key, 6)

    # Embedding table; padding_idx=PAD row set to zero (as nn.Embedding does).
    emb_table = jax.random.normal(k_emb, (n_src_vocab, d_model), jnp.float32)
    emb_table = emb_table.at[PAD].set(0.0)

    # GRU params, uniform(-1/sqrt(H), 1/sqrt(H)) like PyTorch, stacked per gate
    # in PyTorch order (r, z, n); stored transposed so the kernel does x @ W.
    bound = 1.0 / np.sqrt(d_model)
    w_ih = jax.random.uniform(k_wih, (3, d_model, d_model), jnp.float32, -bound, bound)
    w_hh = jax.random.uniform(k_whh, (3, d_model, d_model), jnp.float32, -bound, bound)
    b_ih = jax.random.uniform(k_bih, (3, d_model), jnp.float32, -bound, bound)
    b_hh = jax.random.uniform(k_bhh, (3, d_model), jnp.float32, -bound, bound)

    # Token ids; include some PAD tokens.
    src_seq = jax.random.randint(k_seq, (B, T), 0, n_src_vocab, jnp.int32)
    src_seq = src_seq.at[:, -2:].set(PAD)

    # Pure-JAX reference.
    src_embs = jnp.take(emb_table, src_seq, axis=0)
    ref = jax.block_until_ready(gru_reference(src_embs, w_ih, w_hh, b_ih, b_hh))

    # f32 MXU path: exact-math check against the lax.scan reference.
    (out_f32,) = gru_encoder_forward(src_seq, emb_table, w_ih, w_hh, b_ih, b_hh,
                                     matmul_dtype=jnp.float32)
    out_f32 = jax.block_until_ready(out_f32)
    assert out_f32.shape == (B, T, d_model)
    np.testing.assert_allclose(np.asarray(out_f32), np.asarray(ref),
                               atol=1e-5, rtol=1e-5)

    # bf16 MXU operands / f32 accumulate (production path on v5e/v6e/v7x).
    (out_bf16,) = gru_encoder_forward(src_seq, emb_table, w_ih, w_hh, b_ih, b_hh,
                                      matmul_dtype=jnp.bfloat16)
    out_bf16 = jax.block_until_ready(out_bf16)
    assert out_bf16.shape == (B, T, d_model)
    np.testing.assert_allclose(np.asarray(out_bf16), np.asarray(ref),
                               atol=5e-2, rtol=5e-2)

    print("KERNEL_OK")
</pallas_src>

<mosaic_0001>
module attributes {stable_mosaic.version = 11 : i64} {
  func.func @gru_chunk_kernel(%arg0: i32, %arg1: i32, %arg2: memref<8x8x384xf32, #tpu.memory_space<vmem>>, %arg3: memref<128x384xf32, #tpu.memory_space<vmem>>, %arg4: memref<1x128xf32, #tpu.memory_space<vmem>>, %arg5: memref<8x8x128xf32, #tpu.memory_space<vmem>>, %arg6: memref<8x128xf32, #tpu.memory_space<vmem>>) attributes {dimension_semantics = [#tpu.dimension_semantics<parallel>, #tpu.dimension_semantics<arbitrary>], iteration_bounds = array<i64: 2, 3>, scalar_prefetch = 0 : i64, scratch_operands = 1 : i64, tpu.core_type = #tpu.core_type<tc>, window_params = [{transform_indices = @transform_0, window_bounds = array<i64: 8, 8, 384>}, {pipeline_mode = #tpu.pipeline_mode<synchronous>, transform_indices = @transform_1, window_bounds = array<i64: 128, 384>}, {pipeline_mode = #tpu.pipeline_mode<synchronous>, transform_indices = @transform_2, window_bounds = array<i64: 1, 128>}, {transform_indices = @transform_3, window_bounds = array<i64: 8, 8, 128>}]} {
    %c0_i32 = arith.constant 0 : i32
    %0 = arith.cmpi eq, %arg1, %c0_i32 : i32
    %1 = arith.extui %0 : i1 to i32
    %c0_i32_0 = arith.constant 0 : i32
    %2 = arith.cmpi ne, %1, %c0_i32_0 : i32
    scf.if %2 {
      %cst_80 = arith.constant 0.000000e+00 : f32
      %273 = vector.broadcast %cst_80 : f32 to vector<8x128xf32>
      %c0_81 = arith.constant 0 : index
      %c0_82 = arith.constant 0 : index
      %274 = vector.load %arg6[%c0_81, %c0_82] : memref<8x128xf32, #tpu.memory_space<vmem>>, vector<8x128xf32>
      tpu.vector_store %arg6[%c0_81, %c0_82], %273 {strides = array<i32>} : memref<8x128xf32, #tpu.memory_space<vmem>>, vector<8x128xf32>,
    } else {
    }
    %c0 = arith.constant 0 : index
    %c0_1 = arith.constant 0 : index
    %3 = vector.load %arg3[%c0, %c0_1] : memref<128x384xf32, #tpu.memory_space<vmem>>, vector<128x384xf32>
    %c0_2 = arith.constant 0 : index
    %c0_3 = arith.constant 0 : index
    %4 = vector.load %arg4[%c0_2, %c0_3] : memref<1x128xf32, #tpu.memory_space<vmem>>, vector<1x128xf32>
    %5 = vector.shape_cast %4 : vector<1x128xf32> to vector<1x128xf32>
    %6 = vector.broadcast %5 : vector<1x128xf32> to vector<8x128xf32>
    %c0_4 = arith.constant 0 : index
    %c0_5 = arith.constant 0 : index
    %7 = vector.load %arg6[%c0_4, %c0_5] : memref<8x128xf32, #tpu.memory_space<vmem>>, vector<8x128xf32>
    %c0_6 = arith.constant 0 : index
    %c0_7 = arith.constant 0 : index
    %c0_8 = arith.constant 0 : index
    %8 = vector.load %arg2[%c0_6, %c0_7, %c0_8] : memref<8x8x384xf32, #tpu.memory_space<vmem>>, vector<8x1x384xf32>
    %9 = vector.shape_cast %8 : vector<8x1x384xf32> to vector<8x384xf32>
    %cst = arith.constant dense<0.000000e+00> : vector<8x384xf32>
    %10 = tpu.matmul %7, %3, %cst {dimension_numbers = #tpu.dot_dimension_numbers<[1], [0], [0], [1], [0, 0, 1, 1], [], []>} : vector<8x128xf32>, vector<128x384xf32>, vector<8x384xf32> -> vector<8x384xf32>
    %11 = vector.extract_strided_slice %9 {offsets = [0, 0], sizes = [8, 128], strides = [1, 1]} : vector<8x384xf32> to vector<8x128xf32>
    %12 = vector.extract_strided_slice %10 {offsets = [0, 0], sizes = [8, 128], strides = [1, 1]} : vector<8x384xf32> to vector<8x128xf32>
    %13 = arith.addf %11, %12 : vector<8x128xf32>
    %14 = arith.negf %13 : vector<8x128xf32>
    %15 = math.exp %14 : vector<8x128xf32>
    %cst_9 = arith.constant 1.000000e+00 : f32
    %16 = vector.broadcast %cst_9 : f32 to vector<8x128xf32>
    %17 = arith.addf %16, %15 : vector<8x128xf32>
    %18 = arith.divf %16, %17 : vector<8x128xf32>
    %19 = vector.extract_strided_slice %9 {offsets = [0, 128], sizes = [8, 128], strides = [1, 1]} : vector<8x384xf32> to vector<8x128xf32>
    %20 = vector.extract_strided_slice %10 {offsets = [0, 128], sizes = [8, 128], strides = [1, 1]} : vector<8x384xf32> to vector<8x128xf32>
    %21 = arith.addf %19, %20 : vector<8x128xf32>
    %22 = arith.negf %21 : vector<8x128xf32>
    %23 = math.exp %22 : vector<8x128xf32>
    %cst_10 = arith.constant 1.000000e+00 : f32
    %24 = vector.broadcast %cst_10 : f32 to vector<8x128xf32>
    %25 = arith.addf %24, %23 : vector<8x128xf32>
    %26 = arith.divf %24, %25 : vector<8x128xf32>
    %27 = vector.extract_strided_slice %9 {offsets = [0, 256], sizes = [8, 128], strides = [1, 1]} : vector<8x384xf32> to vector<8x128xf32>
    %28 = vector.extract_strided_slice %10 {offsets = [0, 256], sizes = [8, 128], strides = [1, 1]} : vector<8x384xf32> to vector<8x128xf32>
    %29 = arith.addf %28, %6 : vector<8x128xf32>
    %30 = arith.mulf %18, %29 : vector<8x128xf32>
    %31 = arith.addf %27, %30 : vector<8x128xf32>
    %32 = math.tanh %31 : vector<8x128xf32>
    %cst_11 = arith.constant 1.000000e+00 : f32
    %33 = vector.broadcast %cst_11 : f32 to vector<8x128xf32>
    %34 = arith.subf %33, %26 : vector<8x128xf32>
    %35 = arith.mulf %34, %32 : vector<8x128xf32>
    %36 = arith.mulf %26, %7 : vector<8x128xf32>
    %37 = arith.addf %35, %36 : vector<8x128xf32>
    %c0_12 = arith.constant 0 : index
    %c0_13 = arith.constant 0 : index
    %c0_14 = arith.constant 0 : index
    %38 = vector.load %arg5[%c0_12, %c0_13, %c0_14] : memref<8x8x128xf32, #tpu.memory_space<vmem>>, vector<8x1x128xf32>
    %39 = vector.shape_cast %38 : vector<8x1x128xf32> to vector<8x128xf32>
    %40 = vector.shape_cast %37 : vector<8x128xf32> to vector<8x1x128xf32>
    tpu.vector_store %arg5[%c0_12, %c0_13, %c0_14], %40 {strides = array<i32>} : memref<8x8x128xf32, #tpu.memory_space<vmem>>, vector<8x1x128xf32>,
    %c0_15 = arith.constant 0 : index
    %c1 = arith.constant 1 : index
    %c0_16 = arith.constant 0 : index
    %41 = vector.load %arg2[%c0_15, %c1, %c0_16] : memref<8x8x384xf32, #tpu.memory_space<vmem>>, vector<8x1x384xf32>
    %42 = vector.shape_cast %41 : vector<8x1x384xf32> to vector<8x384xf32>
    %cst_17 = arith.constant dense<0.000000e+00> : vector<8x384xf32>
    %43 = tpu.matmul %37, %3, %cst_17 {dimension_numbers = #tpu.dot_dimension_numbers<[1], [0], [0], [1], [0, 0, 1, 1], [], []>} : vector<8x128xf32>, vector<128x384xf32>, vector<8x384xf32> -> vector<8x384xf32>
    %44 = vector.extract_strided_slice %42 {offsets = [0, 0], sizes = [8, 128], strides = [1, 1]} : vector<8x384xf32> to vector<8x128xf32>
    %45 = vector.extract_strided_slice %43 {offsets = [0, 0], sizes = [8, 128], strides = [1, 1]} : vector<8x384xf32> to vector<8x128xf32>
    %46 = arith.addf %44, %45 : vector<8x128xf32>
    %47 = arith.negf %46 : vector<8x128xf32>
    %48 = math.exp %47 : vector<8x128xf32>
    %cst_18 = arith.constant 1.000000e+00 : f32
    %49 = vector.broadcast %cst_18 : f32 to vector<8x128xf32>
    %50 = arith.addf %49, %48 : vector<8x128xf32>
    %51 = arith.divf %49, %50 : vector<8x128xf32>
    %52 = vector.extract_strided_slice %42 {offsets = [0, 128], sizes = [8, 128], strides = [1, 1]} : vector<8x384xf32> to vector<8x128xf32>
    %53 = vector.extract_strided_slice %43 {offsets = [0, 128], sizes = [8, 128], strides = [1, 1]} : vector<8x384xf32> to vector<8x128xf32>
    %54 = arith.addf %52, %53 : vector<8x128xf32>
    %55 = arith.negf %54 : vector<8x128xf32>
    %56 = math.exp %55 : vector<8x128xf32>
    %cst_19 = arith.constant 1.000000e+00 : f32
    %57 = vector.broadcast %cst_19 : f32 to vector<8x128xf32>
    %58 = arith.addf %57, %56 : vector<8x128xf32>
    %59 = arith.divf %57, %58 : vector<8x128xf32>
    %60 = vector.extract_strided_slice %42 {offsets = [0, 256], sizes = [8, 128], strides = [1, 1]} : vector<8x384xf32> to vector<8x128xf32>
    %61 = vector.extract_strided_slice %43 {offsets = [0, 256], sizes = [8, 128], strides = [1, 1]} : vector<8x384xf32> to vector<8x128xf32>
    %62 = arith.addf %61, %6 : vector<8x128xf32>
    %63 = arith.mulf %51, %62 : vector<8x128xf32>
    %64 = arith.addf %60, %63 : vector<8x128xf32>
    %65 = math.tanh %64 : vector<8x128xf32>
    %cst_20 = arith.constant 1.000000e+00 : f32
    %66 = vector.broadcast %cst_20 : f32 to vector<8x128xf32>
    %67 = arith.subf %66, %59 : vector<8x128xf32>
    %68 = arith.mulf %67, %65 : vector<8x128xf32>
    %69 = arith.mulf %59, %37 : vector<8x128xf32>
    %70 = arith.addf %68, %69 : vector<8x128xf32>
    %c0_21 = arith.constant 0 : index
    %c1_22 = arith.constant 1 : index
    %c0_23 = arith.constant 0 : index
    %71 = vector.load %arg5[%c0_21, %c1_22, %c0_23] : memref<8x8x128xf32, #tpu.memory_space<vmem>>, vector<8x1x128xf32>
    %72 = vector.shape_cast %71 : vector<8x1x128xf32> to vector<8x128xf32>
    %73 = vector.shape_cast %70 : vector<8x128xf32> to vector<8x1x128xf32>
    tpu.vector_store %arg5[%c0_21, %c1_22, %c0_23], %73 {strides = array<i32>} : memref<8x8x128xf32, #tpu.memory_space<vmem>>, vector<8x1x128xf32>,
    %c0_24 = arith.constant 0 : index
    %c2 = arith.constant 2 : index
    %c0_25 = arith.constant 0 : index
    %74 = vector.load %arg2[%c0_24, %c2, %c0_25] : memref<8x8x384xf32, #tpu.memory_space<vmem>>, vector<8x1x384xf32>
    %75 = vector.shape_cast %74 : vector<8x1x384xf32> to vector<8x384xf32>
    %cst_26 = arith.constant dense<0.000000e+00> : vector<8x384xf32>
    %76 = tpu.matmul %70, %3, %cst_26 {dimension_numbers = #tpu.dot_dimension_numbers<[1], [0], [0], [1], [0, 0, 1, 1], [], []>} : vector<8x128xf32>, vector<128x384xf32>, vector<8x384xf32> -> vector<8x384xf32>
    %77 = vector.extract_strided_slice %75 {offsets = [0, 0], sizes = [8, 128], strides = [1, 1]} : vector<8x384xf32> to vector<8x128xf32>
    %78 = vector.extract_strided_slice %76 {offsets = [0, 0], sizes = [8, 128], strides = [1, 1]} : vector<8x384xf32> to vector<8x128xf32>
    %79 = arith.addf %77, %78 : vector<8x128xf32>
    %80 = arith.negf %79 : vector<8x128xf32>
    %81 = math.exp %80 : vector<8x128xf32>
    %cst_27 = arith.constant 1.000000e+00 : f32
    %82 = vector.broadcast %cst_27 : f32 to vector<8x128xf32>
    %83 = arith.addf %82, %81 : vector<8x128xf32>
    %84 = arith.divf %82, %83 : vector<8x128xf32>
    %85 = vector.extract_strided_slice %75 {offsets = [0, 128], sizes = [8, 128], strides = [1, 1]} : vector<8x384xf32> to vector<8x128xf32>
    %86 = vector.extract_strided_slice %76 {offsets = [0, 128], sizes = [8, 128], strides = [1, 1]} : vector<8x384xf32> to vector<8x128xf32>
    %87 = arith.addf %85, %86 : vector<8x128xf32>
    %88 = arith.negf %87 : vector<8x128xf32>
    %89 = math.exp %88 : vector<8x128xf32>
    %cst_28 = arith.constant 1.000000e+00 : f32
    %90 = vector.broadcast %cst_28 : f32 to vector<8x128xf32>
    %91 = arith.addf %90, %89 : vector<8x128xf32>
    %92 = arith.divf %90, %91 : vector<8x128xf32>
    %93 = vector.extract_strided_slice %75 {offsets = [0, 256], sizes = [8, 128], strides = [1, 1]} : vector<8x384xf32> to vector<8x128xf32>
    %94 = vector.extract_strided_slice %76 {offsets = [0, 256], sizes = [8, 128], strides = [1, 1]} : vector<8x384xf32> to vector<8x128xf32>
    %95 = arith.addf %94, %6 : vector<8x128xf32>
    %96 = arith.mulf %84, %95 : vector<8x128xf32>
    %97 = arith.addf %93, %96 : vector<8x128xf32>
    %98 = math.tanh %97 : vector<8x128xf32>
    %cst_29 = arith.constant 1.000000e+00 : f32
    %99 = vector.broadcast %cst_29 : f32 to vector<8x128xf32>
    %100 = arith.subf %99, %92 : vector<8x128xf32>
    %101 = arith.mulf %100, %98 : vector<8x128xf32>
    %102 = arith.mulf %92, %70 : vector<8x128xf32>
    %103 = arith.addf %101, %102 : vector<8x128xf32>
    %c0_30 = arith.constant 0 : index
    %c2_31 = arith.constant 2 : index
    %c0_32 = arith.constant 0 : index
    %104 = vector.load %arg5[%c0_30, %c2_31, %c0_32] : memref<8x8x128xf32, #tpu.memory_space<vmem>>, vector<8x1x128xf32>
    %105 = vector.shape_cast %104 : vector<8x1x128xf32> to vector<8x128xf32>
    %106 = vector.shape_cast %103 : vector<8x128xf32> to vector<8x1x128xf32>
    tpu.vector_store %arg5[%c0_30, %c2_31, %c0_32], %106 {strides = array<i32>} : memref<8x8x128xf32, #tpu.memory_space<vmem>>, vector<8x1x128xf32>,
    %c0_33 = arith.constant 0 : index
    %c3 = arith.constant 3 : index
    %c0_34 = arith.constant 0 : index
    %107 = vector.load %arg2[%c0_33, %c3, %c0_34] : memref<8x8x384xf32, #tpu.memory_space<vmem>>, vector<8x1x384xf32>
    %108 = vector.shape_cast %107 : vector<8x1x384xf32> to vector<8x384xf32>
    %cst_35 = arith.constant dense<0.000000e+00> : vector<8x384xf32>
    %109 = tpu.matmul %103, %3, %cst_35 {dimension_numbers = #tpu.dot_dimension_numbers<[1], [0], [0], [1], [0, 0, 1, 1], [], []>} : vector<8x128xf32>, vector<128x384xf32>, vector<8x384xf32> -> vector<8x384xf32>
    %110 = vector.extract_strided_slice %108 {offsets = [0, 0], sizes = [8, 128], strides = [1, 1]} : vector<8x384xf32> to vector<8x128xf32>
    %111 = vector.extract_strided_slice %109 {offsets = [0, 0], sizes = [8, 128], strides = [1, 1]} : vector<8x384xf32> to vector<8x128xf32>
    %112 = arith.addf %110, %111 : vector<8x128xf32>
    %113 = arith.negf %112 : vector<8x128xf32>
    %114 = math.exp %113 : vector<8x128xf32>
    %cst_36 = arith.constant 1.000000e+00 : f32
    %115 = vector.broadcast %cst_36 : f32 to vector<8x128xf32>
    %116 = arith.addf %115, %114 : vector<8x128xf32>
    %117 = arith.divf %115, %116 : vector<8x128xf32>
    %118 = vector.extract_strided_slice %108 {offsets = [0, 128], sizes = [8, 128], strides = [1, 1]} : vector<8x384xf32> to vector<8x128xf32>
    %119 = vector.extract_strided_slice %109 {offsets = [0, 128], sizes = [8, 128], strides = [1, 1]} : vector<8x384xf32> to vector<8x128xf32>
    %120 = arith.addf %118, %119 : vector<8x128xf32>
    %121 = arith.negf %120 : vector<8x128xf32>
    %122 = math.exp %121 : vector<8x128xf32>
    %cst_37 = arith.constant 1.000000e+00 : f32
    %123 = vector.broadcast %cst_37 : f32 to vector<8x128xf32>
    %124 = arith.addf %123, %122 : vector<8x128xf32>
    %125 = arith.divf %123, %124 : vector<8x128xf32>
    %126 = vector.extract_strided_slice %108 {offsets = [0, 256], sizes = [8, 128], strides = [1, 1]} : vector<8x384xf32> to vector<8x128xf32>
    %127 = vector.extract_strided_slice %109 {offsets = [0, 256], sizes = [8, 128], strides = [1, 1]} : vector<8x384xf32> to vector<8x128xf32>
    %128 = arith.addf %127, %6 : vector<8x128xf32>
    %129 = arith.mulf %117, %128 : vector<8x128xf32>
    %130 = arith.addf %126, %129 : vector<8x128xf32>
    %131 = math.tanh %130 : vector<8x128xf32>
    %cst_38 = arith.constant 1.000000e+00 : f32
    %132 = vector.broadcast %cst_38 : f32 to vector<8x128xf32>
    %133 = arith.subf %132, %125 : vector<8x128xf32>
    %134 = arith.mulf %133, %131 : vector<8x128xf32>
    %135 = arith.mulf %125, %103 : vector<8x128xf32>
    %136 = arith.addf %134, %135 : vector<8x128xf32>
    %c0_39 = arith.constant 0 : index
    %c3_40 = arith.constant 3 : index
    %c0_41 = arith.constant 0 : index
    %137 = vector.load %arg5[%c0_39, %c3_40, %c0_41] : memref<8x8x128xf32, #tpu.memory_space<vmem>>, vector<8x1x128xf32>
    %138 = vector.shape_cast %137 : vector<8x1x128xf32> to vector<8x128xf32>
    %139 = vector.shape_cast %136 : vector<8x128xf32> to vector<8x1x128xf32>
    tpu.vector_store %arg5[%c0_39, %c3_40, %c0_41], %139 {strides = array<i32>} : memref<8x8x128xf32, #tpu.memory_space<vmem>>, vector<8x1x128xf32>,
    %c0_42 = arith.constant 0 : index
    %c4 = arith.constant 4 : index
    %c0_43 = arith.constant 0 : index
    %140 = vector.load %arg2[%c0_42, %c4, %c0_43] : memref<8x8x384xf32, #tpu.memory_space<vmem>>, vector<8x1x384xf32>
    %141 = vector.shape_cast %140 : vector<8x1x384xf32> to vector<8x384xf32>
    %cst_44 = arith.constant dense<0.000000e+00> : vector<8x384xf32>
    %142 = tpu.matmul %136, %3, %cst_44 {dimension_numbers = #tpu.dot_dimension_numbers<[1], [0], [0], [1], [0, 0, 1, 1], [], []>} : vector<8x128xf32>, vector<128x384xf32>, vector<8x384xf32> -> vector<8x384xf32>
    %143 = vector.extract_strided_slice %141 {offsets = [0, 0], sizes = [8, 128], strides = [1, 1]} : vector<8x384xf32> to vector<8x128xf32>
    %144 = vector.extract_strided_slice %142 {offsets = [0, 0], sizes = [8, 128], strides = [1, 1]} : vector<8x384xf32> to vector<8x128xf32>
    %145 = arith.addf %143, %144 : vector<8x128xf32>
    %146 = arith.negf %145 : vector<8x128xf32>
    %147 = math.exp %146 : vector<8x128xf32>
    %cst_45 = arith.constant 1.000000e+00 : f32
    %148 = vector.broadcast %cst_45 : f32 to vector<8x128xf32>
    %149 = arith.addf %148, %147 : vector<8x128xf32>
    %150 = arith.divf %148, %149 : vector<8x128xf32>
    %151 = vector.extract_strided_slice %141 {offsets = [0, 128], sizes = [8, 128], strides = [1, 1]} : vector<8x384xf32> to vector<8x128xf32>
    %152 = vector.extract_strided_slice %142 {offsets = [0, 128], sizes = [8, 128], strides = [1, 1]} : vector<8x384xf32> to vector<8x128xf32>
    %153 = arith.addf %151, %152 : vector<8x128xf32>
    %154 = arith.negf %153 : vector<8x128xf32>
    %155 = math.exp %154 : vector<8x128xf32>
    %cst_46 = arith.constant 1.000000e+00 : f32
    %156 = vector.broadcast %cst_46 : f32 to vector<8x128xf32>
    %157 = arith.addf %156, %155 : vector<8x128xf32>
    %158 = arith.divf %156, %157 : vector<8x128xf32>
    %159 = vector.extract_strided_slice %141 {offsets = [0, 256], sizes = [8, 128], strides = [1, 1]} : vector<8x384xf32> to vector<8x128xf32>
    %160 = vector.extract_strided_slice %142 {offsets = [0, 256], sizes = [8, 128], strides = [1, 1]} : vector<8x384xf32> to vector<8x128xf32>
    %161 = arith.addf %160, %6 : vector<8x128xf32>
    %162 = arith.mulf %150, %161 : vector<8x128xf32>
    %163 = arith.addf %159, %162 : vector<8x128xf32>
    %164 = math.tanh %163 : vector<8x128xf32>
    %cst_47 = arith.constant 1.000000e+00 : f32
    %165 = vector.broadcast %cst_47 : f32 to vector<8x128xf32>
    %166 = arith.subf %165, %158 : vector<8x128xf32>
    %167 = arith.mulf %166, %164 : vector<8x128xf32>
    %168 = arith.mulf %158, %136 : vector<8x128xf32>
    %169 = arith.addf %167, %168 : vector<8x128xf32>
    %c0_48 = arith.constant 0 : index
    %c4_49 = arith.constant 4 : index
    %c0_50 = arith.constant 0 : index
    %170 = vector.load %arg5[%c0_48, %c4_49, %c0_50] : memref<8x8x128xf32, #tpu.memory_space<vmem>>, vector<8x1x128xf32>
    %171 = vector.shape_cast %170 : vector<8x1x128xf32> to vector<8x128xf32>
    %172 = vector.shape_cast %169 : vector<8x128xf32> to vector<8x1x128xf32>
    tpu.vector_store %arg5[%c0_48, %c4_49, %c0_50], %172 {strides = array<i32>} : memref<8x8x128xf32, #tpu.memory_space<vmem>>, vector<8x1x128xf32>,
    %c0_51 = arith.constant 0 : index
    %c5 = arith.constant 5 : index
    %c0_52 = arith.constant 0 : index
    %173 = vector.load %arg2[%c0_51, %c5, %c0_52] : memref<8x8x384xf32, #tpu.memory_space<vmem>>, vector<8x1x384xf32>
    %174 = vector.shape_cast %173 : vector<8x1x384xf32> to vector<8x384xf32>
    %cst_53 = arith.constant dense<0.000000e+00> : vector<8x384xf32>
    %175 = tpu.matmul %169, %3, %cst_53 {dimension_numbers = #tpu.dot_dimension_numbers<[1], [0], [0], [1], [0, 0, 1, 1], [], []>} : vector<8x128xf32>, vector<128x384xf32>, vector<8x384xf32> -> vector<8x384xf32>
    %176 = vector.extract_strided_slice %174 {offsets = [0, 0], sizes = [8, 128], strides = [1, 1]} : vector<8x384xf32> to vector<8x128xf32>
    %177 = vector.extract_strided_slice %175 {offsets = [0, 0], sizes = [8, 128], strides = [1, 1]} : vector<8x384xf32> to vector<8x128xf32>
    %178 = arith.addf %176, %177 : vector<8x128xf32>
    %179 = arith.negf %178 : vector<8x128xf32>
    %180 = math.exp %179 : vector<8x128xf32>
    %cst_54 = arith.constant 1.000000e+00 : f32
    %181 = vector.broadcast %cst_54 : f32 to vector<8x128xf32>
    %182 = arith.addf %181, %180 : vector<8x128xf32>
    %183 = arith.divf %181, %182 : vector<8x128xf32>
    %184 = vector.extract_strided_slice %174 {offsets = [0, 128], sizes = [8, 128], strides = [1, 1]} : vector<8x384xf32> to vector<8x128xf32>
    %185 = vector.extract_strided_slice %175 {offsets = [0, 128], sizes = [8, 128], strides = [1, 1]} : vector<8x384xf32> to vector<8x128xf32>
    %186 = arith.addf %184, %185 : vector<8x128xf32>
    %187 = arith.negf %186 : vector<8x128xf32>
    %188 = math.exp %187 : vector<8x128xf32>
    %cst_55 = arith.constant 1.000000e+00 : f32
    %189 = vector.broadcast %cst_55 : f32 to vector<8x128xf32>
    %190 = arith.addf %189, %188 : vector<8x128xf32>
    %191 = arith.divf %189, %190 : vector<8x128xf32>
    %192 = vector.extract_strided_slice %174 {offsets = [0, 256], sizes = [8, 128], strides = [1, 1]} : vector<8x384xf32> to vector<8x128xf32>
    %193 = vector.extract_strided_slice %175 {offsets = [0, 256], sizes = [8, 128], strides = [1, 1]} : vector<8x384xf32> to vector<8x128xf32>
    %194 = arith.addf %193, %6 : vector<8x128xf32>
    %195 = arith.mulf %183, %194 : vector<8x128xf32>
    %196 = arith.addf %192, %195 : vector<8x128xf32>
    %197 = math.tanh %196 : vector<8x128xf32>
    %cst_56 = arith.constant 1.000000e+00 : f32
    %198 = vector.broadcast %cst_56 : f32 to vector<8x128xf32>
    %199 = arith.subf %198, %191 : vector<8x128xf32>
    %200 = arith.mulf %199, %197 : vector<8x128xf32>
    %201 = arith.mulf %191, %169 : vector<8x128xf32>
    %202 = arith.addf %200, %201 : vector<8x128xf32>
    %c0_57 = arith.constant 0 : index
    %c5_58 = arith.constant 5 : index
    %c0_59 = arith.constant 0 : index
    %203 = vector.load %arg5[%c0_57, %c5_58, %c0_59] : memref<8x8x128xf32, #tpu.memory_space<vmem>>, vector<8x1x128xf32>
    %204 = vector.shape_cast %203 : vector<8x1x128xf32> to vector<8x128xf32>
    %205 = vector.shape_cast %202 : vector<8x128xf32> to vector<8x1x128xf32>
    tpu.vector_store %arg5[%c0_57, %c5_58, %c0_59], %205 {strides = array<i32>} : memref<8x8x128xf32, #tpu.memory_space<vmem>>, vector<8x1x128xf32>,
    %c0_60 = arith.constant 0 : index
    %c6 = arith.constant 6 : index
    %c0_61 = arith.constant 0 : index
    %206 = vector.load %arg2[%c0_60, %c6, %c0_61] : memref<8x8x384xf32, #tpu.memory_space<vmem>>, vector<8x1x384xf32>
    %207 = vector.shape_cast %206 : vector<8x1x384xf32> to vector<8x384xf32>
    %cst_62 = arith.constant dense<0.000000e+00> : vector<8x384xf32>
    %208 = tpu.matmul %202, %3, %cst_62 {dimension_numbers = #tpu.dot_dimension_numbers<[1], [0], [0], [1], [0, 0, 1, 1], [], []>} : vector<8x128xf32>, vector<128x384xf32>, vector<8x384xf32> -> vector<8x384xf32>
    %209 = vector.extract_strided_slice %207 {offsets = [0, 0], sizes = [8, 128], strides = [1, 1]} : vector<8x384xf32> to vector<8x128xf32>
    %210 = vector.extract_strided_slice %208 {offsets = [0, 0], sizes = [8, 128], strides = [1, 1]} : vector<8x384xf32> to vector<8x128xf32>
    %211 = arith.addf %209, %210 : vector<8x128xf32>
    %212 = arith.negf %211 : vector<8x128xf32>
    %213 = math.exp %212 : vector<8x128xf32>
    %cst_63 = arith.constant 1.000000e+00 : f32
    %214 = vector.broadcast %cst_63 : f32 to vector<8x128xf32>
    %215 = arith.addf %214, %213 : vector<8x128xf32>
    %216 = arith.divf %214, %215 : vector<8x128xf32>
    %217 = vector.extract_strided_slice %207 {offsets = [0, 128], sizes = [8, 128], strides = [1, 1]} : vector<8x384xf32> to vector<8x128xf32>
    %218 = vector.extract_strided_slice %208 {offsets = [0, 128], sizes = [8, 128], strides = [1, 1]} : vector<8x384xf32> to vector<8x128xf32>
    %219 = arith.addf %217, %218 : vector<8x128xf32>
    %220 = arith.negf %219 : vector<8x128xf32>
    %221 = math.exp %220 : vector<8x128xf32>
    %cst_64 = arith.constant 1.000000e+00 : f32
    %222 = vector.broadcast %cst_64 : f32 to vector<8x128xf32>
    %223 = arith.addf %222, %221 : vector<8x128xf32>
    %224 = arith.divf %222, %223 : vector<8x128xf32>
    %225 = vector.extract_strided_slice %207 {offsets = [0, 256], sizes = [8, 128], strides = [1, 1]} : vector<8x384xf32> to vector<8x128xf32>
    %226 = vector.extract_strided_slice %208 {offsets = [0, 256], sizes = [8, 128], strides = [1, 1]} : vector<8x384xf32> to vector<8x128xf32>
    %227 = arith.addf %226, %6 : vector<8x128xf32>
    %228 = arith.mulf %216, %227 : vector<8x128xf32>
    %229 = arith.addf %225, %228 : vector<8x128xf32>
    %230 = math.tanh %229 : vector<8x128xf32>
    %cst_65 = arith.constant 1.000000e+00 : f32
    %231 = vector.broadcast %cst_65 : f32 to vector<8x128xf32>
    %232 = arith.subf %231, %224 : vector<8x128xf32>
    %233 = arith.mulf %232, %230 : vector<8x128xf32>
    %234 = arith.mulf %224, %202 : vector<8x128xf32>
    %235 = arith.addf %233, %234 : vector<8x128xf32>
    %c0_66 = arith.constant 0 : index
    %c6_67 = arith.constant 6 : index
    %c0_68 = arith.constant 0 : index
    %236 = vector.load %arg5[%c0_66, %c6_67, %c0_68] : memref<8x8x128xf32, #tpu.memory_space<vmem>>, vector<8x1x128xf32>
    %237 = vector.shape_cast %236 : vector<8x1x128xf32> to vector<8x128xf32>
    %238 = vector.shape_cast %235 : vector<8x128xf32> to vector<8x1x128xf32>
    tpu.vector_store %arg5[%c0_66, %c6_67, %c0_68], %238 {strides = array<i32>} : memref<8x8x128xf32, #tpu.memory_space<vmem>>, vector<8x1x128xf32>,
    %c0_69 = arith.constant 0 : index
    %c7 = arith.constant 7 : index
    %c0_70 = arith.constant 0 : index
    %239 = vector.load %arg2[%c0_69, %c7, %c0_70] : memref<8x8x384xf32, #tpu.memory_space<vmem>>, vector<8x1x384xf32>
    %240 = vector.shape_cast %239 : vector<8x1x384xf32> to vector<8x384xf32>
    %cst_71 = arith.constant dense<0.000000e+00> : vector<8x384xf32>
    %241 = tpu.matmul %235, %3, %cst_71 {dimension_numbers = #tpu.dot_dimension_numbers<[1], [0], [0], [1], [0, 0, 1, 1], [], []>} : vector<8x128xf32>, vector<128x384xf32>, vector<8x384xf32> -> vector<8x384xf32>
    %242 = vector.extract_strided_slice %240 {offsets = [0, 0], sizes = [8, 128], strides = [1, 1]} : vector<8x384xf32> to vector<8x128xf32>
    %243 = vector.extract_strided_slice %241 {offsets = [0, 0], sizes = [8, 128], strides = [1, 1]} : vector<8x384xf32> to vector<8x128xf32>
    %244 = arith.addf %242, %243 : vector<8x128xf32>
    %245 = arith.negf %244 : vector<8x128xf32>
    %246 = math.exp %245 : vector<8x128xf32>
    %cst_72 = arith.constant 1.000000e+00 : f32
    %247 = vector.broadcast %cst_72 : f32 to vector<8x128xf32>
    %248 = arith.addf %247, %246 : vector<8x128xf32>
    %249 = arith.divf %247, %248 : vector<8x128xf32>
    %250 = vector.extract_strided_slice %240 {offsets = [0, 128], sizes = [8, 128], strides = [1, 1]} : vector<8x384xf32> to vector<8x128xf32>
    %251 = vector.extract_strided_slice %241 {offsets = [0, 128], sizes = [8, 128], strides = [1, 1]} : vector<8x384xf32> to vector<8x128xf32>
    %252 = arith.addf %250, %251 : vector<8x128xf32>
    %253 = arith.negf %252 : vector<8x128xf32>
    %254 = math.exp %253 : vector<8x128xf32>
    %cst_73 = arith.constant 1.000000e+00 : f32
    %255 = vector.broadcast %cst_73 : f32 to vector<8x128xf32>
    %256 = arith.addf %255, %254 : vector<8x128xf32>
    %257 = arith.divf %255, %256 : vector<8x128xf32>
    %258 = vector.extract_strided_slice %240 {offsets = [0, 256], sizes = [8, 128], strides = [1, 1]} : vector<8x384xf32> to vector<8x128xf32>
    %259 = vector.extract_strided_slice %241 {offsets = [0, 256], sizes = [8, 128], strides = [1, 1]} : vector<8x384xf32> to vector<8x128xf32>
    %260 = arith.addf %259, %6 : vector<8x128xf32>
    %261 = arith.mulf %249, %260 : vector<8x128xf32>
    %262 = arith.addf %258, %261 : vector<8x128xf32>
    %263 = math.tanh %262 : vector<8x128xf32>
    %cst_74 = arith.constant 1.000000e+00 : f32
    %264 = vector.broadcast %cst_74 : f32 to vector<8x128xf32>
    %265 = arith.subf %264, %257 : vector<8x128xf32>
    %266 = arith.mulf %265, %263 : vector<8x128xf32>
    %267 = arith.mulf %257, %235 : vector<8x128xf32>
    %268 = arith.addf %266, %267 : vector<8x128xf32>
    %c0_75 = arith.constant 0 : index
    %c7_76 = arith.constant 7 : index
    %c0_77 = arith.constant 0 : index
    %269 = vector.load %arg5[%c0_75, %c7_76, %c0_77] : memref<8x8x128xf32, #tpu.memory_space<vmem>>, vector<8x1x128xf32>
    %270 = vector.shape_cast %269 : vector<8x1x128xf32> to vector<8x128xf32>
    %271 = vector.shape_cast %268 : vector<8x128xf32> to vector<8x1x128xf32>
    tpu.vector_store %arg5[%c0_75, %c7_76, %c0_77], %271 {strides = array<i32>} : memref<8x8x128xf32, #tpu.memory_space<vmem>>, vector<8x1x128xf32>,
    %c0_78 = arith.constant 0 : index
    %c0_79 = arith.constant 0 : index
    %272 = vector.load %arg6[%c0_78, %c0_79] : memref<8x128xf32, #tpu.memory_space<vmem>>, vector<8x128xf32>
    tpu.vector_store %arg6[%c0_78, %c0_79], %268 {strides = array<i32>} : memref<8x128xf32, #tpu.memory_space<vmem>>, vector<8x128xf32>,
    return
  }
  func.func @transform_0(%arg0: i32, %arg1: i32) -> (i32, i32, i32) {
    %c0_i32 = arith.constant 0 : i32
    %c0_i32_0 = arith.constant 0 : i32
    return %arg0, %arg1, %c0_i32 : i32, i32, i32
  }
  func.func @transform_1(%arg0: i32, %arg1: i32) -> (i32, i32) {
    %c0_i32 = arith.constant 0 : i32
    %c0_i32_0 = arith.constant 0 : i32
    %c0_i32_1 = arith.constant 0 : i32
    return %c0_i32, %c0_i32_0 : i32, i32
  }
  func.func @transform_2(%arg0: i32, %arg1: i32) -> (i32, i32) {
    %c0_i32 = arith.constant 0 : i32
    %c0_i32_0 = arith.constant 0 : i32
    %c0_i32_1 = arith.constant 0 : i32
    return %c0_i32, %c0_i32_0 : i32, i32
  }
  func.func @transform_3(%arg0: i32, %arg1: i32) -> (i32, i32, i32) {
    %c0_i32 = arith.constant 0 : i32
    %c0_i32_0 = arith.constant 0 : i32
    return %arg0, %arg1, %c0_i32 : i32, i32, i32
  }
}

</mosaic_0001>

<bundles_post_ra>
// kernel: tpu_custom_call.1
= control target key start
LH: loop header
LB: loop body
LE: loop exit
PB: predicated region body
PF: predicated region fallthrough
CT: control target
= control target key end

     0   :  { %s8990_s0 = inlined_call_operand.hbm [shape: f32[16,24,384], index: 0, kind: input, shape index: {}]   ;;  %s8991_s1 = inlined_call_operand.hbm [shape: f32[128,384], index: 1, kind: input, shape index: {}]   ;;  %s8992_s2 = inlined_call_operand.vmem [shape: f32[1,128], index: 2, kind: input, shape index: {}]   ;;  %s8993_s3 = inlined_call_operand.hbm [shape: f32[16,24,128], index: 3, kind: output, shape index: {}]  }
   0x1   :  { %9091 = sst [smem:[#allocation45_spill]] %s8991_s1 }
   0x2   :  { %9092 = sst [smem:[#allocation46_spill]] %s8993_s3 }
   0x3   :  { %8 = vsyncpa [#allocation4], 0 }
   0x4   :  { %10 = vsyncpa [#allocation4 + $0x1], 0 }
   0x5   :  { %11 = vsyncpa [#allocation7], 0 }
   0x6   :  { %12 = vsyncpa [#allocation5], 0 }
   0x7   :  { %14 = vsyncpa [#allocation5 + $0x1], 0  ;;  %s7014_s12 = smov 0   ;;  %s7016_s13 = smov 0  }
   0x8   :  { %s7018_s14 = smov 0   ;;  %s7020_s15 = smov 0  }
   0x9   :  { %s7022_s16 = smov 0   ;;  %s7024_s17 = smov 0  }
   0xa   :  { %s7026_s18 = smov 0   ;;  %s7028_s19 = smov 0  }
   0xb LB: > { %9093 = sst [smem:[#allocation12_spill]] %s6951_s12  ;;  %s5307_s20 = sadd.s32 4294967295, %s6979_s19   ;;  %s6979_s19 = sphi %s7028_s19, %s20_s19   ;;  %s6975_s18 = sphi %s7026_s18, %s9292_s18   ;;  %s6971_s17 = sphi %s7024_s17, %s9291_s17   ;;  %s6967_s16 = sphi %s7022_s16, %s9290_s16   ;;  %s6963_s15 = sphi %s7020_s15, %s9285_s15   ;;  %s6959_s14 = sphi %s7018_s14, %s9289_s14   ;;  %s6955_s13 = sphi %s7016_s13, %s9288_s13   ;;  %s6951_s12 = sphi %s7014_s12, %s9287_s12  }
   0xc   : > { %9094 = sst [smem:[#allocation13_spill]] %s6971_s17  ;;  %s5308_s21 = sadd.s32 4294967294, %s6979_s19  }
   0xd   : > { %9095 = sst [smem:[#allocation14_spill]] %s6979_s19  ;;  %p48_p0 = scmp.ne.s32.totalorder %s6959_s14, %s6955_s13 }
   0xe   : > { %p49_p1 = scmp.eq.s32.totalorder %s6979_s19, 0  ;;  %p54_p2 = scmp.ne.s32.totalorder %s6955_s13, %s6951_s12 }
   0xf   : > { %p7062_p3 = scmp.eq.s32.totalorder %s5307_s20, 0  ;;  %p122_p4 = scmp.eq.s32.totalorder %s5307_s20, 5 }
  0x10   : > { %p7066_p5 = por %p49_p1, %p48_p0  ;;  %p128_p6 = scmp.eq.s32.totalorder %s5308_s21, 5 }
  0x11   : > { %p7072_p7 = por %p7062_p3, %p54_p2  ;;  %p7076_p8 = por %p122_p4, %p48_p0 }
  0x12   : > { %p7080_p9 = por %p128_p6, %p54_p2  ;;  %p5309_p10 = scmp.ge.s32.totalorder %s6979_s19, 1 }
  0x13   : > { %s9098_s25 = scalar_select %p7072_p7, 1, 0 }
  0x14   : > { %s9099_s26 = scalar_select %p7076_p8, 1, 0 }
  0x15   : > { %s9100_s27 = scalar_select %p7080_p9, 1, 0 }
  0x16   : > { %p135_p11 = scmp.lt.s32.totalorder %s6979_s19, 7  ;;  %s6981_s29 = smov [#allocation6]  }
  0x17   : > { %9101 = sst [smem:[#allocation15_spill]] %s9100_s27  ;;  %s147_s30 = sshll.u32 %s6981_s29, 4  ;;  %s148_s30 = int_to_ptr.vmem [resolvable:$true] %s147_s30 }
  0x18   : > { %p7086_p12 = pnand %p5309_p10, %p135_p11  ;;  %p5959_p0 = scmp.lt.s32.totalorder %s6979_s19, 6 }
  0x19   : > { %s6836_s6 = scalar_lea.vmem %s148_s30, 6144  ;;  %p6844_p9 = scmp.lt.s32.totalorder %s148_s30, %s148_s30 }
  0x1a   : > { %s9102_s28 = scalar_select %p7086_p12, 1, 0 }
  0x1b   : > { %p5946_p13 = pneg %p7086_p12  ;;  %p7101_p2 = pnand %p5959_p0, %p7066_p5 }
  0x1c   : > { %p6837_p6 = scmp.ne.s32.totalorder %s148_s30, %s6836_s6  ;;  %p6845_p8 = scmp.lt.s32.totalorder %s6836_s6, %s6836_s6 }
  0x1d   : > { %p7095_p1 = pnand %p5946_p13, %p7062_p3 }
  0x1e   : > { %p6846_p7 = por %p6845_p8, %p6844_p9 }
  0x1f   : > { %p6827_p4 = pneg %p7095_p1 }
  0x21   : > { %p6839_p10 = pnand %p6837_p6, %p6827_p4 }
  0x23   : > { %p6840_p11 = pneg %p6839_p10 }
  0x25   : > { %p6847_p12 = pnand %p6846_p7, %p6840_p11 }
  0x27   : > { %6850 = shalt.err (!%p6847_p12)
}
  0x28   : > { %s8997_s7 = smov 384   ;;  %s8998_s8 = smov 24  }
  0x29   : > { %s9105_s1 = sld [smem:[#allocation45_spill]]  ;;  %s29_s11 = sadd.s32 1, %s6971_s17 }
  0x2a   : > { %p30_p5 = scmp.ge.s32.totalorder %s29_s11, 3  ;;  %s32_s20 = sadd.s32 1, %s6975_s18 }
  0x2b   : > { %s164_s21 = sand.u32 1, %s6959_s14   ;;  %s5934_s24 = smul.u32 3, %s6971_s17 }
  0x2c   : > { %s9294_s11 = smov (%p30_p5, %s29_s11), 0  ;;  %s9296_s20 = smov (!%p30_p5, %s32_s20), %s6975_s18 }
  0x2d   : > { %9106 = sst [smem:[#allocation16_spill]] %s9294_s11  ;;  %s37_s29 = ssub.s32 %s6971_s17, %s9294_s11 }
  0x2e   : > { %p34_p7 = scmp.ge.s32.totalorder %s9296_s20, 2  ;;  %s5933_s4 = smul.u32 192, %s164_s21 }
  0x2f   : > { %5949 = dma.hbm_to_vmem [thread:$0]  (!%p7095_p1), %s9105_s1, 6144, %s148_s30, [#allocation7], %s8997_s7, %s8997_s7, %s8998_s8  }
  0x30   : > { %s5935_s6 = smul.u32 72, %s6975_s18  ;;  %s9298_s20 = smov (%p34_p7, %s9296_s20), 0 }
  0x31   : > { %s36_s9 = ssub.s32 %s6975_s18, %s9298_s20  ;;  %s168_s27 = scalar_lea.vmem [#allocation3], %s5933_s4 }
  0x32   : > { %s175_s30 = sadd.s32 %s5935_s6, %s5934_s24  ;;  %s38_s7 = sor.u32 %s37_s29, %s36_s9 }
  0x33   : > { %s5314_s10 = sshll.u32 %s175_s30, 7  ;;  %p39_p8 = scmp.eq.s32.totalorder %s38_s7, 0 }
  0x34   : > { %s177_s1 = scalar_lea.hbm %s8990_s0, %s5314_s10  ;;  %s178_s12 = sshll.u32 %s168_s27, 4  ;;  %s179_s12 = int_to_ptr.vmem [resolvable:$true] %s178_s12 }
  0x35   : > { %s9107_s11 = sadd.s32 1, %s6959_s14  ;;  %s165_s19 = scalar_lea.sflag [#allocation4], %s164_s21 }
  0x36   : > { %s7135_s17 = scalar_select %p39_p8, %s6959_s14, %s9107_s11  }
  0x37   : > { %p6853_p9 = pneg %p7101_p2  ;;  %s6864_s3 = scalar_lea.vmem %s179_s12, 3072 }
  0x38   : > { %p6865_p12 = scmp.ne.s32.totalorder %s179_s12, %s6864_s3  ;;  %s6984_s24 = smov [#allocation3]  }
  0x39   : > { %s6869_s29 = sshll.u32 %s6984_s24, 4  ;;  %s6870_s29 = int_to_ptr.vmem [resolvable:$false] %s6869_s29 }
  0x3a   : > { %p6867_p13 = pnand %p6865_p12, %p6853_p9  ;;  %s6871_s6 = scalar_lea.vmem %s6870_s29, 6144 }
  0x3b   : > { %p6872_p1 = scmp.lt.s32.totalorder %s179_s12, %s6870_s29  ;;  %p6873_p4 = scmp.lt.s32.totalorder %s6871_s6, %s6864_s3 }
  0x3c   : > { %p6868_p0 = pneg %p6867_p13 }
  0x3d   : > { %p6874_p6 = por %p6873_p4, %p6872_p1 }
  0x3f   : > { %p6875_p10 = pnand %p6874_p6, %p6868_p0 }
  0x41   : > { %6878 = shalt.err (!%p6875_p10)
}
  0x42   : > { %s6985_s22 = smov 1152   ;;  %s9108_s27 = smov 24  }
  0x43   : > { %s9109_s7 = smov 384   ;;  %p9110_p11 = scmp.ne.s32.totalorder %s9102_s28, 0 }
  0x44   : > { %5953 = dma.hbm_to_vmem [thread:$0]  (!%p7101_p2), %s177_s1, 3072, %s179_s12, %s165_s19, %s6985_s22, %s9109_s7, %s9108_s27  }
  0x45   : > { %190 = sbr.rel (%p9110_p11) target bundleno = 2345 (0x929), region = 32 }
  0x4a   : > { %s7146_s8 = sand.u32 1, %s6955_s13   ;;  %p9111_p5 = scmp.ne.s32.totalorder %s9098_s25, 0 }
  0x4b   : > { %s5936_s11 = smul.u32 192, %s7146_s8  ;;  %s193_s3 = scalar_lea.sflag [#allocation4], %s7146_s8 }
  0x4d   : > { %s7150_s21 = scalar_lea.vmem [#allocation3], %s5936_s11 }
  0x4e   : > { %6938 = dma.done.wait (%p9111_p5), %s193_s3, 3072  }
  0x4f   : > { %6940 = vsyncadd (%p9111_p5), %s193_s3, 4294964224 }
  0x50   : > { %6942 = dma.done.wait (%p7062_p3), [#allocation7], 6144  }
  0x51   : > { %6944 = vsyncadd (%p7062_p3), [#allocation7], 4294961152  ;;  %s5317_s1 = sshll.u32 %s7146_s8, 6  ;;  %p5318_p2 = scmp.ne.s32.totalorder %s6963_s15, 0 }
  0x52   : > { %s7161_s12 = scalar_lea.vmem [#allocation8], %s5317_s1 }
  0x53   : > { %228 = sbr.rel (%p5318_p2) target bundleno = 90 (0x5a), region = 44 }
  0x58   : > { %v6986_v0 = vmov 0.0  }
  0x59   : > { %229 = vst [vmem:[#allocation2] sm:$0xff] %v6986_v0 }
  0x5a PF: > { %v7164_v1 = vld [vmem:[#allocation6 + $0x170] sm:$0xff]  ;;  %v7166_v2 = vld [vmem:[#allocation6 + $0x168] sm:$0xff]  ;;  %v7168_v3 = vld [vmem:[#allocation6 + $0x158] sm:$0xff]  ;;  %v9006_v5 = vmov 0.0   ;;  %vm6988_vm0 = vmmov 0   ;;  %v447_v53 = vlaneseq  ;;  %s5937_s10 = smul.u32 24, %s6967_s16 }
  0x5b   : > { %301 = vmatprep.subr.mxu0 %v7164_v1  ;;  %v7171_v4 = vld [vmem:[#allocation6 + $0x150] sm:$0xff]  ;;  %5653 = vmatprep.subr.mxu1 %v9006_v5  ;;  %v7175_v6 = vld [vmem:[#allocation6 + $0x140] sm:$0xff]  ;;  %v7179_v7 = vld [vmem:[#allocation6 + $0x138] sm:$0xff]  ;;  %v6989_v51 = vmov 1966171168   ;;  %s5208_s16 = sshll.u32 %s7161_s12, 4  ;;  %s8923_s16 = int_to_ptr.vmem [resolvable:$true] %s5208_s16 }
  0x5c   : > { %302 = vmatpush1.msra.mxu0 %v7166_v2  ;;  %365 = vmatprep.mubr.f32.mxu0 %v9006_v5  ;;  %v7184_v8 = vld [vmem:[#allocation6 + $0x128] sm:$0xff]  ;;  %v7187_v9 = vld [vmem:[#allocation6 + $0x120] sm:$0xff]  ;;  %v7190_v10 = vld [vmem:[#allocation6 + $0x110] sm:$0xff]  ;;  %v445_v52 = vunpack.c.l.s4 %v6989_v51  ;;  %v448_v55 = vshrl.u32 %v447_v53, 7  ;;  %s5205_s24 = sadd.s32 %s6963_s15, %s5937_s10  ;;  %s9279_s22 = sld [smem:[#allocation46_spill]] }
  0x5d   : > { %303 = vmatprep.subr.mxu0 %v7168_v3  ;;  %5685 = vmatprep.mubr.msk.f32.mxu1 %vm6988_vm0, %v9006_v5  ;;  %v7193_v11 = vld [vmem:[#allocation6 + $0x108] sm:$0xff]  ;;  %v7196_v12 = vld [vmem:[#allocation6 + $0xf8] sm:$0xff]  ;;  %v7199_v13 = vld [vmem:[#allocation6 + $0xf0] sm:$0xff]  ;;  %s5514_s29 = sshll.u32 %s5205_s24, 7  ;;  %s5193_s7 = scalar_lea.sflag [#allocation5], %s7146_s8 }
  0x5e   : > { %304 = vmatpush1.msra.mxu0 %v7171_v4  ;;  %v7202_v14 = vld [vmem:[#allocation6 + $0xe0] sm:$0xff]  ;;  %v7204_v15 = vld [vmem:[#allocation6 + $0x178] sm:$0xff]  ;;  %v7213_v18 = vld [vmem:[#allocation6 + $0xc8] sm:$0xff]  ;;  %v446_v54 = vunpack.c.0.s8 %v445_v52  ;;  %s6879_s11 = scalar_lea.vmem %s8923_s16, 1024  ;;  %p9280_p7 = scmp.ne.s32.totalorder %s9099_s26, 0 }
  0x5f   : > { %305 = vmatprep.subr.mxu0 %v7175_v6  ;;  %v7207_v16 = vld [vmem:[#allocation6 + $0xd8] sm:$0xff]  ;;  %5654 = vmatpush3.msra.mxu1 %v7204_v15  ;;  %v7210_v17 = vld [vmem:[#allocation6 + $0x160] sm:$0xff]  ;;  %9112 = vst [vmem:[#allocation17_spill] sm:$0xff] %v7213_v18  ;;  %v7216_v19 = vld [vmem:[#allocation6 + $0x148] sm:$0xff]  ;;  %p6880_p3 = scmp.ne.s32.totalorder %s8923_s16, %s6879_s11  ;;  %s6990_s3 = smov [#allocation8]  }
  0x60   : > { %306 = vmatpush1.msra.mxu0 %v7179_v7  ;;  %5655 = vmatprep.subr.mxu1 %v9006_v5  ;;  %v7219_v20 = vld [vmem:[#allocation6 + $0xc0] sm:$0xff]  ;;  %v7223_v21 = vld [vmem:[#allocation6 + $0xb0] sm:$0xff]  ;;  %v7227_v22 = vld [vmem:[#allocation6 + $0xa8] sm:$0xff]  ;;  %v7400_v56 = vsub.s32 %v446_v54, %v448_v55 }
  0x61   : > { %307 = vmatprep.subr.mxu0 %v7184_v8  ;;  %9113 = vst [vmem:[#allocation18_spill] sm:$0xff] %v7219_v20  ;;  %5656 = vmatpush3.msra.mxu1 %v7210_v17  ;;  %9114 = vst [vmem:[#allocation19_spill] sm:$0xff] %v7223_v21  ;;  %v7230_v23 = vld [vmem:[#allocation6 + $0x130] sm:$0xff]  ;;  %v7233_v24 = vld [vmem:[#allocation6 + $0x98] sm:$0xff]  ;;  %p6881_p8 = pnand %p6880_p3, %p9280_p7 }
  0x62   : > { %308 = vmatpush1.msra.mxu0 %v7187_v9  ;;  %5657 = vmatprep.subr.mxu1 %v9006_v5  ;;  %9115 = vst [vmem:[#allocation20_spill] sm:$0xff] %v7227_v22  ;;  %9116 = vst [vmem:[#allocation21_spill] sm:$0xff] %v7233_v24  ;;  %v7236_v25 = vld [vmem:[#allocation6 + $0x90] sm:$0xff]  ;;  %v7239_v26 = vld [vmem:[#allocation6 + $0x118] sm:$0xff]  ;;  %s8930_s27 = scalar_lea.hbm %s9279_s22, %s5514_s29 }
  0x63   : > { %309 = vmatprep.subr.mxu0 %v7190_v10  ;;  %5658 = vmatpush3.msra.mxu1 %v7216_v19  ;;  %9117 = vst [vmem:[#allocation22_spill] sm:$0xff] %v7236_v25  ;;  %v7242_v27 = vld [vmem:[#allocation6 + $0x80] sm:$0xff]  ;;  %v7246_v28 = vld [vmem:[#allocation6 + $0x78] sm:$0xff]  ;;  %v7252_v30 = vld [vmem:[#allocation6 + $0x68] sm:$0xff]  ;;  %p6882_p9 = pneg %p6881_p8 }
  0x64   : > { %310 = vmatpush1.msra.mxu0 %v7193_v11  ;;  %5659 = vmatprep.subr.mxu1 %v9006_v5  ;;  %9118 = vst [vmem:[#allocation23_spill] sm:$0xff] %v7242_v27  ;;  %9119 = vst [vmem:[#allocation24_spill] sm:$0xff] %v7246_v28  ;;  %v7249_v29 = vld [vmem:[#allocation6 + $0x100] sm:$0xff]  ;;  %v7259_v32 = vld [vmem:[#allocation6 + $0xe8] sm:$0xff] }
  0x65   : > { %311 = vmatprep.subr.mxu0 %v7196_v12  ;;  %5660 = vmatpush3.msra.mxu1 %v7230_v23  ;;  %9120 = vst [vmem:[#allocation25_spill] sm:$0xff] %v7252_v30  ;;  %v7256_v31 = vld [vmem:[#allocation6 + $0x60] sm:$0xff]  ;;  %v7262_v33 = vld [vmem:[#allocation6 + $0x50] sm:$0xff]  ;;  %v7266_v34 = vld [vmem:[#allocation6 + $0x48] sm:$0xff] }
  0x66   : > { %312 = vmatpush1.msra.mxu0 %v7199_v13  ;;  %5661 = vmatprep.subr.mxu1 %v9006_v5  ;;  %9121 = vst [vmem:[#allocation26_spill] sm:$0xff] %v7256_v31  ;;  %9122 = vst [vmem:[#allocation27_spill] sm:$0xff] %v7262_v33  ;;  %v7269_v35 = vld [vmem:[#allocation6 + $0xd0] sm:$0xff]  ;;  %v7272_v36 = vld [vmem:[#allocation6 + $0x38] sm:$0xff] }
  0x67   : > { %313 = vmatprep.subr.mxu0 %v7202_v14  ;;  %5662 = vmatpush3.msra.mxu1 %v7239_v26  ;;  %9123 = vst [vmem:[#allocation28_spill] sm:$0xff] %v7266_v34  ;;  %9124 = vst [vmem:[#allocation29_spill] sm:$0xff] %v7269_v35  ;;  %v7276_v37 = vld [vmem:[#allocation6 + $0x30] sm:$0xff]  ;;  %v7279_v38 = vld [vmem:[#allocation6 + $0xb8] sm:$0xff] }
  0x68   : > { %314 = vmatpush1.msra.mxu0 %v7207_v16  ;;  %5663 = vmatprep.subr.mxu1 %v9006_v5  ;;  %9125 = vst [vmem:[#allocation30_spill] sm:$0xff] %v7272_v36  ;;  %9126 = vst [vmem:[#allocation31_spill] sm:$0xff] %v7276_v37  ;;  %v7282_v39 = vld [vmem:[#allocation6 + $0x20] sm:$0xff]  ;;  %v7286_v40 = vld [vmem:[#allocation6 + $0x18] sm:$0xff] }
  0x69   : > { %315 = vmatprep.subr.mxu0 %v7213_v18  ;;  %5664 = vmatpush3.msra.mxu1 %v7249_v29  ;;  %9127 = vst [vmem:[#allocation32_spill] sm:$0xff] %v7279_v38  ;;  %9128 = vst [vmem:[#allocation33_spill] sm:$0xff] %v7282_v39  ;;  %v7289_v41 = vld [vmem:[#allocation6 + $0xa0] sm:$0xff]  ;;  %v7292_v42 = vld [vmem:[#allocation6 + $0x8] sm:$0xff] }
  0x6a   : > { %316 = vmatpush1.msra.mxu0 %v7219_v20  ;;  %5665 = vmatprep.subr.mxu1 %v9006_v5  ;;  %9129 = vst [vmem:[#allocation34_spill] sm:$0xff] %v7286_v40  ;;  %9130 = vst [vmem:[#allocation35_spill] sm:$0xff] %v7289_v41  ;;  %v7296_v43 = vld [vmem:[#allocation6] sm:$0xff]  ;;  %v7299_v44 = vld [vmem:[#allocation6 + $0x88] sm:$0xff] }
  0x6b   : > { %317 = vmatprep.subr.mxu0 %v7223_v21  ;;  %5666 = vmatpush3.msra.mxu1 %v7259_v32  ;;  %9131 = vst [vmem:[#allocation36_spill] sm:$0xff] %v7292_v42  ;;  %9132 = vst [vmem:[#allocation37_spill] sm:$0xff] %v7296_v43  ;;  %v7302_v45 = vld [vmem:[#allocation2] sm:$0xff]  ;;  %v7307_v46 = vld [vmem:[#allocation6 + $0x70] sm:$0xff] }
  0x6c   : > { %318 = vmatpush1.msra.mxu0 %v7227_v22  ;;  %5667 = vmatprep.subr.mxu1 %v9006_v5  ;;  %9133 = vst [vmem:[#allocation38_spill] sm:$0xff] %v7299_v44  ;;  %9134 = vst [vmem:[#allocation39_spill] sm:$0xff] %v7307_v46  ;;  %v7313_v47 = vld [vmem:[#allocation6 + $0x58] sm:$0xff]  ;;  %v7318_v48 = vld [vmem:[#allocation6 + $0x40] sm:$0xff] }
  0x6d   : > { %319 = vmatprep.subr.mxu0 %v7233_v24  ;;  %5668 = vmatpush3.msra.mxu1 %v7269_v35  ;;  %9135 = vst [vmem:[#allocation40_spill] sm:$0xff] %v7313_v47  ;;  %9136 = vst [vmem:[#allocation41_spill] sm:$0xff] %v7318_v48  ;;  %v7324_v49 = vld [vmem:[#allocation6 + $0x28] sm:$0xff]  ;;  %v7330_v50 = vld [vmem:[#allocation6 + $0x10] sm:$0xff] }
  0x6e   : > { %320 = vmatpush1.msra.mxu0 %v7236_v25  ;;  %5669 = vmatprep.subr.mxu1 %v9006_v5  ;;  %9137 = vst [vmem:[#allocation42_spill] sm:$0xff] %v7324_v49  ;;  %9138 = vst [vmem:[#allocation43_spill] sm:$0xff] %v7330_v50  ;;  %v7403_v57 = vld [vmem:[%s7150_s21] ss:$8 sm:$0x7] }
  0x6f   : > { %321 = vmatprep.subr.mxu0 %v7242_v27  ;;  %5670 = vmatpush3.msra.mxu1 %v7279_v38  ;;  %v7406_v58 = vld [vmem:[%s7150_s21 + $0x18] ss:$8 sm:$0x7]  ;;  %v564_v53 = vrot.slane %v7403_v57, 1 }
  0x70   : > { %322 = vmatpush1.msra.mxu0 %v7246_v28  ;;  %5671 = vmatprep.subr.mxu1 %v9006_v5  ;;  %v7409_v59 = vld [vmem:[%s7150_s21 + $0x30] ss:$8 sm:$0x7]  ;;  %v565_v55 = vrot.slane %v7406_v58, 1 }
  0x71   : > { %323 = vmatprep.subr.mxu0 %v7252_v30  ;;  %5672 = vmatpush3.msra.mxu1 %v7289_v41  ;;  %v7412_v60 = vld [vmem:[%s7150_s21 + $0x48] ss:$8 sm:$0x7] }
  0x72   : > { %324 = vmatpush1.msra.mxu0 %v7256_v31  ;;  %5673 = vmatprep.subr.mxu1 %v9006_v5  ;;  %v7415_v61 = vld [vmem:[%s7150_s21 + $0x60] ss:$8 sm:$0x7] }
  0x73   : > { %325 = vmatprep.subr.mxu0 %v7262_v33  ;;  %5674 = vmatpush3.msra.mxu1 %v7299_v44  ;;  %v7418_v62 = vld [vmem:[%s7150_s21 + $0x78] ss:$8 sm:$0x7] }
  0x74   : > { %326 = vmatpush1.msra.mxu0 %v7266_v34  ;;  %5675 = vmatprep.subr.mxu1 %v9006_v5  ;;  %v7421_v63 = vld [vmem:[%s7150_s21 + $0x90] ss:$8 sm:$0x7] }
  0x75   : > { %327 = vmatprep.subr.mxu0 %v7272_v36  ;;  %5676 = vmatpush3.msra.mxu1 %v7307_v46 }
  0x76   : > { %328 = vmatpush1.msra.mxu0 %v7276_v37  ;;  %5677 = vmatprep.subr.mxu1 %v9006_v5 }
  0x77   : > { %329 = vmatprep.subr.mxu0 %v7282_v39  ;;  %5678 = vmatpush3.msra.mxu1 %v7313_v47 }
  0x78   : > { %330 = vmatpush1.msra.mxu0 %v7286_v40  ;;  %5679 = vmatprep.subr.mxu1 %v9006_v5 }
  0x79   : > { %331 = vmatprep.subr.mxu0 %v7292_v42  ;;  %5680 = vmatpush3.msra.mxu1 %v7318_v48 }
  0x7a   : > { %332 = vmatpush1.msra.mxu0 %v7296_v43  ;;  %5681 = vmatprep.subr.mxu1 %v9006_v5 }
  0x7b   : > { %366 = vmatmul.mubr.f32.vlgmr.msra.gmra.mxu0 %v7302_v45  ;;  %965 = vmatprep.subr.mxu0 %v7164_v1 }
  0x7c   : > { %966 = vmatpush1.msra.mxu0 %v7166_v2  ;;  %5682 = vmatpush3.msra.mxu1 %v7324_v49 }
  0x7d   : > { %967 = vmatprep.subr.mxu0 %v7168_v3  ;;  %5683 = vmatprep.subr.mxu1 %v9006_v5 }
  0x7e   : > { %968 = vmatpush1.msra.mxu0 %v7171_v4  ;;  %5684 = vmatpush3.msra.mxu1 %v7330_v50 }
  0x7f   : > { %969 = vmatprep.subr.mxu0 %v7175_v6  ;;  %5686 = vmatmul.mubr.f32.vlgmr.msra.gmra.mxu1 %v7302_v45 }
  0x80   : > { %970 = vmatpush1.msra.mxu0 %v7179_v7  ;;  %5688 = vmatprep.subr.mxu1 %v9006_v5 }
  0x81   : > { %971 = vmatprep.subr.mxu0 %v7184_v8  ;;  %5689 = vmatpush3.msra.mxu1 %v7204_v15 }
  0x82   : > { %972 = vmatpush1.msra.mxu0 %v7187_v9  ;;  %5690 = vmatprep.subr.mxu1 %v9006_v5 }
  0x83   : > { %973 = vmatprep.subr.mxu0 %v7190_v10  ;;  %5691 = vmatpush3.msra.mxu1 %v7210_v17 }
  0x84   : > { %974 = vmatpush1.msra.mxu0 %v7193_v11  ;;  %5692 = vmatprep.subr.mxu1 %v9006_v5 }
  0x85   : > { %975 = vmatprep.subr.mxu0 %v7196_v12  ;;  %5693 = vmatpush3.msra.mxu1 %v7216_v19 }
  0x86   : > { %976 = vmatpush1.msra.mxu0 %v7199_v13  ;;  %5694 = vmatprep.subr.mxu1 %v9006_v5 }
  0x87   : > { %977 = vmatprep.subr.mxu0 %v7202_v14  ;;  %5695 = vmatpush3.msra.mxu1 %v7230_v23 }
  0x88   : > { %978 = vmatpush1.msra.mxu0 %v7207_v16  ;;  %5696 = vmatprep.subr.mxu1 %v9006_v5 }
  0x89   : > { %979 = vmatprep.subr.mxu0 %v7213_v18  ;;  %5697 = vmatpush3.msra.mxu1 %v7239_v26 }
  0x8a   : > { %980 = vmatpush1.msra.mxu0 %v7219_v20  ;;  %5698 = vmatprep.subr.mxu1 %v9006_v5 }
  0x8b   : > { %981 = vmatprep.subr.mxu0 %v7223_v21  ;;  %5699 = vmatpush3.msra.mxu1 %v7249_v29 }
  0x8c   : > { %982 = vmatpush1.msra.mxu0 %v7227_v22  ;;  %5700 = vmatprep.subr.mxu1 %v9006_v5 }
  0x8d   : > { %983 = vmatprep.subr.mxu0 %v7233_v24  ;;  %5701 = vmatpush3.msra.mxu1 %v7259_v32 }
  0x8e   : > { %984 = vmatpush1.msra.mxu0 %v7236_v25  ;;  %5702 = vmatprep.subr.mxu1 %v9006_v5 }
  0x8f   : > { %985 = vmatprep.subr.mxu0 %v7242_v27  ;;  %5703 = vmatpush3.msra.mxu1 %v7269_v35 }
  0x90   : > { %986 = vmatpush1.msra.mxu0 %v7246_v28  ;;  %5704 = vmatprep.subr.mxu1 %v9006_v5 }
  0x91   : > { %987 = vmatprep.subr.mxu0 %v7252_v30  ;;  %5705 = vmatpush3.msra.mxu1 %v7279_v38 }
  0x92   : > { %988 = vmatpush1.msra.mxu0 %v7256_v31  ;;  %5706 = vmatprep.subr.mxu1 %v9006_v5 }
  0x93   : > { %989 = vmatprep.subr.mxu0 %v7262_v33  ;;  %5707 = vmatpush3.msra.mxu1 %v7289_v41 }
  0x94   : > { %990 = vmatpush1.msra.mxu0 %v7266_v34  ;;  %5708 = vmatprep.subr.mxu1 %v9006_v5 }
  0x95   : > { %991 = vmatprep.subr.mxu0 %v7272_v36  ;;  %5709 = vmatpush3.msra.mxu1 %v7299_v44 }
  0x96   : > { %992 = vmatpush1.msra.mxu0 %v7276_v37  ;;  %5710 = vmatprep.subr.mxu1 %v9006_v5 }
  0x97   : > { %993 = vmatprep.subr.mxu0 %v7282_v39  ;;  %5711 = vmatpush3.msra.mxu1 %v7307_v46 }
  0x98   : > { %994 = vmatpush1.msra.mxu0 %v7286_v40  ;;  %5712 = vmatprep.subr.mxu1 %v9006_v5 }
  0x99   : > { %995 = vmatprep.subr.mxu0 %v7292_v42  ;;  %1029 = vmatprep.mubr.f32.mxu0 %v9006_v5 }
  0x9a   : > { %996 = vmatpush1.msra.mxu0 %v7296_v43  ;;  %5713 = vmatpush3.msra.mxu1 %v7313_v47  ;;  %v568_v43 = vrot.slane %v7415_v61, 1 }
  0x9b   : > { %5720 = vmatprep.mubr.msk.f32.mxu1 %vm6988_vm0, %v9006_v5  ;;  %5714 = vmatprep.subr.mxu1 %v9006_v5 }
  0x9c   : > { %1571 = vmatprep.subr.mxu0 %v7164_v1  ;;  %5715 = vmatpush3.msra.mxu1 %v7318_v48  ;;  %v7424_v1 = vld [vmem:[%s7150_s21 + $0xa8] ss:$8 sm:$0x7]  ;;  %v569_v48 = vrot.slane %v7418_v62, 1 }
  0x9d   : > { %5716 = vmatprep.subr.mxu1 %v9006_v5  ;;  %v571_v37 = vrot.slane %v7424_v1, 1 }
  0x9e   : > { %5717 = vmatpush3.msra.mxu1 %v7324_v49 }
  0x9f   : > { %5718 = vmatprep.subr.mxu1 %v9006_v5 }
  0xa0   : > { %5719 = vmatpush3.msra.mxu1 %v7330_v50  ;;  %v567_v50 = vrot.slane %v7412_v60, 1 }
  0xa1   : > { %5723 = vmatprep.subr.mxu1 %v9006_v5  ;;  %v566_v5 = vrot.slane %v7409_v59, 1 }
 0x13b   : > { %v367_v0 = vpop.f32.mrf.mxu0 }
 0x13c   : > { %v443_v51 = vcombine.high %v367_v0, %v367_v0  ;;  %v450_v52 = vrot.slane %v367_v0, %v7400_v56  ;;  %v570_v0 = vrot.slane %v7421_v63, 1 }
 0x13d   : > { %v369_v54 = vpop.f32.mrf.mxu0 }
 0x13e   : > { %v457_v42 = vrot.slane %v443_v51, %v7400_v56  ;;  %v458_v49 = vcombine.high %v450_v52, %v450_v52  ;;  %v466_v40 = vrot.slane %v450_v52, %v7400_v56  ;;  %v581_v39 = vcombine.high %v369_v54, %v369_v54 }
 0x13f   : > { %v588_v36 = vrot.slane %v369_v54, %v7400_v56  ;;  %v438_v21 = vpop.f32.mrf.mxu1 }
 0x140   : > { %v459_v47 = vcombine.high %v457_v42, %v457_v42  ;;  %v473_v34 = vrot.slane %v457_v42, %v7400_v56  ;;  %v480_v33 = vrot.slane %v458_v49, %v7400_v56  ;;  %v488_v46 = vcombine.high %v466_v40, %v466_v40 }
 0x141   : > { %v500_v51 = vadd.f32 %v466_v40, %v7403_v57  ;;  %v595_v31 = vrot.slane %v581_v39, %v7400_v56  ;;  %v596_v52 = vcombine.high %v588_v36, %v588_v36  ;;  %v604_v30 = vrot.slane %v588_v36, %v7400_v56 }
 0x142   : > { %v487_v44 = vrot.slane %v459_v47, %v7400_v56  ;;  %v489_v28 = vcombine.high %v473_v34, %v473_v34  ;;  %v490_v27 = vcombine.high %v480_v33, %v480_v33  ;;  %v501_v41 = vadd.f32 %v7406_v58, %v480_v33 }
 0x143   : > { %v502_v54 = vadd.f32 %v7409_v59, %v488_v46  ;;  %v504_v42 = vadd.f32 %v7415_v61, %v473_v34  ;;  %v5327_v25 = vmul.f32 -1.442695, %v500_v51  ;;  %v597_v49 = vcombine.high %v595_v31, %v595_v31 }
 0x144   : > { %v491_v24 = vcombine.high %v487_v44, %v487_v44  ;;  %v503_v40 = vadd.f32 %v7412_v60, %v490_v27  ;;  %v505_v39 = vadd.f32 %v7418_v62, %v487_v44  ;;  %v506_v38 = vadd.f32 %v7421_v63, %v489_v28  ;;  %v5687_v44 = vpop.f32.mrf.mxu1 }
 0x145   : > { %6038 = vpow2.f32 %v5327_v25  ;;  %v5328_v36 = vmul.f32 -1.442695, %v501_v41  ;;  %v5329_v47 = vmul.f32 -1.442695, %v502_v54  ;;  %v5331_v22 = vmul.f32 -1.442695, %v504_v42 }
 0x146   : > { %v507_v33 = vadd.f32 %v7424_v1, %v491_v24  ;;  %v5330_v35 = vmul.f32 -1.442695, %v503_v40  ;;  %v5332_v46 = vmul.f32 -1.442695, %v505_v39  ;;  %v5333_v20 = vmul.f32 -1.442695, %v506_v38 }
 0x147   : > { %6040 = vpow2.f32 %v5328_v36  ;;  %v611_v34 = vrot.slane %v595_v31, %v7400_v56  ;;  %v618_v51 = vrot.slane %v596_v52, %v7400_v56  ;;  %v625_v27 = vrot.slane %v597_v49, %v7400_v56 }
 0x148   : > { %6042 = vpow2.f32 %v5329_v47  ;;  %v5334_v28 = vmul.f32 -1.442695, %v507_v33  ;;  %v626_v25 = vcombine.high %v604_v30, %v604_v30  ;;  %v638_v41 = vadd.f32 %v604_v30, %v564_v53 }
 0x149   : > { %6044 = vpow2.f32 %v5330_v35  ;;  %v627_v54 = vcombine.high %v611_v34, %v611_v34  ;;  %v628_v42 = vcombine.high %v618_v51, %v618_v51  ;;  %v629_v18 = vcombine.high %v625_v27, %v625_v27 }
 0x14a   : > { %6046 = vpow2.f32 %v5331_v22  ;;  %v639_v24 = vadd.f32 %v618_v51, %v565_v55  ;;  %v640_v40 = vadd.f32 %v626_v25, %v566_v5  ;;  %v642_v38 = vadd.f32 %v611_v34, %v568_v43  ;;  %v7457_v5 = vld [vmem:[%s8992_s2] ss:$0 sm:$0xff] }
 0x14b   : > { %6048 = vpow2.f32 %v5332_v46  ;;  %v641_v39 = vadd.f32 %v628_v42, %v567_v50  ;;  %v643_v31 = vadd.f32 %v625_v27, %v569_v48  ;;  %v644_v52 = vadd.f32 %v627_v54, %v570_v0 }
 0x14c   : > { %6050 = vpow2.f32 %v5333_v20  ;;  %v5335_v36 = vmul.f32 -1.442695, %v638_v41  ;;  %v5336_v49 = vmul.f32 -1.442695, %v639_v24  ;;  %v5337_v47 = vmul.f32 -1.442695, %v640_v40 }
 0x14d   : > { %6052 = vpow2.f32 %v5334_v28  ;;  %v5338_v33 = vmul.f32 -1.442695, %v641_v39  ;;  %v645_v44 = vadd.f32 %v629_v18, %v571_v37  ;;  %v5339_v30 = vmul.f32 -1.442695, %v642_v38 }
 0x14e   : > { %6054 = vpow2.f32 %v5335_v36  ;;  %v5340_v35 = vmul.f32 -1.442695, %v643_v31  ;;  %v5341_v22 = vmul.f32 -1.442695, %v644_v52  ;;  %v694_v50 = vadd.f32 %v7457_v5, %v438_v21 }
 0x14f   : > { %6056 = vpow2.f32 %v5336_v49  ;;  %v5342_v43 = vmul.f32 -1.442695, %v645_v44 }
 0x150   : > { %6058 = vpow2.f32 %v5337_v47  ;;  %v696_v51 = vcombine.high %v694_v50, %v694_v50  ;;  %v703_v27 = vrot.slane %v694_v50, %v7400_v56  ;;  %v7468_v50 = vrot.slane %v7302_v45, %v7400_v56 }
 0x151   : > { %6060 = vpow2.f32 %v5338_v33 }
 0x152   : > { %v6039_v20 = vpop.eup %6038  ;;  %6062 = vpow2.f32 %v5339_v30  ;;  %v710_v38 = vrot.slane %v696_v51, %v7400_v56  ;;  %v711_v39 = vcombine.high %v703_v27, %v703_v27  ;;  %v719_v44 = vrot.slane %v703_v27, %v7400_v56 }
 0x153   : > { %v532_v48 = vadd.f32 1.0, %v6039_v20  ;;  %6064 = vpow2.f32 %v5340_v35 }
 0x154   : > { %v6041_v18 = vpop.eup %6040  ;;  %6066 = vpow2.f32 %v5341_v22  ;;  %v712_v22 = vcombine.high %v710_v38, %v710_v38  ;;  %v733_v20 = vrot.slane %v711_v39, %v7400_v56  ;;  %v726_v51 = vrot.slane %v710_v38, %v7400_v56 }
 0x155   : > { %v6043_v37 = vpop.eup %6042  ;;  %v533_v53 = vadd.f32 1.0, %v6041_v18  ;;  %6068 = vrcp.f32 %v532_v48  ;;  %v810_v48 = vcombine.high %v7302_v45, %v7302_v45  ;;  %v741_v27 = vcombine.high %v719_v44, %v719_v44 }
 0x156   : > { %v6045_v55 = vpop.eup %6044  ;;  %v534_v0 = vadd.f32 1.0, %v6043_v37  ;;  %6070 = vpow2.f32 %v5342_v43  ;;  %v740_v45 = vrot.slane %v712_v22, %v7400_v56  ;;  %v768_v22 = vrot.slane %v7424_v1, 2 }
 0x157   : > { %v6047_v46 = vpop.eup %6046  ;;  %v535_v34 = vadd.f32 1.0, %v6045_v55  ;;  %6072 = vrcp.f32 %v533_v53  ;;  %v761_v53 = vrot.slane %v7403_v57, 2  ;;  %v762_v55 = vrot.slane %v7406_v58, 2 }
 0x158   : > { %v6049_v28 = vpop.eup %6048  ;;  %v536_v25 = vadd.f32 1.0, %v6047_v46  ;;  %6074 = vrcp.f32 %v534_v0  ;;  %v764_v57 = vrot.slane %v7412_v60, 2 }
 0x159   : > { %v6051_v41 = vpop.eup %6050  ;;  %v537_v54 = vadd.f32 1.0, %v6049_v28  ;;  %6076 = vrcp.f32 %v535_v34 }
 0x15a   : > { %v6053_v21 = vpop.eup %6052  ;;  %v538_v42 = vadd.f32 1.0, %v6051_v41  ;;  %6078 = vrcp.f32 %v536_v25  ;;  %v743_v25 = vcombine.high %v733_v20, %v733_v20 }
 0x15b   : > { %v6055_v24 = vpop.eup %6054  ;;  %v539_v40 = vadd.f32 1.0, %v6053_v21  ;;  %6080 = vrcp.f32 %v537_v54  ;;  %v763_v21 = vrot.slane %v7409_v59, 2 }
 0x15c   : > { %v6057_v31 = vpop.eup %6056  ;;  %6082 = vrcp.f32 %v538_v42  ;;  %v670_v52 = vadd.f32 1.0, %v6055_v24  ;;  %v765_v24 = vrot.slane %v7415_v61, 2 }
 0x15d   : > { %v6059_v36 = vpop.eup %6058  ;;  %6084 = vrcp.f32 %v539_v40  ;;  %v671_v49 = vadd.f32 1.0, %v6057_v31  ;;  %v766_v31 = vrot.slane %v7418_v62, 2 }
 0x15e   : > { %v6061_v47 = vpop.eup %6060  ;;  %v672_v33 = vadd.f32 1.0, %v6059_v36  ;;  %6086 = vrcp.f32 %v670_v52  ;;  %v742_v52 = vcombine.high %v726_v51, %v726_v51 }
 0x15f   : > { %v6063_v30 = vpop.eup %6062  ;;  %v673_v35 = vadd.f32 1.0, %v6061_v47  ;;  %6088 = vrcp.f32 %v671_v49  ;;  %v744_v47 = vcombine.high %v740_v45, %v740_v45 }
 0x160   : > { %v6065_v43 = vpop.eup %6064  ;;  %v674_v18 = vadd.f32 1.0, %v6063_v30  ;;  %6090 = vrcp.f32 %v672_v33 }
 0x161   : > { %v6067_v37 = vpop.eup %6066  ;;  %v675_v0 = vadd.f32 1.0, %v6065_v43  ;;  %6092 = vrcp.f32 %v673_v35 }
 0x162   : > { %v6069_v46 = vpop.eup %6068  ;;  %v676_v34 = vadd.f32 1.0, %v6067_v37  ;;  %6094 = vrcp.f32 %v674_v18 }
 0x163   : > { %v6071_v28 = vpop.eup %6070  ;;  %v753_v41 = vmul.f32 %v6069_v46, %v719_v44  ;;  %6096 = vrcp.f32 %v675_v0  ;;  %v767_v44 = vrot.slane %v7421_v63, 2 }
 0x164   : > { %v6073_v54 = vpop.eup %6072  ;;  %v677_v58 = vadd.f32 1.0, %v6071_v28  ;;  %6098 = vrcp.f32 %v676_v34  ;;  %v825_v34 = vcombine.high %v7468_v50, %v7468_v50 }
 0x165   : > { %v6075_v42 = vpop.eup %6074  ;;  %v754_v40 = vmul.f32 %v6073_v54, %v733_v20  ;;  %v777_v38 = vadd.f32 %v761_v53, %v753_v41 }
 0x166   : > { %v6077_v39 = vpop.eup %6076  ;;  %v755_v36 = vmul.f32 %v6075_v42, %v741_v27 }
 0x167   : > { %v6079_v49 = vpop.eup %6078  ;;  %v756_v33 = vmul.f32 %v6077_v39, %v743_v25  ;;  %v778_v59 = vadd.f32 %v762_v55, %v754_v40  ;;  %6100 = vtanh.f32 %v777_v38  ;;  %v824_v55 = vrot.slane %v810_v48, %v7400_v56 }
 0x168   : > { %v6081_v60 = vpop.eup %6080  ;;  %6102 = vrcp.f32 %v677_v58  ;;  %v757_v30 = vmul.f32 %v6079_v49, %v726_v51  ;;  %v779_v61 = vadd.f32 %v763_v21, %v755_v36  ;;  %v833_v25 = vrot.slane %v7468_v50, %v7400_v56 }
 0x169   : > { %v6083_v35 = vpop.eup %6082  ;;  %v758_v20 = vmul.f32 %v6081_v60, %v740_v45  ;;  %v780_v43 = vadd.f32 %v764_v57, %v756_v33  ;;  %6104 = vtanh.f32 %v778_v59  ;;  %v826_v45 = vcombine.high %v824_v55, %v824_v55 }
 0x16a   : > { %v6085_v62 = vpop.eup %6084  ;;  %v759_v18 = vmul.f32 %v6083_v35, %v742_v52  ;;  %v781_v37 = vadd.f32 %v765_v24, %v757_v30  ;;  %6106 = vtanh.f32 %v779_v61  ;;  %v847_v48 = vrot.slane %v825_v34, %v7400_v56 }
 0x16b   : > { %v760_v53 = vmul.f32 %v6085_v62, %v744_v47  ;;  %v782_v0 = vadd.f32 %v766_v31, %v758_v20  ;;  %6108 = vtanh.f32 %v780_v43  ;;  %v6087_v63 = vpop.eup %6086  ;;  %v840_v21 = vrot.slane %v824_v55, %v7400_v56 }
 0x16c   : > { %v783_v46 = vadd.f32 %v767_v44, %v759_v18  ;;  %6110 = vtanh.f32 %v781_v37  ;;  %v6089_v1 = vpop.eup %6088  ;;  %v793_v58 = vsub.f32 1.0, %v6087_v63  ;;  %v854_v24 = vrot.slane %v826_v45, %v7400_v56 }
 0x16d   : > { %v784_v51 = vadd.f32 %v768_v22, %v760_v53  ;;  %6112 = vtanh.f32 %v782_v0  ;;  %v6091_v27 = vpop.eup %6090  ;;  %v855_v40 = vcombine.high %v833_v25, %v833_v25  ;;  %v857_v39 = vcombine.high %v847_v48, %v847_v48 }
 0x16e   : > { %6114 = vtanh.f32 %v783_v46  ;;  %v6093_v28 = vpop.eup %6092  ;;  %v794_v31 = vsub.f32 1.0, %v6089_v1  ;;  %v867_v36 = vmul.f32 %v6087_v63, %v833_v25  ;;  %v856_v47 = vcombine.high %v840_v21, %v840_v21 }
 0x16f   : > { %6116 = vtanh.f32 %v784_v51  ;;  %v6095_v41 = vpop.eup %6094  ;;  %v795_v50 = vsub.f32 1.0, %v6091_v27  ;;  %v796_v59 = vsub.f32 1.0, %v6093_v28  ;;  %v868_v44 = vmul.f32 %v6089_v1, %v847_v48 }
 0x170   : > { %v6097_v54 = vpop.eup %6096  ;;  %v858_v35 = vcombine.high %v854_v24, %v854_v24  ;;  %v797_v22 = vsub.f32 1.0, %v6095_v41  ;;  %v869_v43 = vmul.f32 %v6091_v27, %v855_v40  ;;  %v870_v53 = vmul.f32 %v6093_v28, %v857_v39 }
 0x171   : > { %v6099_v57 = vpop.eup %6098  ;;  %v798_v18 = vsub.f32 1.0, %v6097_v54  ;;  %v871_v34 = vmul.f32 %v6095_v41, %v840_v21  ;;  %v872_v25 = vmul.f32 %v6097_v54, %v854_v24 }
 0x172   : > { %v799_v46 = vsub.f32 1.0, %v6099_v57 }
 0x174   : > { %v6101_v42 = vpop.eup %6100 }
 0x175   : > { %v6103_v38 = vpop.eup %6102  ;;  %v801_v52 = vmul.f32 %v6101_v42, %v793_v58  ;;  %v873_v42 = vmul.f32 %v6099_v57, %v856_v47 }
 0x176   : > { %v6105_v49 = vpop.eup %6104  ;;  %v800_v45 = vsub.f32 1.0, %v6103_v38  ;;  %v874_v40 = vmul.f32 %v6103_v38, %v858_v35  ;;  %v9139_v35 = vmov 0.0  }
 0x177   : > { %v6107_v33 = vpop.eup %6106  ;;  %v802_v60 = vmul.f32 %v6105_v49, %v794_v31  ;;  %v7488_v30 = vadd.f32 %v867_v36, %v801_v52 }
 0x178   : > { %v6109_v61 = vpop.eup %6108  ;;  %v803_v20 = vmul.f32 %v6107_v33, %v795_v50 }
 0x179   : > { %v6111_v62 = vpop.eup %6110  ;;  %v804_v37 = vmul.f32 %v6109_v61, %v796_v59  ;;  %v7490_v0 = vadd.f32 %v868_v44, %v802_v60  ;;  %883 = vst [vmem:[%s7161_s12] sm:$0x1] %v7488_v30 }
 0x17a   : > { %v6113_v55 = vpop.eup %6112  ;;  %v805_v63 = vmul.f32 %v6111_v62, %v797_v22  ;;  %v7494_v51 = vadd.f32 %v869_v43, %v803_v20  ;;  %v9160_v22 = vld [vmem:[#allocation41_spill] sm:$0xff]  ;;  %v9162_v43 = vld [vmem:[#allocation34_spill] sm:$0xff] }
 0x17b   : > { %v6115_v1 = vpop.eup %6114  ;;  %v806_v27 = vmul.f32 %v6113_v55, %v798_v18  ;;  %v7496_v48 = vadd.f32 %v870_v53, %v804_v37  ;;  %884 = vst [vmem:[%s7161_s12 + $0x8] sm:$0x1] %v7490_v0  ;;  %v915_v54 = vcombine.low %v7488_v30, %v7490_v0  ;;  %v9161_v20 = vld [vmem:[#allocation33_spill] sm:$0xff]  ;;  %v9163_v62 = vld [vmem:[#allocation42_spill] sm:$0xff]  ;;  %v9164_v18 = vld [vmem:[#allocation36_spill] sm:$0xff] }
 0x17c   : > { %v6117_v28 = vpop.eup %6116  ;;  %v807_v58 = vmul.f32 %v6115_v1, %v799_v46  ;;  %v7500_v41 = vadd.f32 %v871_v34, %v805_v63  ;;  %885 = vst [vmem:[%s7161_s12 + $0x10] sm:$0x1] %v7494_v51  ;;  %v9165_v37 = vld [vmem:[#allocation37_spill] sm:$0xff]  ;;  %v9166_v53 = vld [vmem:[#allocation43_spill] sm:$0xff] }
 0x17d   : > { %v808_v21 = vmul.f32 %v6117_v28, %v800_v45  ;;  %v7504_v39 = vadd.f32 %v872_v25, %v806_v27  ;;  %886 = vst [vmem:[%s7161_s12 + $0x18] sm:$0x1] %v7496_v48  ;;  %v916_v24 = vcombine.low %v7494_v51, %v7496_v48  ;;  %v925_v49 = vrot.slane %v915_v54, %v7400_v56  ;;  %v7599_v55 = vld [vmem:[#allocation6 + $0x170] sm:$0xff] }
 0x17e   : > { %v7512_v31 = vadd.f32 %v873_v42, %v807_v58  ;;  %887 = vst [vmem:[%s7161_s12 + $0x20] sm:$0x1] %v7500_v41  ;;  %v7607_v27 = vld [vmem:[%s7150_s21 + $0x1] ss:$8 sm:$0x7] }
 0x17f   : > { %v7516_v57 = vadd.f32 %v874_v40, %v808_v21  ;;  %888 = vst [vmem:[%s7161_s12 + $0x28] sm:$0x1] %v7504_v39  ;;  %v917_v38 = vcombine.low %v7500_v41, %v7504_v39  ;;  %v932_v52 = vrot.slane %v916_v24, %v7400_v56  ;;  %v7612_v42 = vld [vmem:[%s7150_s21 + $0x19] ss:$8 sm:$0x7] }
 0x180   : > { %889 = vst [vmem:[%s7161_s12 + $0x30] sm:$0x1] %v7512_v31  ;;  %v7615_v40 = vld [vmem:[%s7150_s21 + $0x31] ss:$8 sm:$0x7] }
 0x181   : > { %890 = vst [vmem:[%s7161_s12 + $0x38] sm:$0x1] %v7516_v57  ;;  %v918_v36 = vcombine.low %v7512_v31, %v7516_v57  ;;  %v939_v47 = vrot.slane %v917_v38, %v7400_v56  ;;  %v947_v33 = vcombine.low %v925_v49, %v932_v52  ;;  %v7618_v21 = vld [vmem:[%s7150_s21 + $0x49] ss:$8 sm:$0x7] }
 0x182   : > { %v7621_v54 = vld [vmem:[%s7150_s21 + $0x61] ss:$8 sm:$0x7] }
 0x183   : > { %v946_v50 = vrot.slane %v918_v36, %v7400_v56  ;;  %v955_v60 = vrot.slane %v947_v33, %v7400_v56 }
 0x185   : > { %v948_v59 = vcombine.low %v939_v47, %v946_v50  ;;  %v7626_v47 = vld [vmem:[%s7150_s21 + $0x79] ss:$8 sm:$0x7] }
 0x186   : > { %v7629_v50 = vld [vmem:[%s7150_s21 + $0x91] ss:$8 sm:$0x7] }
 0x187   : > { %v962_v44 = vrot.slane %v948_v59, %v7400_v56 }
 0x189   : > { %v963_v61 = vcombine.low %v955_v60, %v962_v44 }
 0x18b   : > { %1030 = vmatmul.mubr.f32.vlgmr.msra.gmra.mxu0 %v963_v61  ;;  %5721 = vmatmul.mubr.f32.vlgmr.msra.gmra.mxu1 %v963_v61 }
 0x18c   : > { %1572 = vmatpush1.msra.mxu0 %v7166_v2  ;;  %5724 = vmatpush3.msra.mxu1 %v7204_v15  ;;  %v9140_v2 = vld [vmem:[#allocation17_spill] sm:$0xff] }
 0x18d   : > { %1573 = vmatprep.subr.mxu0 %v7168_v3  ;;  %5725 = vmatprep.subr.mxu1 %v9139_v35  ;;  %v9141_v3 = vld [vmem:[#allocation18_spill] sm:$0xff]  ;;  %v9152_v15 = vld [vmem:[#allocation25_spill] sm:$0xff] }
 0x18e   : > { %1574 = vmatpush1.msra.mxu0 %v7171_v4  ;;  %5726 = vmatpush3.msra.mxu1 %v7210_v17  ;;  %v9142_v4 = vld [vmem:[#allocation29_spill] sm:$0xff]  ;;  %v9154_v17 = vld [vmem:[#allocation39_spill] sm:$0xff] }
 0x18f   : > { %1575 = vmatprep.subr.mxu0 %v7175_v6  ;;  %5727 = vmatprep.subr.mxu1 %v9139_v35  ;;  %v9143_v6 = vld [vmem:[#allocation19_spill] sm:$0xff] }
 0x190   : > { %1576 = vmatpush1.msra.mxu0 %v7179_v7  ;;  %5728 = vmatpush3.msra.mxu1 %v7216_v19  ;;  %v9144_v7 = vld [vmem:[#allocation20_spill] sm:$0xff]  ;;  %v9155_v19 = vld [vmem:[#allocation27_spill] sm:$0xff] }
 0x191   : > { %1577 = vmatprep.subr.mxu0 %v7184_v8  ;;  %5729 = vmatprep.subr.mxu1 %v9139_v35  ;;  %v9145_v8 = vld [vmem:[#allocation32_spill] sm:$0xff] }
 0x192   : > { %1578 = vmatpush1.msra.mxu0 %v7187_v9  ;;  %5730 = vmatpush3.msra.mxu1 %v7230_v23  ;;  %v9146_v9 = vld [vmem:[#allocation21_spill] sm:$0xff]  ;;  %v9156_v23 = vld [vmem:[#allocation28_spill] sm:$0xff] }
 0x193   : > { %1579 = vmatprep.subr.mxu0 %v7190_v10  ;;  %5731 = vmatprep.subr.mxu1 %v9139_v35  ;;  %v9147_v10 = vld [vmem:[#allocation22_spill] sm:$0xff] }
 0x194   : > { %1580 = vmatpush1.msra.mxu0 %v7193_v11  ;;  %5732 = vmatpush3.msra.mxu1 %v7239_v26  ;;  %v9148_v11 = vld [vmem:[#allocation35_spill] sm:$0xff]  ;;  %v9157_v26 = vld [vmem:[#allocation40_spill] sm:$0xff] }
 0x195   : > { %1581 = vmatprep.subr.mxu0 %v7196_v12  ;;  %5733 = vmatprep.subr.mxu1 %v9139_v35  ;;  %v9149_v12 = vld [vmem:[#allocation23_spill] sm:$0xff] }
 0x196   : > { %1582 = vmatpush1.msra.mxu0 %v7199_v13  ;;  %5734 = vmatpush3.msra.mxu1 %v7249_v29  ;;  %v9150_v13 = vld [vmem:[#allocation24_spill] sm:$0xff]  ;;  %v9158_v29 = vld [vmem:[#allocation30_spill] sm:$0xff] }
 0x197   : > { %1583 = vmatprep.subr.mxu0 %v7202_v14  ;;  %5735 = vmatprep.subr.mxu1 %v9139_v35  ;;  %v9151_v14 = vld [vmem:[#allocation38_spill] sm:$0xff] }
 0x198   : > { %1584 = vmatpush1.msra.mxu0 %v7207_v16  ;;  %5736 = vmatpush3.msra.mxu1 %v7259_v32  ;;  %v9153_v16 = vld [vmem:[#allocation26_spill] sm:$0xff]  ;;  %v9159_v32 = vld [vmem:[#allocation31_spill] sm:$0xff] }
 0x199   : > { %1585 = vmatprep.subr.mxu0 %v9140_v2  ;;  %5737 = vmatprep.subr.mxu1 %v9139_v35  ;;  %v7635_v2 = vld [vmem:[%s7150_s21 + $0xa9] ss:$8 sm:$0x7] }
 0x19a   : > { %1586 = vmatpush1.msra.mxu0 %v9141_v3  ;;  %5738 = vmatpush3.msra.mxu1 %v9142_v4 }
 0x19b   : > { %1587 = vmatprep.subr.mxu0 %v9143_v6  ;;  %5739 = vmatprep.subr.mxu1 %v9139_v35 }
 0x19c   : > { %1588 = vmatpush1.msra.mxu0 %v9144_v7  ;;  %5740 = vmatpush3.msra.mxu1 %v9145_v8 }
 0x19d   : > { %1589 = vmatprep.subr.mxu0 %v9146_v9  ;;  %5741 = vmatprep.subr.mxu1 %v9139_v35 }
 0x19e   : > { %1590 = vmatpush1.msra.mxu0 %v9147_v10  ;;  %5742 = vmatpush3.msra.mxu1 %v9148_v11 }
 0x19f   : > { %1591 = vmatprep.subr.mxu0 %v9149_v12  ;;  %5743 = vmatprep.subr.mxu1 %v9139_v35 }
 0x1a0   : > { %1592 = vmatpush1.msra.mxu0 %v9150_v13  ;;  %5744 = vmatpush3.msra.mxu1 %v9151_v14 }
 0x1a1   : > { %1593 = vmatprep.subr.mxu0 %v9152_v15  ;;  %5745 = vmatprep.subr.mxu1 %v9139_v35 }
 0x1a2   : > { %1594 = vmatpush1.msra.mxu0 %v9153_v16  ;;  %5746 = vmatpush3.msra.mxu1 %v9154_v17 }
 0x1a3   : > { %1595 = vmatprep.subr.mxu0 %v9155_v19  ;;  %5747 = vmatprep.subr.mxu1 %v9139_v35 }
 0x1a4   : > { %1596 = vmatpush1.msra.mxu0 %v9156_v23  ;;  %5748 = vmatpush3.msra.mxu1 %v9157_v26  ;;  %v1228_v26 = vrot.slane %v7607_v27, 1 }
 0x1a5   : > { %1597 = vmatprep.subr.mxu0 %v9158_v29  ;;  %5749 = vmatprep.subr.mxu1 %v9139_v35 }
 0x1a6   : > { %1598 = vmatpush1.msra.mxu0 %v9159_v32  ;;  %5750 = vmatpush3.msra.mxu1 %v9160_v22  ;;  %v1229_v22 = vrot.slane %v7612_v42, 1 }
 0x1a7   : > { %1599 = vmatprep.subr.mxu0 %v9161_v20  ;;  %5751 = vmatprep.subr.mxu1 %v9139_v35  ;;  %v1230_v20 = vrot.slane %v7615_v40, 1 }
 0x1a8   : > { %1600 = vmatpush1.msra.mxu0 %v9162_v43  ;;  %5752 = vmatpush3.msra.mxu1 %v9163_v62  ;;  %v1232_v43 = vrot.slane %v7621_v54, 1 }
 0x1a9   : > { %1601 = vmatprep.subr.mxu0 %v9164_v18  ;;  %5753 = vmatprep.subr.mxu1 %v9139_v35 }
 0x1aa   : > { %1602 = vmatpush1.msra.mxu0 %v9165_v37  ;;  %1635 = vmatprep.mubr.f32.mxu0 %v9139_v35  ;;  %v1231_v37 = vrot.slane %v7618_v21, 1 }
 0x1ab   : > { %5754 = vmatpush3.msra.mxu1 %v9166_v53  ;;  %5755 = vmatprep.mubr.msk.f32.mxu1 %vm6988_vm0, %v9139_v35 }
 0x1ac   : > { %2177 = vmatprep.subr.mxu0 %v7599_v55  ;;  %5758 = vmatprep.subr.mxu1 %v9139_v35 }
 0x24b   : > { %v1031_v46 = vpop.f32.mrf.mxu0  ;;  %v7603_v63 = vpop.f32.mrf.mxu1 }
 0x24c   : > { %v1107_v34 = vcombine.high %v1031_v46, %v1031_v46  ;;  %v1114_v1 = vrot.slane %v1031_v46, %v7400_v56 }
 0x24d   : > { %v5722_v45 = vpop.f32.mrf.mxu1  ;;  %v1033_v49 = vpop.f32.mrf.mxu0 }
 0x24e   : > { %v1121_v25 = vrot.slane %v1107_v34, %v7400_v56  ;;  %v1122_v28 = vcombine.high %v1114_v1, %v1114_v1  ;;  %v1130_v58 = vrot.slane %v1114_v1, %v7400_v56  ;;  %v1245_v7 = vcombine.high %v1033_v49, %v1033_v49 }
 0x24f   : > { %v1252_v17 = vrot.slane %v1033_v49, %v7400_v56 }
 0x250   : > { %v1123_v24 = vcombine.high %v1121_v25, %v1121_v25  ;;  %v1137_v38 = vrot.slane %v1121_v25, %v7400_v56  ;;  %v1144_v52 = vrot.slane %v1122_v28, %v7400_v56  ;;  %v1152_v36 = vcombine.high %v1130_v58, %v1130_v58 }
 0x251   : > { %v1164_v33 = vadd.f32 %v7607_v27, %v1130_v58  ;;  %v1259_v29 = vrot.slane %v1245_v7, %v7400_v56  ;;  %v1260_v62 = vcombine.high %v1252_v17, %v1252_v17  ;;  %v1268_v18 = vrot.slane %v1252_v17, %v7400_v56 }
 0x252   : > { %v1151_v59 = vrot.slane %v1123_v24, %v7400_v56  ;;  %v1153_v60 = vcombine.high %v1137_v38, %v1137_v38  ;;  %v1154_v44 = vcombine.high %v1144_v52, %v1144_v52  ;;  %v1165_v61 = vadd.f32 %v7612_v42, %v1144_v52 }
 0x253   : > { %v1166_v3 = vadd.f32 %v7615_v40, %v1152_v36  ;;  %v1168_v4 = vadd.f32 %v7621_v54, %v1137_v38  ;;  %v5351_v6 = vmul.f32 -1.442695, %v1164_v33  ;;  %v1275_v53 = vrot.slane %v1259_v29, %v7400_v56 }
 0x254   : > { %v1155_v8 = vcombine.high %v1151_v59, %v1151_v59  ;;  %v1167_v9 = vadd.f32 %v7618_v21, %v1154_v44  ;;  %v1169_v10 = vadd.f32 %v7626_v47, %v1151_v59  ;;  %v1170_v11 = vadd.f32 %v7629_v50, %v1153_v60 }
 0x255   : > { %6118 = vpow2.f32 %v5351_v6  ;;  %v5352_v12 = vmul.f32 -1.442695, %v1165_v61  ;;  %v5353_v13 = vmul.f32 -1.442695, %v1166_v3  ;;  %v5355_v16 = vmul.f32 -1.442695, %v1168_v4 }
 0x256   : > { %v1171_v14 = vadd.f32 %v7635_v2, %v1155_v8  ;;  %v5354_v15 = vmul.f32 -1.442695, %v1167_v9  ;;  %v5356_v19 = vmul.f32 -1.442695, %v1169_v10  ;;  %v5357_v23 = vmul.f32 -1.442695, %v1170_v11 }
 0x257   : > { %6120 = vpow2.f32 %v5352_v12  ;;  %v1261_v46 = vcombine.high %v1259_v29, %v1259_v29  ;;  %v1282_v34 = vrot.slane %v1260_v62, %v7400_v56  ;;  %v1290_v1 = vcombine.high %v1268_v18, %v1268_v18 }
 0x258   : > { %6122 = vpow2.f32 %v5353_v13  ;;  %v5358_v32 = vmul.f32 -1.442695, %v1171_v14  ;;  %v1302_v45 = vadd.f32 %v1268_v18, %v1228_v26  ;;  %v1306_v24 = vadd.f32 %v1275_v53, %v1232_v43 }
 0x259   : > { %6124 = vpow2.f32 %v5354_v15  ;;  %v1292_v25 = vcombine.high %v1282_v34, %v1282_v34  ;;  %v1303_v28 = vadd.f32 %v1282_v34, %v1229_v22  ;;  %v1304_v58 = vadd.f32 %v1290_v1, %v1230_v20 }
 0x25a   : > { %6126 = vpow2.f32 %v5355_v16  ;;  %v5359_v38 = vmul.f32 -1.442695, %v1302_v45  ;;  %v1289_v52 = vrot.slane %v1261_v46, %v7400_v56  ;;  %v1233_v60 = vrot.slane %v7626_v47, 1 }
 0x25b   : > { %6128 = vpow2.f32 %v5356_v19  ;;  %v1305_v36 = vadd.f32 %v1292_v25, %v1231_v37  ;;  %v5360_v49 = vmul.f32 -1.442695, %v1303_v28  ;;  %v5361_v33 = vmul.f32 -1.442695, %v1304_v58 }
 0x25c   : > { %6130 = vpow2.f32 %v5357_v23  ;;  %v5363_v61 = vmul.f32 -1.442695, %v1306_v24  ;;  %v1234_v4 = vrot.slane %v7629_v50, 1  ;;  %v1291_v6 = vcombine.high %v1275_v53, %v1275_v53 }
 0x25d   : > { %6132 = vpow2.f32 %v5358_v32  ;;  %v5362_v44 = vmul.f32 -1.442695, %v1305_v36  ;;  %v1358_v8 = vadd.f32 %v7457_v5, %v7603_v63  ;;  %v1235_v9 = vrot.slane %v7635_v2, 1 }
 0x25e   : > { %6134 = vpow2.f32 %v5359_v38  ;;  %v1293_v10 = vcombine.high %v1289_v52, %v1289_v52  ;;  %v1307_v15 = vadd.f32 %v1289_v52, %v1233_v60  ;;  %v1308_v19 = vadd.f32 %v1291_v6, %v1234_v4 }
 0x25f   : > { %6136 = vpow2.f32 %v5360_v49  ;;  %v1360_v29 = vcombine.high %v1358_v8, %v1358_v8  ;;  %v1367_v22 = vrot.slane %v1358_v8, %v7400_v56  ;;  %v1425_v36 = vrot.slane %v7607_v27, 2 }
 0x260   : > { %6138 = vpow2.f32 %v5361_v33  ;;  %v1309_v5 = vadd.f32 %v1293_v10, %v1235_v9  ;;  %v5364_v62 = vmul.f32 -1.442695, %v1307_v15  ;;  %v5365_v37 = vmul.f32 -1.442695, %v1308_v19 }
 0x261   : > { %6140 = vpow2.f32 %v5362_v44  ;;  %v1374_v53 = vrot.slane %v1360_v29, %v7400_v56  ;;  %v1375_v34 = vcombine.high %v1367_v22, %v1367_v22  ;;  %v1383_v24 = vrot.slane %v1367_v22, %v7400_v56 }
 0x262   : > { %v6119_v59 = vpop.eup %6118  ;;  %v5366_v46 = vmul.f32 -1.442695, %v1309_v5  ;;  %v1426_v60 = vrot.slane %v7612_v42, 2  ;;  %v1427_v44 = vrot.slane %v7615_v40, 2  ;;  %v1429_v6 = vrot.slane %v7621_v54, 2 }
 0x263   : > { %v1196_v3 = vadd.f32 1.0, %v6119_v59  ;;  %v1376_v58 = vcombine.high %v1374_v53, %v1374_v53  ;;  %v1397_v49 = vrot.slane %v1375_v34, %v7400_v56  ;;  %v1405_v10 = vcombine.high %v1383_v24, %v1383_v24 }
 0x264   : > { %v6121_v7 = vpop.eup %6120  ;;  %v1431_v54 = vrot.slane %v7629_v50, 2 }
 0x265   : > { %v6123_v11 = vpop.eup %6122  ;;  %v1197_v12 = vadd.f32 1.0, %v6121_v7  ;;  %6142 = vrcp.f32 %v1196_v3  ;;  %v1390_v7 = vrot.slane %v1374_v53, %v7400_v56  ;;  %v1404_v27 = vrot.slane %v1376_v58, %v7400_v56 }
 0x266   : > { %v6125_v13 = vpop.eup %6124  ;;  %v1198_v14 = vadd.f32 1.0, %v6123_v11  ;;  %6144 = vpow2.f32 %v5363_v61  ;;  %v1428_v61 = vrot.slane %v7618_v21, 2  ;;  %v1407_v42 = vcombine.high %v1397_v49, %v1397_v49 }
 0x267   : > { %v6127_v16 = vpop.eup %6126  ;;  %v1199_v17 = vadd.f32 1.0, %v6125_v13  ;;  %6146 = vrcp.f32 %v1197_v12  ;;  %v1406_v29 = vcombine.high %v1390_v7, %v1390_v7  ;;  %v1408_v22 = vcombine.high %v1404_v27, %v1404_v27 }
 0x268   : > { %v6129_v23 = vpop.eup %6128  ;;  %v1200_v26 = vadd.f32 1.0, %v6127_v16  ;;  %6148 = vrcp.f32 %v1198_v14  ;;  %v1430_v14 = vrot.slane %v7626_v47, 2 }
 0x269   : > { %v6131_v63 = vpop.eup %6130  ;;  %v1201_v32 = vadd.f32 1.0, %v6129_v23  ;;  %6150 = vrcp.f32 %v1199_v17  ;;  %v1432_v17 = vrot.slane %v7635_v2, 2 }
 0x26a   : > { %v6133_v20 = vpop.eup %6132  ;;  %v1202_v43 = vadd.f32 1.0, %v6131_v63  ;;  %6152 = vrcp.f32 %v1200_v26 }
 0x26b   : > { %v1203_v18 = vadd.f32 1.0, %v6133_v20  ;;  %6154 = vrcp.f32 %v1201_v32  ;;  %v6135_v1 = vpop.eup %6134 }
 0x26c   : > { %6156 = vrcp.f32 %v1202_v43  ;;  %v6137_v45 = vpop.eup %6136  ;;  %v1334_v25 = vadd.f32 1.0, %v6135_v1 }
 0x26d   : > { %6158 = vrcp.f32 %v1203_v18  ;;  %v6139_v28 = vpop.eup %6138  ;;  %v1335_v38 = vadd.f32 1.0, %v6137_v45 }
 0x26e   : > { %6160 = vpow2.f32 %v5364_v62  ;;  %v6141_v52 = vpop.eup %6140  ;;  %v1336_v33 = vadd.f32 1.0, %v6139_v28 }
 0x26f   : > { %6162 = vpow2.f32 %v5365_v37  ;;  %v1337_v3 = vadd.f32 1.0, %v6141_v52 }
 0x270   : > { %6164 = vpow2.f32 %v5366_v46 }
 0x271   : > { %6166 = vrcp.f32 %v1334_v25 }
 0x272   : > { %v6143_v59 = vpop.eup %6142  ;;  %6168 = vrcp.f32 %v1335_v38 }
 0x273   : > { %v6145_v4 = vpop.eup %6144  ;;  %v1417_v8 = vmul.f32 %v6143_v59, %v1383_v24  ;;  %6170 = vrcp.f32 %v1336_v33 }
 0x274   : > { %v6147_v9 = vpop.eup %6146  ;;  %v1338_v11 = vadd.f32 1.0, %v6145_v4  ;;  %6172 = vrcp.f32 %v1337_v3 }
 0x275   : > { %v6149_v12 = vpop.eup %6148  ;;  %v1418_v13 = vmul.f32 %v6147_v9, %v1397_v49  ;;  %v1441_v40 = vadd.f32 %v1425_v36, %v1417_v8 }
 0x276   : > { %v6151_v21 = vpop.eup %6150  ;;  %v1419_v15 = vmul.f32 %v6149_v12, %v1405_v10 }
 0x277   : > { %v6153_v16 = vpop.eup %6152  ;;  %v1420_v19 = vmul.f32 %v6151_v21, %v1407_v42  ;;  %v1442_v23 = vadd.f32 %v1426_v60, %v1418_v13  ;;  %6174 = vtanh.f32 %v1441_v40 }
 0x278   : > { %v6155_v26 = vpop.eup %6154  ;;  %v1421_v5 = vmul.f32 %v6153_v16, %v1390_v7  ;;  %v1443_v63 = vadd.f32 %v1427_v44, %v1419_v15  ;;  %6176 = vrcp.f32 %v1338_v11 }
 0x279   : > { %v6157_v32 = vpop.eup %6156  ;;  %v1422_v20 = vmul.f32 %v6155_v26, %v1404_v27  ;;  %v1444_v43 = vadd.f32 %v1428_v61, %v1420_v19  ;;  %6178 = vtanh.f32 %v1442_v23 }
 0x27a   : > { %v6159_v47 = vpop.eup %6158  ;;  %v1423_v50 = vmul.f32 %v6157_v32, %v1406_v29  ;;  %v1445_v62 = vadd.f32 %v1429_v6, %v1421_v5  ;;  %6180 = vtanh.f32 %v1443_v63 }
 0x27b   : > { %v6161_v18 = vpop.eup %6160  ;;  %v1424_v37 = vmul.f32 %v6159_v47, %v1408_v22  ;;  %v1446_v2 = vadd.f32 %v1430_v14, %v1422_v20  ;;  %6182 = vtanh.f32 %v1444_v43 }
 0x27c   : > { %v6163_v53 = vpop.eup %6162  ;;  %v1447_v46 = vadd.f32 %v1431_v54, %v1423_v50  ;;  %6184 = vtanh.f32 %v1445_v62  ;;  %v1339_v34 = vadd.f32 1.0, %v6161_v18 }
 0x27d   : > { %v6165_v1 = vpop.eup %6164  ;;  %v1448_v45 = vadd.f32 %v1432_v17, %v1424_v37  ;;  %6186 = vtanh.f32 %v1446_v2  ;;  %v1340_v25 = vadd.f32 1.0, %v6163_v53 }
 0x27e   : > { %6188 = vtanh.f32 %v1447_v46  ;;  %v1341_v28 = vadd.f32 1.0, %v6165_v1  ;;  %v6167_v58 = vpop.eup %6166 }
 0x27f   : > { %6190 = vtanh.f32 %v1448_v45  ;;  %v6169_v24 = vpop.eup %6168  ;;  %v1457_v36 = vsub.f32 1.0, %v6167_v58  ;;  %v1473_v44 = vmul.f32 %v6167_v58, %v7488_v30  ;;  %v7727_v58 = vld [vmem:[#allocation6 + $0x168] sm:$0xff] }
 0x280   : > { %6192 = vrcp.f32 %v1339_v34  ;;  %v6171_v38 = vpop.eup %6170  ;;  %v1458_v59 = vsub.f32 1.0, %v6169_v24  ;;  %v1474_v8 = vmul.f32 %v6169_v24, %v7490_v0  ;;  %v7730_v24 = vld [vmem:[#allocation6 + $0x178] sm:$0xff] }
 0x281   : > { %6194 = vrcp.f32 %v1340_v25  ;;  %v6173_v52 = vpop.eup %6172  ;;  %v1459_v3 = vsub.f32 1.0, %v6171_v38  ;;  %v1475_v12 = vmul.f32 %v6171_v38, %v7494_v51  ;;  %v7733_v38 = vld [vmem:[#allocation6 + $0x158] sm:$0xff] }
 0x282   : > { %6196 = vrcp.f32 %v1341_v28  ;;  %v1460_v6 = vsub.f32 1.0, %v6173_v52  ;;  %v1476_v13 = vmul.f32 %v6173_v52, %v7496_v48  ;;  %v7737_v52 = vld [vmem:[#allocation6 + $0x150] sm:$0xff] }
 0x284   : > { %v6175_v49 = vpop.eup %6174 }
 0x285   : > { %v6177_v33 = vpop.eup %6176  ;;  %v1465_v60 = vmul.f32 %v6175_v49, %v1457_v36  ;;  %v7740_v36 = vld [vmem:[#allocation6 + $0x160] sm:$0xff] }
 0x286   : > { %v6179_v61 = vpop.eup %6178  ;;  %v1461_v10 = vsub.f32 1.0, %v6177_v33  ;;  %v1477_v14 = vmul.f32 %v6177_v33, %v7500_v41  ;;  %v7743_v49 = vld [vmem:[#allocation6 + $0x140] sm:$0xff]  ;;  %v7747_v33 = vld [vmem:[#allocation6 + $0x138] sm:$0xff] }
 0x287   : > { %v6181_v4 = vpop.eup %6180  ;;  %v1466_v7 = vmul.f32 %v6179_v61, %v1458_v59  ;;  %v7675_v9 = vadd.f32 %v1473_v44, %v1465_v60  ;;  %v7750_v59 = vld [vmem:[#allocation6 + $0x148] sm:$0xff]  ;;  %v7757_v44 = vld [vmem:[#allocation6 + $0x120] sm:$0xff]  ;;  %v7760_v61 = vld [vmem:[#allocation6 + $0x130] sm:$0xff] }
 0x288   : > { %v6183_v27 = vpop.eup %6182  ;;  %v1467_v11 = vmul.f32 %v6181_v4, %v1459_v3  ;;  %v7753_v60 = vld [vmem:[#allocation6 + $0x128] sm:$0xff]  ;;  %v7763_v3 = vld [vmem:[#allocation6 + $0x110] sm:$0xff] }
 0x289   : > { %v6185_v42 = vpop.eup %6184  ;;  %v1468_v30 = vmul.f32 %v6183_v27, %v1460_v6  ;;  %v7679_v40 = vadd.f32 %v1474_v8, %v1466_v7  ;;  %1489 = vst [vmem:[%s7161_s12 + $0x1] sm:$0x1] %v7675_v9  ;;  %v7767_v4 = vld [vmem:[#allocation6 + $0x108] sm:$0xff]  ;;  %v7770_v6 = vld [vmem:[#allocation6 + $0x118] sm:$0xff]  ;;  %v7777_v8 = vld [vmem:[#allocation6 + $0xf0] sm:$0xff] }
 0x28a   : > { %v6187_v0 = vpop.eup %6186  ;;  %v1469_v21 = vmul.f32 %v6185_v42, %v1461_v10  ;;  %v7684_v54 = vadd.f32 %v1475_v12, %v1467_v11  ;;  %v7773_v7 = vld [vmem:[#allocation6 + $0xf8] sm:$0xff]  ;;  %v7780_v27 = vld [vmem:[#allocation6 + $0x100] sm:$0xff]  ;;  %v7790_v12 = vld [vmem:[#allocation6 + $0xe8] sm:$0xff] }
 0x28b   : > { %v6189_v15 = vpop.eup %6188  ;;  %v7686_v16 = vadd.f32 %v1476_v13, %v1468_v30  ;;  %1490 = vst [vmem:[%s7161_s12 + $0x9] sm:$0x1] %v7679_v40  ;;  %v1521_v62 = vcombine.low %v7675_v9, %v7679_v40  ;;  %v7783_v10 = vld [vmem:[#allocation6 + $0xe0] sm:$0xff]  ;;  %v7787_v11 = vld [vmem:[#allocation6 + $0xd8] sm:$0xff]  ;;  %9167 = vst [vmem:[#allocation17_spill] sm:$0xff] %v7790_v12 }
 0x28c   : > { %v6191_v51 = vpop.eup %6190  ;;  %v7690_v17 = vadd.f32 %v1477_v14, %v1469_v21  ;;  %1491 = vst [vmem:[%s7161_s12 + $0x11] sm:$0x1] %v7684_v54  ;;  %v7793_v42 = vld [vmem:[#allocation6 + $0xc8] sm:$0xff]  ;;  %v7797_v30 = vld [vmem:[#allocation6 + $0xc0] sm:$0xff]  ;;  %v7800_v13 = vld [vmem:[#allocation6 + $0xd0] sm:$0xff] }
 0x28d   : > { %v6193_v48 = vpop.eup %6192  ;;  %1492 = vst [vmem:[%s7161_s12 + $0x19] sm:$0x1] %v7686_v16  ;;  %v1522_v32 = vcombine.low %v7684_v54, %v7686_v16  ;;  %9168 = vst [vmem:[#allocation18_spill] sm:$0xff] %v7793_v42  ;;  %v7807_v21 = vld [vmem:[#allocation6 + $0xa8] sm:$0xff]  ;;  %v7810_v14 = vld [vmem:[#allocation6 + $0xb8] sm:$0xff] }
 0x28e   : > { %v6195_v19 = vpop.eup %6194  ;;  %v1462_v23 = vsub.f32 1.0, %v6193_v48  ;;  %1493 = vst [vmem:[%s7161_s12 + $0x21] sm:$0x1] %v7690_v17  ;;  %v1478_v63 = vmul.f32 %v6193_v48, %v7504_v39  ;;  %9169 = vst [vmem:[#allocation29_spill] sm:$0xff] %v7797_v30  ;;  %v7820_v48 = vld [vmem:[#allocation6 + $0xa0] sm:$0xff] }
 0x28f   : > { %v6197_v41 = vpop.eup %6196  ;;  %v1463_v26 = vsub.f32 1.0, %v6195_v19  ;;  %v1479_v20 = vmul.f32 %v6195_v19, %v7512_v31  ;;  %v1538_v2 = vrot.slane %v1522_v32, %v7400_v56  ;;  %9170 = vst [vmem:[#allocation19_spill] sm:$0xff] %v7800_v13  ;;  %9172 = vst [vmem:[#allocation32_spill] sm:$0xff] %v7807_v21  ;;  %v7823_v19 = vld [vmem:[#allocation6 + $0x80] sm:$0xff]  ;;  %v7847_v32 = vld [vmem:[#allocation6 + $0x48] sm:$0xff] }
 0x290   : > { %v1464_v29 = vsub.f32 1.0, %v6197_v41  ;;  %v1470_v5 = vmul.f32 %v6187_v0, %v1462_v23  ;;  %v1480_v47 = vmul.f32 %v6197_v41, %v7516_v57  ;;  %v1531_v57 = vrot.slane %v1521_v62, %v7400_v56  ;;  %v7803_v0 = vld [vmem:[#allocation6 + $0xb0] sm:$0xff]  ;;  %9173 = vst [vmem:[#allocation21_spill] sm:$0xff] %v7810_v14  ;;  %9176 = vst [vmem:[#allocation23_spill] sm:$0xff] %v7820_v48  ;;  %v7827_v23 = vld [vmem:[#allocation6 + $0x78] sm:$0xff] }
 0x291   : > { %v1471_v22 = vmul.f32 %v6189_v15, %v1463_v26  ;;  %9171 = vst [vmem:[#allocation20_spill] sm:$0xff] %v7803_v0  ;;  %v7813_v15 = vld [vmem:[#allocation6 + $0x98] sm:$0xff]  ;;  %9177 = vst [vmem:[#allocation24_spill] sm:$0xff] %v7823_v19  ;;  %v7830_v41 = vld [vmem:[#allocation6 + $0x88] sm:$0xff] }
 0x292   : > { %v1472_v43 = vmul.f32 %v6191_v51, %v1464_v29  ;;  %v7703_v50 = vadd.f32 %v1478_v63, %v1470_v5  ;;  %v1553_v34 = vcombine.low %v1531_v57, %v1538_v2  ;;  %9174 = vst [vmem:[#allocation22_spill] sm:$0xff] %v7813_v15  ;;  %v7817_v51 = vld [vmem:[#allocation6 + $0x90] sm:$0xff]  ;;  %9178 = vst [vmem:[#allocation38_spill] sm:$0xff] %v7827_v23  ;;  %v7833_v26 = vld [vmem:[#allocation6 + $0x68] sm:$0xff] }
 0x293   : > { %v7707_v18 = vadd.f32 %v1479_v20, %v1471_v22  ;;  %9175 = vst [vmem:[#allocation35_spill] sm:$0xff] %v7817_v51  ;;  %9179 = vst [vmem:[#allocation25_spill] sm:$0xff] %v7830_v41  ;;  %v7837_v29 = vld [vmem:[#allocation6 + $0x60] sm:$0xff]  ;;  %v7840_v5 = vld [vmem:[#allocation6 + $0x70] sm:$0xff] }
 0x294   : > { %v7709_v37 = vadd.f32 %v1480_v47, %v1472_v43  ;;  %1494 = vst [vmem:[%s7161_s12 + $0x29] sm:$0x1] %v7703_v50  ;;  %v1523_v39 = vcombine.low %v7690_v17, %v7703_v50  ;;  %v1561_v45 = vrot.slane %v1553_v34, %v7400_v56  ;;  %9180 = vst [vmem:[#allocation26_spill] sm:$0xff] %v7833_v26  ;;  %v7843_v63 = vld [vmem:[#allocation6 + $0x50] sm:$0xff]  ;;  %v7850_v22 = vld [vmem:[#allocation6 + $0x58] sm:$0xff] }
 0x295   : > { %1495 = vst [vmem:[%s7161_s12 + $0x31] sm:$0x1] %v7707_v18  ;;  %9181 = vst [vmem:[#allocation39_spill] sm:$0xff] %v7837_v29  ;;  %v7853_v20 = vld [vmem:[#allocation6 + $0x38] sm:$0xff]  ;;  %v7857_v43 = vld [vmem:[#allocation6 + $0x30] sm:$0xff] }
 0x296   : > { %1496 = vst [vmem:[%s7161_s12 + $0x39] sm:$0x1] %v7709_v37  ;;  %v1524_v31 = vcombine.low %v7707_v18, %v7709_v37  ;;  %v1545_v53 = vrot.slane %v1523_v39, %v7400_v56  ;;  %9182 = vst [vmem:[#allocation27_spill] sm:$0xff] %v7840_v5  ;;  %v7860_v47 = vld [vmem:[#allocation6 + $0x40] sm:$0xff]  ;;  %v7867_v39 = vld [vmem:[#allocation6 + $0x18] sm:$0xff] }
 0x297   : > { %9183 = vst [vmem:[#allocation28_spill] sm:$0xff] %v7843_v63  ;;  %9184 = vst [vmem:[#allocation40_spill] sm:$0xff] %v7847_v32  ;;  %v7863_v62 = vld [vmem:[#allocation6 + $0x20] sm:$0xff]  ;;  %v7870_v2 = vld [vmem:[#allocation6 + $0x28] sm:$0xff] }
 0x298   : > { %v1552_v46 = vrot.slane %v1524_v31, %v7400_v56  ;;  %9185 = vst [vmem:[#allocation30_spill] sm:$0xff] %v7850_v22  ;;  %9186 = vst [vmem:[#allocation31_spill] sm:$0xff] %v7853_v20  ;;  %v7873_v31 = vld [vmem:[#allocation6 + $0x8] sm:$0xff]  ;;  %v7877_v57 = vld [vmem:[#allocation6] sm:$0xff] }
 0x299   : > { %9187 = vst [vmem:[#allocation41_spill] sm:$0xff] %v7857_v43  ;;  %9188 = vst [vmem:[#allocation33_spill] sm:$0xff] %v7860_v47 }
 0x29a   : > { %v1554_v1 = vcombine.low %v1545_v53, %v1552_v46  ;;  %9189 = vst [vmem:[#allocation34_spill] sm:$0xff] %v7863_v62  ;;  %9190 = vst [vmem:[#allocation42_spill] sm:$0xff] %v7867_v39  ;;  %v7881_v53 = vld [vmem:[#allocation6 + $0x10] sm:$0xff] }
 0x29b   : > { %9191 = vst [vmem:[#allocation36_spill] sm:$0xff] %v7870_v2  ;;  %9192 = vst [vmem:[#allocation37_spill] sm:$0xff] %v7873_v31 }
 0x29c   : > { %v1568_v25 = vrot.slane %v1554_v1, %v7400_v56  ;;  %9193 = vst [vmem:[#allocation43_spill] sm:$0xff] %v7877_v57  ;;  %9194 = vst [vmem:[#allocation44_spill] sm:$0xff] %v7881_v53 }
 0x29e   : > { %v1569_v28 = vcombine.low %v1561_v45, %v1568_v25 }
 0x2a0   : > { %1636 = vmatmul.mubr.f32.vlgmr.msra.gmra.mxu0 %v1569_v28  ;;  %5756 = vmatmul.mubr.f32.vlgmr.msra.gmra.mxu1 %v1569_v28  ;;  %v7892_v28 = vld [vmem:[%s7150_s21 + $0x2] ss:$8 sm:$0x7] }
 0x2a1   : > { %2178 = vmatpush1.msra.mxu0 %v7727_v58  ;;  %5759 = vmatpush3.msra.mxu1 %v7730_v24 }
 0x2a2   : > { %2179 = vmatprep.subr.mxu0 %v7733_v38  ;;  %5760 = vmatprep.subr.mxu1 %v9139_v35 }
 0x2a3   : > { %2180 = vmatpush1.msra.mxu0 %v7737_v52  ;;  %5761 = vmatpush3.msra.mxu1 %v7740_v36 }
 0x2a4   : > { %2181 = vmatprep.subr.mxu0 %v7743_v49  ;;  %5762 = vmatprep.subr.mxu1 %v9139_v35 }
 0x2a5   : > { %2182 = vmatpush1.msra.mxu0 %v7747_v33  ;;  %5763 = vmatpush3.msra.mxu1 %v7750_v59 }
 0x2a6   : > { %2183 = vmatprep.subr.mxu0 %v7753_v60  ;;  %5764 = vmatprep.subr.mxu1 %v9139_v35 }
 0x2a7   : > { %2184 = vmatpush1.msra.mxu0 %v7757_v44  ;;  %5765 = vmatpush3.msra.mxu1 %v7760_v61 }
 0x2a8   : > { %2185 = vmatprep.subr.mxu0 %v7763_v3  ;;  %5766 = vmatprep.subr.mxu1 %v9139_v35 }
 0x2a9   : > { %2186 = vmatpush1.msra.mxu0 %v7767_v4  ;;  %5767 = vmatpush3.msra.mxu1 %v7770_v6 }
 0x2aa   : > { %2187 = vmatprep.subr.mxu0 %v7773_v7  ;;  %5768 = vmatprep.subr.mxu1 %v9139_v35 }
 0x2ab   : > { %2188 = vmatpush1.msra.mxu0 %v7777_v8  ;;  %5769 = vmatpush3.msra.mxu1 %v7780_v27 }
 0x2ac   : > { %2189 = vmatprep.subr.mxu0 %v7783_v10  ;;  %5770 = vmatprep.subr.mxu1 %v9139_v35 }
 0x2ad   : > { %2190 = vmatpush1.msra.mxu0 %v7787_v11  ;;  %5771 = vmatpush3.msra.mxu1 %v7790_v12 }
 0x2ae   : > { %2191 = vmatprep.subr.mxu0 %v7793_v42  ;;  %5772 = vmatprep.subr.mxu1 %v9139_v35 }
 0x2af   : > { %2192 = vmatpush1.msra.mxu0 %v7797_v30  ;;  %5773 = vmatpush3.msra.mxu1 %v7800_v13 }
 0x2b0   : > { %2193 = vmatprep.subr.mxu0 %v7803_v0  ;;  %5774 = vmatprep.subr.mxu1 %v9139_v35  ;;  %v1834_v0 = vrot.slane %v7892_v28, 1 }
 0x2b1   : > { %2194 = vmatpush1.msra.mxu0 %v7807_v21  ;;  %5775 = vmatpush3.msra.mxu1 %v7810_v14 }
 0x2b2   : > { %2195 = vmatprep.subr.mxu0 %v7813_v15  ;;  %5776 = vmatprep.subr.mxu1 %v9139_v35 }
 0x2b3   : > { %2196 = vmatpush1.msra.mxu0 %v7817_v51  ;;  %5777 = vmatpush3.msra.mxu1 %v7820_v48 }
 0x2b4   : > { %2197 = vmatprep.subr.mxu0 %v7823_v19  ;;  %5778 = vmatprep.subr.mxu1 %v9139_v35 }
 0x2b5   : > { %2198 = vmatpush1.msra.mxu0 %v7827_v23  ;;  %5779 = vmatpush3.msra.mxu1 %v7830_v41 }
 0x2b6   : > { %2199 = vmatprep.subr.mxu0 %v7833_v26  ;;  %5780 = vmatprep.subr.mxu1 %v9139_v35  ;;  %v7920_v26 = vld [vmem:[%s7150_s21 + $0xaa] ss:$8 sm:$0x7] }
 0x2b7   : > { %2200 = vmatpush1.msra.mxu0 %v7837_v29  ;;  %5781 = vmatpush3.msra.mxu1 %v7840_v5 }
 0x2b8   : > { %2201 = vmatprep.subr.mxu0 %v7843_v63  ;;  %5782 = vmatprep.subr.mxu1 %v9139_v35 }
 0x2b9   : > { %2202 = vmatpush1.msra.mxu0 %v7847_v32  ;;  %5783 = vmatpush3.msra.mxu1 %v7850_v22  ;;  %v7914_v22 = vld [vmem:[%s7150_s21 + $0x92] ss:$8 sm:$0x7] }
 0x2ba   : > { %2203 = vmatprep.subr.mxu0 %v7853_v20  ;;  %5784 = vmatprep.subr.mxu1 %v9139_v35 }
 0x2bb   : > { %2204 = vmatpush1.msra.mxu0 %v7857_v43  ;;  %5785 = vmatpush3.msra.mxu1 %v7860_v47 }
 0x2bc   : > { %2205 = vmatprep.subr.mxu0 %v7863_v62  ;;  %5786 = vmatprep.subr.mxu1 %v9139_v35  ;;  %v7906_v62 = vld [vmem:[%s7150_s21 + $0x62] ss:$8 sm:$0x7] }
 0x2bd   : > { %2206 = vmatpush1.msra.mxu0 %v7867_v39  ;;  %5787 = vmatpush3.msra.mxu1 %v7870_v2  ;;  %v7897_v2 = vld [vmem:[%s7150_s21 + $0x1a] ss:$8 sm:$0x7] }
 0x2be   : > { %2207 = vmatprep.subr.mxu0 %v7873_v31  ;;  %5788 = vmatprep.subr.mxu1 %v9139_v35  ;;  %v7903_v39 = vld [vmem:[%s7150_s21 + $0x4a] ss:$8 sm:$0x7] }
 0x2bf   : > { %2208 = vmatpush1.msra.mxu0 %v7877_v57  ;;  %2241 = vmatprep.mubr.f32.mxu0 %v9139_v35 }
 0x2c0   : > { %5789 = vmatpush3.msra.mxu1 %v7881_v53  ;;  %5790 = vmatprep.mubr.msk.f32.mxu1 %vm6988_vm0, %v9139_v35 }
 0x2c1   : > { %2783 = vmatprep.subr.mxu0 %v7599_v55  ;;  %5793 = vmatprep.subr.mxu1 %v9139_v35  ;;  %v7900_v55 = vld [vmem:[%s7150_s21 + $0x32] ss:$8 sm:$0x7] }
 0x360   : > { %v1637_v46 = vpop.f32.mrf.mxu0  ;;  %v7888_v34 = vpop.f32.mrf.mxu1 }
 0x361   : > { %v1713_v1 = vcombine.high %v1637_v46, %v1637_v46  ;;  %v1720_v45 = vrot.slane %v1637_v46, %v7400_v56 }
 0x362   : > { %v5757_v25 = vpop.f32.mrf.mxu1  ;;  %v1639_v20 = vpop.f32.mrf.mxu0 }
 0x363   : > { %v1727_v53 = vrot.slane %v1713_v1, %v7400_v56  ;;  %v1728_v57 = vcombine.high %v1720_v45, %v1720_v45  ;;  %v1736_v31 = vrot.slane %v1720_v45, %v7400_v56  ;;  %v7911_v1 = vld [vmem:[%s7150_s21 + $0x7a] ss:$8 sm:$0x7]  ;;  %v1851_v23 = vcombine.high %v1639_v20, %v1639_v20 }
 0x365   : > { %v1729_v47 = vcombine.high %v1727_v53, %v1727_v53  ;;  %v1743_v46 = vrot.slane %v1727_v53, %v7400_v56  ;;  %v1750_v25 = vrot.slane %v1728_v57, %v7400_v56  ;;  %v1758_v43 = vcombine.high %v1736_v31, %v1736_v31 }
 0x366   : > { %v1770_v45 = vadd.f32 %v7892_v28, %v1736_v31 }
 0x367   : > { %v1757_v32 = vrot.slane %v1729_v47, %v7400_v56  ;;  %v1759_v63 = vcombine.high %v1743_v46, %v1743_v46  ;;  %v1760_v5 = vcombine.high %v1750_v25, %v1750_v25  ;;  %v1771_v29 = vadd.f32 %v7897_v2, %v1750_v25 }
 0x368   : > { %v1772_v53 = vadd.f32 %v7900_v55, %v1758_v43  ;;  %v1774_v57 = vadd.f32 %v7906_v62, %v1743_v46  ;;  %v5375_v41 = vmul.f32 -1.442695, %v1770_v45  ;;  %v1858_v43 = vrot.slane %v1639_v20, %v7400_v56 }
 0x369   : > { %v1761_v19 = vcombine.high %v1757_v32, %v1757_v32  ;;  %v1773_v48 = vadd.f32 %v7903_v39, %v1760_v5  ;;  %v1775_v51 = vadd.f32 %v7911_v1, %v1757_v32  ;;  %v1776_v31 = vadd.f32 %v7914_v22, %v1759_v63 }
 0x36a   : > { %6198 = vpow2.f32 %v5375_v41  ;;  %v5376_v47 = vmul.f32 -1.442695, %v1771_v29  ;;  %v5377_v15 = vmul.f32 -1.442695, %v1772_v53  ;;  %v5379_v21 = vmul.f32 -1.442695, %v1774_v57 }
 0x36b   : > { %v1777_v25 = vadd.f32 %v7920_v26, %v1761_v19  ;;  %v5378_v14 = vmul.f32 -1.442695, %v1773_v48  ;;  %v5380_v46 = vmul.f32 -1.442695, %v1775_v51  ;;  %v5381_v45 = vmul.f32 -1.442695, %v1776_v31 }
 0x36c   : > { %6200 = vpow2.f32 %v5376_v47  ;;  %v1865_v5 = vrot.slane %v1851_v23, %v7400_v56  ;;  %v1835_v41 = vrot.slane %v7897_v2, 1  ;;  %v1836_v29 = vrot.slane %v7900_v55, 1 }
 0x36d   : > { %6202 = vpow2.f32 %v5377_v15  ;;  %v5382_v32 = vmul.f32 -1.442695, %v1777_v25  ;;  %v1838_v48 = vrot.slane %v7906_v62, 1  ;;  %v1866_v19 = vcombine.high %v1858_v43, %v1858_v43 }
 0x36e   : > { %6204 = vpow2.f32 %v5378_v14  ;;  %v1874_v63 = vrot.slane %v1858_v43, %v7400_v56  ;;  %v1837_v15 = vrot.slane %v7903_v39, 1  ;;  %v1881_v51 = vrot.slane %v1865_v5, %v7400_v56 }
 0x36f   : > { %6206 = vpow2.f32 %v5379_v21  ;;  %v1867_v20 = vcombine.high %v1865_v5, %v1865_v5  ;;  %v1888_v14 = vrot.slane %v1866_v19, %v7400_v56 }
 0x370   : > { %6208 = vpow2.f32 %v5380_v46  ;;  %v1896_v23 = vcombine.high %v1874_v63, %v1874_v63  ;;  %v1908_v53 = vadd.f32 %v1874_v63, %v1834_v0  ;;  %v1912_v47 = vadd.f32 %v1881_v51, %v1838_v48 }
 0x371   : > { %6210 = vpow2.f32 %v5381_v45  ;;  %v1898_v57 = vcombine.high %v1888_v14, %v1888_v14  ;;  %v1909_v31 = vadd.f32 %v1888_v14, %v1835_v41  ;;  %v1895_v13 = vrot.slane %v1867_v20, %v7400_v56 }
 0x372   : > { %6212 = vpow2.f32 %v5382_v32  ;;  %v1910_v21 = vadd.f32 %v1896_v23, %v1836_v29  ;;  %v5383_v25 = vmul.f32 -1.442695, %v1908_v53  ;;  %v1839_v45 = vrot.slane %v7911_v1, 1  ;;  %v7944_v29 = vld [vmem:[%s8992_s2] ss:$0 sm:$0xff] }
 0x373   : > { %v1911_v43 = vadd.f32 %v1898_v57, %v1837_v15  ;;  %v5384_v46 = vmul.f32 -1.442695, %v1909_v31  ;;  %v5387_v19 = vmul.f32 -1.442695, %v1912_v47  ;;  %v1840_v0 = vrot.slane %v7914_v22, 1 }
 0x374   : > { %v5385_v30 = vmul.f32 -1.442695, %v1910_v21  ;;  %6214 = vpow2.f32 %v5383_v25  ;;  %v1897_v32 = vcombine.high %v1881_v51, %v1881_v51  ;;  %v1964_v48 = vadd.f32 %v7944_v29, %v7888_v34 }
 0x375   : > { %6216 = vpow2.f32 %v5384_v46  ;;  %v5386_v5 = vmul.f32 -1.442695, %v1911_v43  ;;  %v1841_v63 = vrot.slane %v7920_v26, 1  ;;  %v1899_v15 = vcombine.high %v1895_v13, %v1895_v13 }
 0x376   : > { %6218 = vpow2.f32 %v5385_v30  ;;  %v1913_v51 = vadd.f32 %v1895_v13, %v1839_v45  ;;  %v1914_v57 = vadd.f32 %v1897_v32, %v1840_v0  ;;  %v1966_v47 = vcombine.high %v1964_v48, %v1964_v48 }
 0x377   : > { %v6199_v42 = vpop.eup %6198  ;;  %6220 = vpow2.f32 %v5386_v5  ;;  %v1915_v34 = vadd.f32 %v1899_v15, %v1841_v63  ;;  %v1973_v46 = vrot.slane %v1964_v48, %v7400_v56 }
 0x378   : > { %v1802_v12 = vadd.f32 1.0, %v6199_v42  ;;  %v5389_v45 = vmul.f32 -1.442695, %v1914_v57 }
 0x379   : > { %v6201_v41 = vpop.eup %6200  ;;  %v5390_v0 = vmul.f32 -1.442695, %v1915_v34  ;;  %v1981_v32 = vcombine.high %v1973_v46, %v1973_v46  ;;  %v2034_v34 = vrot.slane %v7903_v39, 2 }
 0x37a   : > { %v6203_v20 = vpop.eup %6202  ;;  %v1803_v14 = vadd.f32 1.0, %v6201_v41  ;;  %6222 = vrcp.f32 %v1802_v12  ;;  %v5388_v41 = vmul.f32 -1.442695, %v1913_v51 }
 0x37b   : > { %v6205_v42 = vpop.eup %6204  ;;  %v1804_v23 = vadd.f32 1.0, %v6203_v20  ;;  %6224 = vpow2.f32 %v5387_v19  ;;  %v1980_v19 = vrot.slane %v1966_v47, %v7400_v56  ;;  %v2033_v47 = vrot.slane %v7900_v55, 2 }
 0x37c   : > { %v6207_v30 = vpop.eup %6206  ;;  %v1805_v53 = vadd.f32 1.0, %v6205_v42  ;;  %6226 = vrcp.f32 %v1803_v14  ;;  %v1989_v42 = vrot.slane %v1973_v46, %v7400_v56 }
 0x37d   : > { %v6209_v31 = vpop.eup %6208  ;;  %v1806_v21 = vadd.f32 1.0, %v6207_v30  ;;  %6228 = vrcp.f32 %v1804_v23  ;;  %v1982_v48 = vcombine.high %v1980_v19, %v1980_v19  ;;  %v2031_v30 = vrot.slane %v7892_v28, 2 }
 0x37e   : > { %v6211_v25 = vpop.eup %6210  ;;  %v1807_v43 = vadd.f32 1.0, %v6209_v31  ;;  %6230 = vrcp.f32 %v1805_v53  ;;  %v2003_v53 = vrot.slane %v1981_v32, %v7400_v56  ;;  %v1996_v46 = vrot.slane %v1980_v19, %v7400_v56 }
 0x37f   : > { %v6213_v5 = vpop.eup %6212  ;;  %v1808_v12 = vadd.f32 1.0, %v6211_v25  ;;  %6232 = vrcp.f32 %v1806_v21  ;;  %v2032_v21 = vrot.slane %v7897_v2, 2  ;;  %v2010_v28 = vrot.slane %v1982_v48, %v7400_v56 }
 0x380   : > { %v1809_v13 = vadd.f32 1.0, %v6213_v5  ;;  %6234 = vrcp.f32 %v1807_v43  ;;  %v2035_v5 = vrot.slane %v7906_v62, 2  ;;  %v2013_v2 = vcombine.high %v2003_v53, %v2003_v53 }
 0x381   : > { %6236 = vrcp.f32 %v1808_v12  ;;  %v6215_v20 = vpop.eup %6214  ;;  %v2037_v62 = vrot.slane %v7914_v22, 2 }
 0x382   : > { %6238 = vrcp.f32 %v1809_v13  ;;  %v6217_v63 = vpop.eup %6216  ;;  %v1940_v15 = vadd.f32 1.0, %v6215_v20  ;;  %v2011_v13 = vcombine.high %v1989_v42, %v1989_v42  ;;  %v2036_v20 = vrot.slane %v7911_v1, 2 }
 0x383   : > { %6240 = vpow2.f32 %v5388_v41  ;;  %v6219_v14 = vpop.eup %6218  ;;  %v1941_v23 = vadd.f32 1.0, %v6217_v63 }
 0x384   : > { %6242 = vpow2.f32 %v5389_v45  ;;  %v6221_v51 = vpop.eup %6220  ;;  %v1942_v57 = vadd.f32 1.0, %v6219_v14 }
 0x385   : > { %6244 = vpow2.f32 %v5390_v0  ;;  %v1943_v25 = vadd.f32 1.0, %v6221_v51 }
 0x386   : > { %6246 = vrcp.f32 %v1940_v15  ;;  %v2038_v15 = vrot.slane %v7920_v26, 2 }
 0x387   : > { %v6223_v31 = vpop.eup %6222  ;;  %6248 = vrcp.f32 %v1941_v23  ;;  %v2012_v23 = vcombine.high %v1996_v46, %v1996_v46 }
 0x388   : > { %v6225_v43 = vpop.eup %6224  ;;  %v2023_v12 = vmul.f32 %v6223_v31, %v1989_v42  ;;  %6250 = vrcp.f32 %v1942_v57 }
 0x389   : > { %v6227_v41 = vpop.eup %6226  ;;  %v1944_v45 = vadd.f32 1.0, %v6225_v43  ;;  %6252 = vrcp.f32 %v1943_v25 }
 0x38a   : > { %v6229_v0 = vpop.eup %6228  ;;  %v2024_v32 = vmul.f32 %v6227_v41, %v2003_v53  ;;  %v2047_v55 = vadd.f32 %v2031_v30, %v2023_v12  ;;  %v2014_v53 = vcombine.high %v2010_v28, %v2010_v28 }
 0x38b   : > { %v6231_v39 = vpop.eup %6230  ;;  %v2025_v63 = vmul.f32 %v6229_v0, %v2011_v13 }
 0x38c   : > { %v6233_v19 = vpop.eup %6232  ;;  %v2026_v14 = vmul.f32 %v6231_v39, %v2013_v2  ;;  %v2048_v48 = vadd.f32 %v2032_v21, %v2024_v32  ;;  %6254 = vtanh.f32 %v2047_v55 }
 0x38d   : > { %v6235_v42 = vpop.eup %6234  ;;  %v2027_v51 = vmul.f32 %v6233_v19, %v1996_v46  ;;  %v2049_v31 = vadd.f32 %v2033_v47, %v2025_v63  ;;  %6256 = vrcp.f32 %v1944_v45 }
 0x38e   : > { %v6237_v30 = vpop.eup %6236  ;;  %v2028_v57 = vmul.f32 %v6235_v42, %v2010_v28  ;;  %v2050_v43 = vadd.f32 %v2034_v34, %v2026_v14  ;;  %6258 = vtanh.f32 %v2048_v48 }
 0x38f   : > { %v6239_v1 = vpop.eup %6238  ;;  %v2029_v22 = vmul.f32 %v6237_v30, %v2012_v23  ;;  %v2051_v12 = vadd.f32 %v2035_v5, %v2027_v51  ;;  %6260 = vtanh.f32 %v2049_v31 }
 0x390   : > { %v6241_v25 = vpop.eup %6240  ;;  %v2030_v41 = vmul.f32 %v6239_v1, %v2014_v53  ;;  %v2052_v26 = vadd.f32 %v2036_v20, %v2028_v57  ;;  %6262 = vtanh.f32 %v2050_v43 }
 0x391   : > { %v6243_v21 = vpop.eup %6242  ;;  %v2053_v13 = vadd.f32 %v2037_v62, %v2029_v22  ;;  %6264 = vtanh.f32 %v2051_v12  ;;  %v1945_v0 = vadd.f32 1.0, %v6241_v25 }
 0x392   : > { %v6245_v46 = vpop.eup %6244  ;;  %v2054_v47 = vadd.f32 %v2038_v15, %v2030_v41  ;;  %6266 = vtanh.f32 %v2052_v26  ;;  %v1946_v45 = vadd.f32 1.0, %v6243_v21 }
 0x393   : > { %6268 = vtanh.f32 %v2053_v13  ;;  %v1947_v28 = vadd.f32 1.0, %v6245_v46  ;;  %v6247_v34 = vpop.eup %6246 }
 0x394   : > { %6270 = vtanh.f32 %v2054_v47  ;;  %v6249_v2 = vpop.eup %6248  ;;  %v2063_v55 = vsub.f32 1.0, %v6247_v34  ;;  %v2079_v19 = vmul.f32 %v6247_v34, %v7675_v9 }
 0x395   : > { %6272 = vrcp.f32 %v1945_v0  ;;  %v6251_v5 = vpop.eup %6250  ;;  %v2064_v62 = vsub.f32 1.0, %v6249_v2  ;;  %v2080_v51 = vmul.f32 %v6249_v2, %v7679_v40 }
 0x396   : > { %6274 = vrcp.f32 %v1946_v45  ;;  %v6253_v32 = vpop.eup %6252  ;;  %v2065_v14 = vsub.f32 1.0, %v6251_v5  ;;  %v2081_v43 = vmul.f32 %v6251_v5, %v7684_v54 }
 0x397   : > { %6276 = vrcp.f32 %v1947_v28  ;;  %v2066_v42 = vsub.f32 1.0, %v6253_v32  ;;  %v2082_v22 = vmul.f32 %v6253_v32, %v7686_v16 }
 0x399   : > { %v6255_v39 = vpop.eup %6254 }
 0x39a   : > { %v6257_v20 = vpop.eup %6256  ;;  %v2071_v63 = vmul.f32 %v6255_v39, %v2063_v55 }
 0x39b   : > { %v6259_v15 = vpop.eup %6258  ;;  %v2067_v53 = vsub.f32 1.0, %v6257_v20  ;;  %v2083_v41 = vmul.f32 %v6257_v20, %v7690_v17 }
 0x39c   : > { %v6261_v48 = vpop.eup %6260  ;;  %v2072_v23 = vmul.f32 %v6259_v15, %v2064_v62  ;;  %v7965_v31 = vadd.f32 %v2079_v19, %v2071_v63 }
 0x39d   : > { %v6263_v30 = vpop.eup %6262  ;;  %v2073_v57 = vmul.f32 %v6261_v48, %v2065_v14 }
 0x39e   : > { %v6265_v1 = vpop.eup %6264  ;;  %v2074_v9 = vmul.f32 %v6263_v30, %v2066_v42  ;;  %v7969_v12 = vadd.f32 %v2080_v51, %v2072_v23  ;;  %2095 = vst [vmem:[%s7161_s12 + $0x2] sm:$0x1] %v7965_v31 }
 0x39f   : > { %v6267_v40 = vpop.eup %6266  ;;  %v2075_v25 = vmul.f32 %v6265_v1, %v2067_v53  ;;  %v7974_v26 = vadd.f32 %v2081_v43, %v2073_v57  ;;  %v9214_v43 = vld [vmem:[#allocation31_spill] sm:$0xff]  ;;  %v9215_v1 = vld [vmem:[#allocation41_spill] sm:$0xff] }
 0x3a0   : > { %v6269_v21 = vpop.eup %6268  ;;  %v7976_v13 = vadd.f32 %v2082_v22, %v2074_v9  ;;  %2096 = vst [vmem:[%s7161_s12 + $0xa] sm:$0x1] %v7969_v12  ;;  %v2127_v63 = vcombine.low %v7965_v31, %v7969_v12  ;;  %v9216_v9 = vld [vmem:[#allocation33_spill] sm:$0xff]  ;;  %v9217_v22 = vld [vmem:[#allocation34_spill] sm:$0xff] }
 0x3a1   : > { %v6271_v54 = vpop.eup %6270  ;;  %v7980_v0 = vadd.f32 %v2083_v41, %v2075_v25  ;;  %2097 = vst [vmem:[%s7161_s12 + $0x12] sm:$0x1] %v7974_v26  ;;  %v9219_v25 = vld [vmem:[#allocation36_spill] sm:$0xff]  ;;  %v9220_v41 = vld [vmem:[#allocation37_spill] sm:$0xff] }
 0x3a2   : > { %v6273_v16 = vpop.eup %6272  ;;  %2098 = vst [vmem:[%s7161_s12 + $0x1a] sm:$0x1] %v7976_v13  ;;  %v2128_v5 = vcombine.low %v7974_v26, %v7976_v13 }
 0x3a3   : > { %v6275_v46 = vpop.eup %6274  ;;  %v2068_v47 = vsub.f32 1.0, %v6273_v16  ;;  %2099 = vst [vmem:[%s7161_s12 + $0x22] sm:$0x1] %v7980_v0  ;;  %v2084_v2 = vmul.f32 %v6273_v16, %v7703_v50  ;;  %v8082_v16 = vld [vmem:[#allocation6 + $0x170] sm:$0xff] }
 0x3a4   : > { %v6277_v17 = vpop.eup %6276  ;;  %v2069_v45 = vsub.f32 1.0, %v6275_v46  ;;  %v2085_v55 = vmul.f32 %v6275_v46, %v7707_v18  ;;  %v2144_v14 = vrot.slane %v2128_v5, %v7400_v56 }
 0x3a5   : > { %v2070_v28 = vsub.f32 1.0, %v6277_v17  ;;  %v2076_v34 = vmul.f32 %v6267_v40, %v2068_v47  ;;  %v2086_v20 = vmul.f32 %v6277_v17, %v7709_v37  ;;  %v2137_v37 = vrot.slane %v2127_v63, %v7400_v56  ;;  %v9218_v40 = vld [vmem:[#allocation42_spill] sm:$0xff] }
 0x3a6   : > { %v2077_v32 = vmul.f32 %v6269_v21, %v2069_v45  ;;  %v9221_v21 = vld [vmem:[#allocation43_spill] sm:$0xff] }
 0x3a7   : > { %v2078_v39 = vmul.f32 %v6271_v54, %v2070_v28  ;;  %v7993_v62 = vadd.f32 %v2084_v2, %v2076_v34  ;;  %v2159_v23 = vcombine.low %v2137_v37, %v2144_v14  ;;  %v9222_v54 = vld [vmem:[#allocation44_spill] sm:$0xff]  ;;  %v8090_v34 = vld [vmem:[%s7150_s21 + $0x3] ss:$8 sm:$0x7] }
 0x3a8   : > { %v7997_v19 = vadd.f32 %v2085_v55, %v2077_v32  ;;  %v8095_v55 = vld [vmem:[%s7150_s21 + $0x1b] ss:$8 sm:$0x7] }
 0x3a9   : > { %v7999_v15 = vadd.f32 %v2086_v20, %v2078_v39  ;;  %2100 = vst [vmem:[%s7161_s12 + $0x2a] sm:$0x1] %v7993_v62  ;;  %v2129_v50 = vcombine.low %v7980_v0, %v7993_v62  ;;  %v2167_v30 = vrot.slane %v2159_v23, %v7400_v56  ;;  %v8098_v39 = vld [vmem:[%s7150_s21 + $0x33] ss:$8 sm:$0x7] }
 0x3aa   : > { %2101 = vst [vmem:[%s7161_s12 + $0x32] sm:$0x1] %v7997_v19  ;;  %v8101_v20 = vld [vmem:[%s7150_s21 + $0x4b] ss:$8 sm:$0x7] }
 0x3ab   : > { %2102 = vst [vmem:[%s7161_s12 + $0x3a] sm:$0x1] %v7999_v15  ;;  %v2130_v18 = vcombine.low %v7997_v19, %v7999_v15  ;;  %v2151_v48 = vrot.slane %v2129_v50, %v7400_v56  ;;  %v8104_v63 = vld [vmem:[%s7150_s21 + $0x63] ss:$8 sm:$0x7] }
 0x3ac   : > { %v8112_v23 = vld [vmem:[%s7150_s21 + $0x93] ss:$8 sm:$0x7] }
 0x3ad   : > { %v2158_v42 = vrot.slane %v2130_v18, %v7400_v56 }
 0x3af   : > { %v2160_v51 = vcombine.low %v2151_v48, %v2158_v42  ;;  %v8109_v42 = vld [vmem:[%s7150_s21 + $0x7b] ss:$8 sm:$0x7] }
 0x3b1   : > { %v2174_v53 = vrot.slane %v2160_v51, %v7400_v56 }
 0x3b3   : > { %v2175_v57 = vcombine.low %v2167_v30, %v2174_v53 }
 0x3b5   : > { %2242 = vmatmul.mubr.f32.vlgmr.msra.gmra.mxu0 %v2175_v57  ;;  %5791 = vmatmul.mubr.f32.vlgmr.msra.gmra.mxu1 %v2175_v57 }
 0x3b6   : > { %2784 = vmatpush1.msra.mxu0 %v7727_v58  ;;  %5794 = vmatpush3.msra.mxu1 %v7730_v24  ;;  %v9195_v58 = vld [vmem:[#allocation17_spill] sm:$0xff]  ;;  %v9196_v24 = vld [vmem:[#allocation18_spill] sm:$0xff] }
 0x3b7   : > { %2785 = vmatprep.subr.mxu0 %v7733_v38  ;;  %5795 = vmatprep.subr.mxu1 %v9139_v35  ;;  %v9197_v38 = vld [vmem:[#allocation29_spill] sm:$0xff] }
 0x3b8   : > { %2786 = vmatpush1.msra.mxu0 %v7737_v52  ;;  %5796 = vmatpush3.msra.mxu1 %v7740_v36  ;;  %v9198_v52 = vld [vmem:[#allocation19_spill] sm:$0xff]  ;;  %v9199_v36 = vld [vmem:[#allocation20_spill] sm:$0xff] }
 0x3b9   : > { %2787 = vmatprep.subr.mxu0 %v7743_v49  ;;  %5797 = vmatprep.subr.mxu1 %v9139_v35  ;;  %v9200_v49 = vld [vmem:[#allocation32_spill] sm:$0xff] }
 0x3ba   : > { %2788 = vmatpush1.msra.mxu0 %v7747_v33  ;;  %5798 = vmatpush3.msra.mxu1 %v7750_v59  ;;  %v9201_v33 = vld [vmem:[#allocation21_spill] sm:$0xff]  ;;  %v9202_v59 = vld [vmem:[#allocation22_spill] sm:$0xff] }
 0x3bb   : > { %2789 = vmatprep.subr.mxu0 %v7753_v60  ;;  %5799 = vmatprep.subr.mxu1 %v9139_v35  ;;  %v9203_v60 = vld [vmem:[#allocation35_spill] sm:$0xff] }
 0x3bc   : > { %2790 = vmatpush1.msra.mxu0 %v7757_v44  ;;  %5800 = vmatpush3.msra.mxu1 %v7760_v61  ;;  %v9204_v44 = vld [vmem:[#allocation23_spill] sm:$0xff]  ;;  %v9205_v61 = vld [vmem:[#allocation24_spill] sm:$0xff] }
 0x3bd   : > { %2791 = vmatprep.subr.mxu0 %v7763_v3  ;;  %5801 = vmatprep.subr.mxu1 %v9139_v35  ;;  %v9206_v3 = vld [vmem:[#allocation38_spill] sm:$0xff] }
 0x3be   : > { %2792 = vmatpush1.msra.mxu0 %v7767_v4  ;;  %5802 = vmatpush3.msra.mxu1 %v7770_v6  ;;  %v9207_v4 = vld [vmem:[#allocation25_spill] sm:$0xff]  ;;  %v9208_v6 = vld [vmem:[#allocation26_spill] sm:$0xff] }
 0x3bf   : > { %2793 = vmatprep.subr.mxu0 %v7773_v7  ;;  %5803 = vmatprep.subr.mxu1 %v9139_v35  ;;  %v9209_v7 = vld [vmem:[#allocation39_spill] sm:$0xff] }
 0x3c0   : > { %2794 = vmatpush1.msra.mxu0 %v7777_v8  ;;  %5804 = vmatpush3.msra.mxu1 %v7780_v27  ;;  %v9210_v8 = vld [vmem:[#allocation27_spill] sm:$0xff]  ;;  %v9211_v27 = vld [vmem:[#allocation28_spill] sm:$0xff] }
 0x3c1   : > { %2795 = vmatprep.subr.mxu0 %v7783_v10  ;;  %5805 = vmatprep.subr.mxu1 %v9139_v35  ;;  %v9212_v10 = vld [vmem:[#allocation40_spill] sm:$0xff] }
 0x3c2   : > { %2796 = vmatpush1.msra.mxu0 %v7787_v11  ;;  %5806 = vmatpush3.msra.mxu1 %v9195_v58  ;;  %v9213_v11 = vld [vmem:[#allocation30_spill] sm:$0xff] }
 0x3c3   : > { %2797 = vmatprep.subr.mxu0 %v9196_v24  ;;  %5807 = vmatprep.subr.mxu1 %v9139_v35  ;;  %v8118_v24 = vld [vmem:[%s7150_s21 + $0xab] ss:$8 sm:$0x7] }
 0x3c4   : > { %2798 = vmatpush1.msra.mxu0 %v9197_v38  ;;  %5808 = vmatpush3.msra.mxu1 %v9198_v52 }
 0x3c5   : > { %2799 = vmatprep.subr.mxu0 %v9199_v36  ;;  %5809 = vmatprep.subr.mxu1 %v9139_v35 }
 0x3c6   : > { %2800 = vmatpush1.msra.mxu0 %v9200_v49  ;;  %5810 = vmatpush3.msra.mxu1 %v9201_v33 }
 0x3c7   : > { %2801 = vmatprep.subr.mxu0 %v9202_v59  ;;  %5811 = vmatprep.subr.mxu1 %v9139_v35 }
 0x3c8   : > { %2802 = vmatpush1.msra.mxu0 %v9203_v60  ;;  %5812 = vmatpush3.msra.mxu1 %v9204_v44 }
 0x3c9   : > { %2803 = vmatprep.subr.mxu0 %v9205_v61  ;;  %5813 = vmatprep.subr.mxu1 %v9139_v35 }
 0x3ca   : > { %2804 = vmatpush1.msra.mxu0 %v9206_v3  ;;  %5814 = vmatpush3.msra.mxu1 %v9207_v4 }
 0x3cb   : > { %2805 = vmatprep.subr.mxu0 %v9208_v6  ;;  %5815 = vmatprep.subr.mxu1 %v9139_v35 }
 0x3cc   : > { %2806 = vmatpush1.msra.mxu0 %v9209_v7  ;;  %5816 = vmatpush3.msra.mxu1 %v9210_v8 }
 0x3cd   : > { %2807 = vmatprep.subr.mxu0 %v9211_v27  ;;  %5817 = vmatprep.subr.mxu1 %v9139_v35 }
 0x3ce   : > { %2808 = vmatpush1.msra.mxu0 %v9212_v10  ;;  %5818 = vmatpush3.msra.mxu1 %v9213_v11  ;;  %v2440_v11 = vrot.slane %v8090_v34, 1 }
 0x3cf   : > { %2809 = vmatprep.subr.mxu0 %v9214_v43  ;;  %5819 = vmatprep.subr.mxu1 %v9139_v35 }
 0x3d0   : > { %2810 = vmatpush1.msra.mxu0 %v9215_v1  ;;  %5820 = vmatpush3.msra.mxu1 %v9216_v9  ;;  %v2441_v9 = vrot.slane %v8095_v55, 1 }
 0x3d1   : > { %2811 = vmatprep.subr.mxu0 %v9217_v22  ;;  %5821 = vmatprep.subr.mxu1 %v9139_v35  ;;  %v2442_v22 = vrot.slane %v8098_v39, 1 }
 0x3d2   : > { %2812 = vmatpush1.msra.mxu0 %v9218_v40  ;;  %5822 = vmatpush3.msra.mxu1 %v9219_v25  ;;  %v2444_v40 = vrot.slane %v8104_v63, 1 }
 0x3d3   : > { %2813 = vmatprep.subr.mxu0 %v9220_v41  ;;  %5823 = vmatprep.subr.mxu1 %v9139_v35 }
 0x3d4   : > { %2814 = vmatpush1.msra.mxu0 %v9221_v21  ;;  %2847 = vmatprep.mubr.f32.mxu0 %v9139_v35  ;;  %v2443_v21 = vrot.slane %v8101_v20, 1 }
 0x3d5   : > { %5824 = vmatpush3.msra.mxu1 %v9222_v54  ;;  %5825 = vmatprep.mubr.msk.f32.mxu1 %vm6988_vm0, %v9139_v35 }
 0x3d6   : > { %3389 = vmatprep.subr.mxu0 %v8082_v16  ;;  %5828 = vmatprep.subr.mxu1 %v9139_v35 }
 0x475   : > { %v2243_v46 = vpop.f32.mrf.mxu0  ;;  %v8086_v47 = vpop.f32.mrf.mxu1 }
 0x476   : > { %v2319_v17 = vcombine.high %v2243_v46, %v2243_v46  ;;  %v2326_v45 = vrot.slane %v2243_v46, %v7400_v56 }
 0x477   : > { %v5792_v28 = vpop.f32.mrf.mxu1  ;;  %v2245_v48 = vpop.f32.mrf.mxu0 }
 0x478   : > { %v2333_v2 = vrot.slane %v2319_v17, %v7400_v56  ;;  %v2334_v5 = vcombine.high %v2326_v45, %v2326_v45  ;;  %v2342_v32 = vrot.slane %v2326_v45, %v7400_v56  ;;  %v2457_v49 = vcombine.high %v2245_v48, %v2245_v48 }
 0x479   : > { %v2464_v8 = vrot.slane %v2245_v48, %v7400_v56 }
 0x47a   : > { %v2335_v50 = vcombine.high %v2333_v2, %v2333_v2  ;;  %v2349_v14 = vrot.slane %v2333_v2, %v7400_v56  ;;  %v2356_v18 = vrot.slane %v2334_v5, %v7400_v56  ;;  %v2364_v37 = vcombine.high %v2342_v32, %v2342_v32 }
 0x47b   : > { %v2376_v51 = vadd.f32 %v8090_v34, %v2342_v32  ;;  %v2471_v43 = vrot.slane %v2457_v49, %v7400_v56  ;;  %v2472_v25 = vcombine.high %v2464_v8, %v2464_v8  ;;  %v2480_v41 = vrot.slane %v2464_v8, %v7400_v56 }
 0x47c   : > { %v2363_v30 = vrot.slane %v2335_v50, %v7400_v56  ;;  %v2365_v53 = vcombine.high %v2349_v14, %v2349_v14  ;;  %v2366_v57 = vcombine.high %v2356_v18, %v2356_v18  ;;  %v2377_v58 = vadd.f32 %v8095_v55, %v2356_v18 }
 0x47d   : > { %v2378_v38 = vadd.f32 %v8098_v39, %v2364_v37  ;;  %v2380_v52 = vadd.f32 %v8104_v63, %v2349_v14  ;;  %v5399_v36 = vmul.f32 -1.442695, %v2376_v51  ;;  %v2487_v54 = vrot.slane %v2471_v43, %v7400_v56 }
 0x47e   : > { %v2367_v33 = vcombine.high %v2363_v30, %v2363_v30  ;;  %v2379_v59 = vadd.f32 %v8101_v20, %v2366_v57  ;;  %v2381_v60 = vadd.f32 %v8109_v42, %v2363_v30  ;;  %v2382_v44 = vadd.f32 %v8112_v23, %v2365_v53 }
 0x47f   : > { %6278 = vpow2.f32 %v5399_v36  ;;  %v5400_v61 = vmul.f32 -1.442695, %v2377_v58  ;;  %v5401_v3 = vmul.f32 -1.442695, %v2378_v38  ;;  %v5403_v7 = vmul.f32 -1.442695, %v2380_v52 }
 0x480   : > { %v2383_v4 = vadd.f32 %v8118_v24, %v2367_v33  ;;  %v5402_v6 = vmul.f32 -1.442695, %v2379_v59  ;;  %v5404_v27 = vmul.f32 -1.442695, %v2381_v60  ;;  %v5405_v10 = vmul.f32 -1.442695, %v2382_v44 }
 0x481   : > { %6280 = vpow2.f32 %v5400_v61  ;;  %v2473_v46 = vcombine.high %v2471_v43, %v2471_v43  ;;  %v2494_v17 = vrot.slane %v2472_v25, %v7400_v56  ;;  %v2502_v45 = vcombine.high %v2480_v41, %v2480_v41 }
 0x482   : > { %6282 = vpow2.f32 %v5401_v3  ;;  %v5406_v1 = vmul.f32 -1.442695, %v2383_v4  ;;  %v2514_v28 = vadd.f32 %v2480_v41, %v2440_v11  ;;  %v2518_v50 = vadd.f32 %v2487_v54, %v2444_v40 }
 0x483   : > { %6284 = vpow2.f32 %v5402_v6  ;;  %v2504_v2 = vcombine.high %v2494_v17, %v2494_v17  ;;  %v2515_v5 = vadd.f32 %v2494_v17, %v2441_v9  ;;  %v2516_v32 = vadd.f32 %v2502_v45, %v2442_v22 }
 0x484   : > { %6286 = vpow2.f32 %v5403_v7  ;;  %v5407_v14 = vmul.f32 -1.442695, %v2514_v28  ;;  %v2501_v18 = vrot.slane %v2473_v46, %v7400_v56  ;;  %v2445_v53 = vrot.slane %v8109_v42, 1 }
 0x485   : > { %6288 = vpow2.f32 %v5404_v27  ;;  %v2517_v37 = vadd.f32 %v2504_v2, %v2443_v21  ;;  %v5408_v48 = vmul.f32 -1.442695, %v2515_v5  ;;  %v5409_v51 = vmul.f32 -1.442695, %v2516_v32 }
 0x486   : > { %6290 = vpow2.f32 %v5405_v10  ;;  %v5411_v58 = vmul.f32 -1.442695, %v2518_v50  ;;  %v2446_v52 = vrot.slane %v8112_v23, 1  ;;  %v2503_v36 = vcombine.high %v2487_v54, %v2487_v54 }
 0x487   : > { %6292 = vpow2.f32 %v5406_v1  ;;  %v5410_v57 = vmul.f32 -1.442695, %v2517_v37  ;;  %v2570_v33 = vadd.f32 %v7944_v29, %v8086_v47  ;;  %v2447_v59 = vrot.slane %v8118_v24, 1 }
 0x488   : > { %6294 = vpow2.f32 %v5407_v14  ;;  %v2505_v60 = vcombine.high %v2501_v18, %v2501_v18  ;;  %v2519_v6 = vadd.f32 %v2501_v18, %v2445_v53  ;;  %v2520_v27 = vadd.f32 %v2503_v36, %v2446_v52 }
 0x489   : > { %6296 = vpow2.f32 %v5408_v48  ;;  %v2572_v43 = vcombine.high %v2570_v33, %v2570_v33  ;;  %v2579_v9 = vrot.slane %v2570_v33, %v7400_v56  ;;  %v2637_v37 = vrot.slane %v8090_v34, 2 }
 0x48a   : > { %6298 = vpow2.f32 %v5409_v51  ;;  %v2521_v29 = vadd.f32 %v2505_v60, %v2447_v59  ;;  %v5412_v25 = vmul.f32 -1.442695, %v2519_v6  ;;  %v5413_v21 = vmul.f32 -1.442695, %v2520_v27 }
 0x48b   : > { %6300 = vpow2.f32 %v5410_v57  ;;  %v2586_v54 = vrot.slane %v2572_v43, %v7400_v56  ;;  %v2587_v17 = vcombine.high %v2579_v9, %v2579_v9  ;;  %v2595_v50 = vrot.slane %v2579_v9, %v7400_v56 }
 0x48c   : > { %v6279_v30 = vpop.eup %6278  ;;  %v5414_v46 = vmul.f32 -1.442695, %v2521_v29  ;;  %v2638_v53 = vrot.slane %v8095_v55, 2  ;;  %v2639_v57 = vrot.slane %v8098_v39, 2  ;;  %v2641_v36 = vrot.slane %v8104_v63, 2 }
 0x48d   : > { %v2408_v38 = vadd.f32 1.0, %v6279_v30  ;;  %v2588_v32 = vcombine.high %v2586_v54, %v2586_v54  ;;  %v2609_v48 = vrot.slane %v2587_v17, %v7400_v56  ;;  %v2617_v60 = vcombine.high %v2595_v50, %v2595_v50 }
 0x48e   : > { %v6281_v49 = vpop.eup %6280  ;;  %v2643_v63 = vrot.slane %v8112_v23, 2 }
 0x48f   : > { %v6283_v44 = vpop.eup %6282  ;;  %v2409_v61 = vadd.f32 1.0, %v6281_v49  ;;  %6302 = vrcp.f32 %v2408_v38  ;;  %v2602_v49 = vrot.slane %v2586_v54, %v7400_v56  ;;  %v2616_v34 = vrot.slane %v2588_v32, %v7400_v56 }
 0x490   : > { %v6285_v3 = vpop.eup %6284  ;;  %v2410_v4 = vadd.f32 1.0, %v6283_v44  ;;  %6304 = vpow2.f32 %v5411_v58  ;;  %v2640_v58 = vrot.slane %v8101_v20, 2  ;;  %v2619_v55 = vcombine.high %v2609_v48, %v2609_v48 }
 0x491   : > { %v6287_v7 = vpop.eup %6286  ;;  %v2411_v8 = vadd.f32 1.0, %v6285_v3  ;;  %6306 = vrcp.f32 %v2409_v61  ;;  %v2618_v43 = vcombine.high %v2602_v49, %v2602_v49  ;;  %v2620_v9 = vcombine.high %v2616_v34, %v2616_v34 }
 0x492   : > { %v6289_v10 = vpop.eup %6288  ;;  %v2412_v11 = vadd.f32 1.0, %v6287_v7  ;;  %6308 = vrcp.f32 %v2410_v4  ;;  %v2642_v4 = vrot.slane %v8109_v42, 2 }
 0x493   : > { %v6291_v47 = vpop.eup %6290  ;;  %v2413_v1 = vadd.f32 1.0, %v6289_v10  ;;  %6310 = vrcp.f32 %v2411_v8  ;;  %v2644_v8 = vrot.slane %v8118_v24, 2 }
 0x494   : > { %v6293_v22 = vpop.eup %6292  ;;  %v2414_v40 = vadd.f32 1.0, %v6291_v47  ;;  %6312 = vrcp.f32 %v2412_v11 }
 0x495   : > { %v2415_v41 = vadd.f32 1.0, %v6293_v22  ;;  %6314 = vrcp.f32 %v2413_v1  ;;  %v6295_v45 = vpop.eup %6294 }
 0x496   : > { %6316 = vrcp.f32 %v2414_v40  ;;  %v6297_v28 = vpop.eup %6296  ;;  %v2546_v2 = vadd.f32 1.0, %v6295_v45 }
 0x497   : > { %6318 = vrcp.f32 %v2415_v41  ;;  %v6299_v5 = vpop.eup %6298  ;;  %v2547_v14 = vadd.f32 1.0, %v6297_v28 }
 0x498   : > { %6320 = vpow2.f32 %v5412_v25  ;;  %v6301_v18 = vpop.eup %6300  ;;  %v2548_v51 = vadd.f32 1.0, %v6299_v5 }
 0x499   : > { %6322 = vpow2.f32 %v5413_v21  ;;  %v2549_v38 = vadd.f32 1.0, %v6301_v18 }
 0x49a   : > { %6324 = vpow2.f32 %v5414_v46 }
 0x49b   : > { %6326 = vrcp.f32 %v2546_v2 }
 0x49c   : > { %v6303_v30 = vpop.eup %6302  ;;  %6328 = vrcp.f32 %v2547_v14 }
 0x49d   : > { %v6305_v52 = vpop.eup %6304  ;;  %v2629_v33 = vmul.f32 %v6303_v30, %v2595_v50  ;;  %6330 = vrcp.f32 %v2548_v51 }
 0x49e   : > { %v6307_v59 = vpop.eup %6306  ;;  %v2550_v44 = vadd.f32 1.0, %v6305_v52  ;;  %6332 = vrcp.f32 %v2549_v38 }
 0x49f   : > { %v6309_v61 = vpop.eup %6308  ;;  %v2630_v3 = vmul.f32 %v6307_v59, %v2609_v48  ;;  %v2653_v39 = vadd.f32 %v2637_v37, %v2629_v33 }
 0x4a0   : > { %v6311_v20 = vpop.eup %6310  ;;  %v2631_v6 = vmul.f32 %v6309_v61, %v2617_v60 }
 0x4a1   : > { %v6313_v7 = vpop.eup %6312  ;;  %v2632_v27 = vmul.f32 %v6311_v20, %v2619_v55  ;;  %v2654_v10 = vadd.f32 %v2638_v53, %v2630_v3  ;;  %6334 = vtanh.f32 %v2653_v39 }
 0x4a2   : > { %v6315_v11 = vpop.eup %6314  ;;  %v2633_v29 = vmul.f32 %v6313_v7, %v2602_v49  ;;  %v2655_v47 = vadd.f32 %v2639_v57, %v2631_v6  ;;  %6336 = vrcp.f32 %v2550_v44 }
 0x4a3   : > { %v6317_v1 = vpop.eup %6316  ;;  %v2634_v22 = vmul.f32 %v6315_v11, %v2616_v34  ;;  %v2656_v40 = vadd.f32 %v2640_v58, %v2632_v27  ;;  %6338 = vtanh.f32 %v2654_v10 }
 0x4a4   : > { %v6319_v42 = vpop.eup %6318  ;;  %v2635_v23 = vmul.f32 %v6317_v1, %v2618_v43  ;;  %v2657_v25 = vadd.f32 %v2641_v36, %v2633_v29  ;;  %6340 = vtanh.f32 %v2655_v47 }
 0x4a5   : > { %v6321_v41 = vpop.eup %6320  ;;  %v2636_v21 = vmul.f32 %v6319_v42, %v2620_v9  ;;  %v2658_v24 = vadd.f32 %v2642_v4, %v2634_v22  ;;  %6342 = vtanh.f32 %v2656_v40 }
 0x4a6   : > { %v6323_v54 = vpop.eup %6322  ;;  %v2659_v46 = vadd.f32 %v2643_v63, %v2635_v23  ;;  %6344 = vtanh.f32 %v2657_v25  ;;  %v2551_v17 = vadd.f32 1.0, %v6321_v41 }
 0x4a7   : > { %v6325_v45 = vpop.eup %6324  ;;  %v2660_v28 = vadd.f32 %v2644_v8, %v2636_v21  ;;  %6346 = vtanh.f32 %v2658_v24  ;;  %v2552_v2 = vadd.f32 1.0, %v6323_v54 }
 0x4a8   : > { %6348 = vtanh.f32 %v2659_v46  ;;  %v2553_v5 = vadd.f32 1.0, %v6325_v45  ;;  %v6327_v32 = vpop.eup %6326 }
 0x4a9   : > { %6350 = vtanh.f32 %v2660_v28  ;;  %v6329_v50 = vpop.eup %6328  ;;  %v2669_v37 = vsub.f32 1.0, %v6327_v32  ;;  %v2685_v57 = vmul.f32 %v6327_v32, %v7965_v31  ;;  %v8210_v32 = vld [vmem:[#allocation6 + $0x168] sm:$0xff] }
 0x4aa   : > { %6352 = vrcp.f32 %v2551_v17  ;;  %v6331_v14 = vpop.eup %6330  ;;  %v2670_v30 = vsub.f32 1.0, %v6329_v50  ;;  %v2686_v33 = vmul.f32 %v6329_v50, %v7969_v12  ;;  %v8213_v50 = vld [vmem:[#allocation6 + $0x178] sm:$0xff] }
 0x4ab   : > { %6354 = vrcp.f32 %v2552_v2  ;;  %v6333_v18 = vpop.eup %6332  ;;  %v2671_v38 = vsub.f32 1.0, %v6331_v14  ;;  %v2687_v61 = vmul.f32 %v6331_v14, %v7974_v26  ;;  %v8216_v14 = vld [vmem:[#allocation6 + $0x158] sm:$0xff] }
 0x4ac   : > { %6356 = vrcp.f32 %v2553_v5  ;;  %v2672_v36 = vsub.f32 1.0, %v6333_v18  ;;  %v2688_v3 = vmul.f32 %v6333_v18, %v7976_v13  ;;  %v8220_v18 = vld [vmem:[#allocation6 + $0x150] sm:$0xff] }
 0x4ae   : > { %v6335_v48 = vpop.eup %6334 }
 0x4af   : > { %v6337_v51 = vpop.eup %6336  ;;  %v2677_v53 = vmul.f32 %v6335_v48, %v2669_v37  ;;  %v8223_v37 = vld [vmem:[#allocation6 + $0x160] sm:$0xff] }
 0x4b0   : > { %v6339_v58 = vpop.eup %6338  ;;  %v2673_v60 = vsub.f32 1.0, %v6337_v51  ;;  %v2689_v4 = vmul.f32 %v6337_v51, %v7980_v0  ;;  %v8226_v48 = vld [vmem:[#allocation6 + $0x140] sm:$0xff]  ;;  %v8230_v51 = vld [vmem:[#allocation6 + $0x138] sm:$0xff] }
 0x4b1   : > { %v6341_v52 = vpop.eup %6340  ;;  %v2678_v49 = vmul.f32 %v6339_v58, %v2670_v30  ;;  %v8158_v59 = vadd.f32 %v2685_v57, %v2677_v53  ;;  %v8233_v30 = vld [vmem:[#allocation6 + $0x148] sm:$0xff]  ;;  %v8240_v57 = vld [vmem:[#allocation6 + $0x120] sm:$0xff]  ;;  %v8243_v58 = vld [vmem:[#allocation6 + $0x130] sm:$0xff] }
 0x4b2   : > { %v6343_v34 = vpop.eup %6342  ;;  %v2679_v44 = vmul.f32 %v6341_v52, %v2671_v38  ;;  %v8236_v53 = vld [vmem:[#allocation6 + $0x128] sm:$0xff]  ;;  %v8246_v38 = vld [vmem:[#allocation6 + $0x110] sm:$0xff] }
 0x4b3   : > { %v6345_v55 = vpop.eup %6344  ;;  %v2680_v31 = vmul.f32 %v6343_v34, %v2672_v36  ;;  %v8162_v39 = vadd.f32 %v2686_v33, %v2678_v49  ;;  %2701 = vst [vmem:[%s7161_s12 + $0x3] sm:$0x1] %v8158_v59  ;;  %v8250_v52 = vld [vmem:[#allocation6 + $0x108] sm:$0xff]  ;;  %v8253_v36 = vld [vmem:[#allocation6 + $0x118] sm:$0xff]  ;;  %v8260_v33 = vld [vmem:[#allocation6 + $0xf0] sm:$0xff] }
 0x4b4   : > { %v6347_v12 = vpop.eup %6346  ;;  %v2681_v20 = vmul.f32 %v6345_v55, %v2673_v60  ;;  %v8167_v63 = vadd.f32 %v2687_v61, %v2679_v44  ;;  %v8256_v49 = vld [vmem:[#allocation6 + $0xf8] sm:$0xff]  ;;  %v8263_v34 = vld [vmem:[#allocation6 + $0x100] sm:$0xff]  ;;  %v8273_v61 = vld [vmem:[#allocation6 + $0xe8] sm:$0xff] }
 0x4b5   : > { %v6349_v6 = vpop.eup %6348  ;;  %v8169_v7 = vadd.f32 %v2688_v3, %v2680_v31  ;;  %2702 = vst [vmem:[%s7161_s12 + $0xb] sm:$0x1] %v8162_v39  ;;  %v2733_v25 = vcombine.low %v8158_v59, %v8162_v39  ;;  %v8266_v60 = vld [vmem:[#allocation6 + $0xe0] sm:$0xff]  ;;  %v8270_v44 = vld [vmem:[#allocation6 + $0xd8] sm:$0xff]  ;;  %9223 = vst [vmem:[#allocation17_spill] sm:$0xff] %v8273_v61 }
 0x4b6   : > { %v6351_v26 = vpop.eup %6350  ;;  %v8173_v8 = vadd.f32 %v2689_v4, %v2681_v20  ;;  %2703 = vst [vmem:[%s7161_s12 + $0x13] sm:$0x1] %v8167_v63  ;;  %v8276_v55 = vld [vmem:[#allocation6 + $0xc8] sm:$0xff]  ;;  %v8280_v31 = vld [vmem:[#allocation6 + $0xc0] sm:$0xff]  ;;  %v8283_v3 = vld [vmem:[#allocation6 + $0xd0] sm:$0xff] }
 0x4b7   : > { %v6353_v13 = vpop.eup %6352  ;;  %2704 = vst [vmem:[%s7161_s12 + $0x1b] sm:$0x1] %v8169_v7  ;;  %v2734_v1 = vcombine.low %v8167_v63, %v8169_v7  ;;  %9224 = vst [vmem:[#allocation18_spill] sm:$0xff] %v8276_v55  ;;  %v8290_v20 = vld [vmem:[#allocation6 + $0xa8] sm:$0xff]  ;;  %v8293_v4 = vld [vmem:[#allocation6 + $0xb8] sm:$0xff] }
 0x4b8   : > { %v6355_v27 = vpop.eup %6354  ;;  %v2674_v10 = vsub.f32 1.0, %v6353_v13  ;;  %2705 = vst [vmem:[%s7161_s12 + $0x23] sm:$0x1] %v8173_v8  ;;  %v2690_v47 = vmul.f32 %v6353_v13, %v7993_v62  ;;  %9225 = vst [vmem:[#allocation29_spill] sm:$0xff] %v8280_v31  ;;  %v8303_v13 = vld [vmem:[#allocation6 + $0xa0] sm:$0xff] }
 0x4b9   : > { %v6357_v0 = vpop.eup %6356  ;;  %v2675_v11 = vsub.f32 1.0, %v6355_v27  ;;  %v2691_v22 = vmul.f32 %v6355_v27, %v7997_v19  ;;  %v2750_v24 = vrot.slane %v2734_v1, %v7400_v56  ;;  %9226 = vst [vmem:[#allocation19_spill] sm:$0xff] %v8283_v3  ;;  %9228 = vst [vmem:[#allocation32_spill] sm:$0xff] %v8290_v20  ;;  %v8306_v27 = vld [vmem:[#allocation6 + $0x80] sm:$0xff]  ;;  %v8330_v1 = vld [vmem:[#allocation6 + $0x48] sm:$0xff] }
 0x4ba   : > { %v2676_v43 = vsub.f32 1.0, %v6357_v0  ;;  %v2682_v29 = vmul.f32 %v6347_v12, %v2674_v10  ;;  %v2692_v42 = vmul.f32 %v6357_v0, %v7999_v15  ;;  %v2743_v15 = vrot.slane %v2733_v25, %v7400_v56  ;;  %v8286_v12 = vld [vmem:[#allocation6 + $0xb0] sm:$0xff]  ;;  %9229 = vst [vmem:[#allocation21_spill] sm:$0xff] %v8293_v4  ;;  %9232 = vst [vmem:[#allocation23_spill] sm:$0xff] %v8303_v13  ;;  %v8310_v10 = vld [vmem:[#allocation6 + $0x78] sm:$0xff] }
 0x4bb   : > { %v2683_v9 = vmul.f32 %v6349_v6, %v2675_v11  ;;  %9227 = vst [vmem:[#allocation20_spill] sm:$0xff] %v8286_v12  ;;  %v8296_v6 = vld [vmem:[#allocation6 + $0x98] sm:$0xff]  ;;  %9233 = vst [vmem:[#allocation24_spill] sm:$0xff] %v8306_v27  ;;  %v8313_v0 = vld [vmem:[#allocation6 + $0x88] sm:$0xff] }
 0x4bc   : > { %v2684_v40 = vmul.f32 %v6351_v26, %v2676_v43  ;;  %v8186_v23 = vadd.f32 %v2690_v47, %v2682_v29  ;;  %v2765_v17 = vcombine.low %v2743_v15, %v2750_v24  ;;  %9230 = vst [vmem:[#allocation22_spill] sm:$0xff] %v8296_v6  ;;  %v8300_v26 = vld [vmem:[#allocation6 + $0x90] sm:$0xff]  ;;  %9234 = vst [vmem:[#allocation38_spill] sm:$0xff] %v8310_v10  ;;  %v8316_v11 = vld [vmem:[#allocation6 + $0x68] sm:$0xff] }
 0x4bd   : > { %v8190_v41 = vadd.f32 %v2691_v22, %v2683_v9  ;;  %9231 = vst [vmem:[#allocation35_spill] sm:$0xff] %v8300_v26  ;;  %9235 = vst [vmem:[#allocation25_spill] sm:$0xff] %v8313_v0  ;;  %v8320_v43 = vld [vmem:[#allocation6 + $0x60] sm:$0xff]  ;;  %v8323_v29 = vld [vmem:[#allocation6 + $0x70] sm:$0xff] }
 0x4be   : > { %v8192_v21 = vadd.f32 %v2692_v42, %v2684_v40  ;;  %2706 = vst [vmem:[%s7161_s12 + $0x2b] sm:$0x1] %v8186_v23  ;;  %v2735_v62 = vcombine.low %v8173_v8, %v8186_v23  ;;  %v2773_v28 = vrot.slane %v2765_v17, %v7400_v56  ;;  %9236 = vst [vmem:[#allocation26_spill] sm:$0xff] %v8316_v11  ;;  %v8326_v47 = vld [vmem:[#allocation6 + $0x50] sm:$0xff]  ;;  %v8333_v9 = vld [vmem:[#allocation6 + $0x58] sm:$0xff] }
 0x4bf   : > { %2707 = vst [vmem:[%s7161_s12 + $0x33] sm:$0x1] %v8190_v41  ;;  %9237 = vst [vmem:[#allocation39_spill] sm:$0xff] %v8320_v43  ;;  %v8336_v22 = vld [vmem:[#allocation6 + $0x38] sm:$0xff]  ;;  %v8340_v40 = vld [vmem:[#allocation6 + $0x30] sm:$0xff] }
 0x4c0   : > { %2708 = vst [vmem:[%s7161_s12 + $0x3b] sm:$0x1] %v8192_v21  ;;  %v2736_v19 = vcombine.low %v8190_v41, %v8192_v21  ;;  %v2757_v54 = vrot.slane %v2735_v62, %v7400_v56  ;;  %9238 = vst [vmem:[#allocation27_spill] sm:$0xff] %v8323_v29  ;;  %v8343_v42 = vld [vmem:[#allocation6 + $0x40] sm:$0xff]  ;;  %v8350_v62 = vld [vmem:[#allocation6 + $0x18] sm:$0xff] }
 0x4c1   : > { %9239 = vst [vmem:[#allocation28_spill] sm:$0xff] %v8326_v47  ;;  %9240 = vst [vmem:[#allocation40_spill] sm:$0xff] %v8330_v1  ;;  %v8346_v25 = vld [vmem:[#allocation6 + $0x20] sm:$0xff]  ;;  %v8353_v24 = vld [vmem:[#allocation6 + $0x28] sm:$0xff] }
 0x4c2   : > { %v2764_v46 = vrot.slane %v2736_v19, %v7400_v56  ;;  %9241 = vst [vmem:[#allocation30_spill] sm:$0xff] %v8333_v9  ;;  %9242 = vst [vmem:[#allocation31_spill] sm:$0xff] %v8336_v22  ;;  %v8356_v19 = vld [vmem:[#allocation6 + $0x8] sm:$0xff]  ;;  %v8360_v15 = vld [vmem:[#allocation6] sm:$0xff] }
 0x4c3   : > { %9243 = vst [vmem:[#allocation41_spill] sm:$0xff] %v8340_v40  ;;  %9244 = vst [vmem:[#allocation33_spill] sm:$0xff] %v8343_v42 }
 0x4c4   : > { %v2766_v45 = vcombine.low %v2757_v54, %v2764_v46  ;;  %9245 = vst [vmem:[#allocation34_spill] sm:$0xff] %v8346_v25  ;;  %9246 = vst [vmem:[#allocation42_spill] sm:$0xff] %v8350_v62  ;;  %v8364_v54 = vld [vmem:[#allocation6 + $0x10] sm:$0xff] }
 0x4c5   : > { %9247 = vst [vmem:[#allocation36_spill] sm:$0xff] %v8353_v24  ;;  %9248 = vst [vmem:[#allocation37_spill] sm:$0xff] %v8356_v19 }
 0x4c6   : > { %v2780_v2 = vrot.slane %v2766_v45, %v7400_v56  ;;  %9249 = vst [vmem:[#allocation43_spill] sm:$0xff] %v8360_v15  ;;  %9250 = vst [vmem:[#allocation44_spill] sm:$0xff] %v8364_v54 }
 0x4c8   : > { %v2781_v5 = vcombine.low %v2773_v28, %v2780_v2 }
 0x4ca   : > { %2848 = vmatmul.mubr.f32.vlgmr.msra.gmra.mxu0 %v2781_v5  ;;  %5826 = vmatmul.mubr.f32.vlgmr.msra.gmra.mxu1 %v2781_v5  ;;  %v8375_v5 = vld [vmem:[%s7150_s21 + $0x4] ss:$8 sm:$0x7] }
 0x4cb   : > { %3390 = vmatpush1.msra.mxu0 %v8210_v32  ;;  %5829 = vmatpush3.msra.mxu1 %v8213_v50 }
 0x4cc   : > { %3391 = vmatprep.subr.mxu0 %v8216_v14  ;;  %5830 = vmatprep.subr.mxu1 %v9139_v35 }
 0x4cd   : > { %3392 = vmatpush1.msra.mxu0 %v8220_v18  ;;  %5831 = vmatpush3.msra.mxu1 %v8223_v37 }
 0x4ce   : > { %3393 = vmatprep.subr.mxu0 %v8226_v48  ;;  %5832 = vmatprep.subr.mxu1 %v9139_v35 }
 0x4cf   : > { %3394 = vmatpush1.msra.mxu0 %v8230_v51  ;;  %5833 = vmatpush3.msra.mxu1 %v8233_v30 }
 0x4d0   : > { %3395 = vmatprep.subr.mxu0 %v8236_v53  ;;  %5834 = vmatprep.subr.mxu1 %v9139_v35 }
 0x4d1   : > { %3396 = vmatpush1.msra.mxu0 %v8240_v57  ;;  %5835 = vmatpush3.msra.mxu1 %v8243_v58 }
 0x4d2   : > { %3397 = vmatprep.subr.mxu0 %v8246_v38  ;;  %5836 = vmatprep.subr.mxu1 %v9139_v35 }
 0x4d3   : > { %3398 = vmatpush1.msra.mxu0 %v8250_v52  ;;  %5837 = vmatpush3.msra.mxu1 %v8253_v36 }
 0x4d4   : > { %3399 = vmatprep.subr.mxu0 %v8256_v49  ;;  %5838 = vmatprep.subr.mxu1 %v9139_v35 }
 0x4d5   : > { %3400 = vmatpush1.msra.mxu0 %v8260_v33  ;;  %5839 = vmatpush3.msra.mxu1 %v8263_v34 }
 0x4d6   : > { %3401 = vmatprep.subr.mxu0 %v8266_v60  ;;  %5840 = vmatprep.subr.mxu1 %v9139_v35 }
 0x4d7   : > { %3402 = vmatpush1.msra.mxu0 %v8270_v44  ;;  %5841 = vmatpush3.msra.mxu1 %v8273_v61 }
 0x4d8   : > { %3403 = vmatprep.subr.mxu0 %v8276_v55  ;;  %5842 = vmatprep.subr.mxu1 %v9139_v35 }
 0x4d9   : > { %3404 = vmatpush1.msra.mxu0 %v8280_v31  ;;  %5843 = vmatpush3.msra.mxu1 %v8283_v3 }
 0x4da   : > { %3405 = vmatprep.subr.mxu0 %v8286_v12  ;;  %5844 = vmatprep.subr.mxu1 %v9139_v35  ;;  %v3046_v12 = vrot.slane %v8375_v5, 1 }
 0x4db   : > { %3406 = vmatpush1.msra.mxu0 %v8290_v20  ;;  %5845 = vmatpush3.msra.mxu1 %v8293_v4 }
 0x4dc   : > { %3407 = vmatprep.subr.mxu0 %v8296_v6  ;;  %5846 = vmatprep.subr.mxu1 %v9139_v35 }
 0x4dd   : > { %3408 = vmatpush1.msra.mxu0 %v8300_v26  ;;  %5847 = vmatpush3.msra.mxu1 %v8303_v13 }
 0x4de   : > { %3409 = vmatprep.subr.mxu0 %v8306_v27  ;;  %5848 = vmatprep.subr.mxu1 %v9139_v35 }
 0x4df   : > { %3410 = vmatpush1.msra.mxu0 %v8310_v10  ;;  %5849 = vmatpush3.msra.mxu1 %v8313_v0 }
 0x4e0   : > { %3411 = vmatprep.subr.mxu0 %v8316_v11  ;;  %5850 = vmatprep.subr.mxu1 %v9139_v35  ;;  %v8403_v11 = vld [vmem:[%s7150_s21 + $0xac] ss:$8 sm:$0x7] }
 0x4e1   : > { %3412 = vmatpush1.msra.mxu0 %v8320_v43  ;;  %5851 = vmatpush3.msra.mxu1 %v8323_v29 }
 0x4e2   : > { %3413 = vmatprep.subr.mxu0 %v8326_v47  ;;  %5852 = vmatprep.subr.mxu1 %v9139_v35 }
 0x4e3   : > { %3414 = vmatpush1.msra.mxu0 %v8330_v1  ;;  %5853 = vmatpush3.msra.mxu1 %v8333_v9  ;;  %v8397_v9 = vld [vmem:[%s7150_s21 + $0x94] ss:$8 sm:$0x7] }
 0x4e4   : > { %3415 = vmatprep.subr.mxu0 %v8336_v22  ;;  %5854 = vmatprep.subr.mxu1 %v9139_v35 }
 0x4e5   : > { %3416 = vmatpush1.msra.mxu0 %v8340_v40  ;;  %5855 = vmatpush3.msra.mxu1 %v8343_v42 }
 0x4e6   : > { %3417 = vmatprep.subr.mxu0 %v8346_v25  ;;  %5856 = vmatprep.subr.mxu1 %v9139_v35  ;;  %v8389_v25 = vld [vmem:[%s7150_s21 + $0x64] ss:$8 sm:$0x7] }
 0x4e7   : > { %3418 = vmatpush1.msra.mxu0 %v8350_v62  ;;  %5857 = vmatpush3.msra.mxu1 %v8353_v24  ;;  %v8380_v24 = vld [vmem:[%s7150_s21 + $0x1c] ss:$8 sm:$0x7] }
 0x4e8   : > { %3419 = vmatprep.subr.mxu0 %v8356_v19  ;;  %5858 = vmatprep.subr.mxu1 %v9139_v35  ;;  %v8386_v62 = vld [vmem:[%s7150_s21 + $0x4c] ss:$8 sm:$0x7] }
 0x4e9   : > { %3420 = vmatpush1.msra.mxu0 %v8360_v15  ;;  %3453 = vmatprep.mubr.f32.mxu0 %v9139_v35 }
 0x4ea   : > { %5859 = vmatpush3.msra.mxu1 %v8364_v54  ;;  %5860 = vmatprep.mubr.msk.f32.mxu1 %vm6988_vm0, %v9139_v35 }
 0x4eb   : > { %3995 = vmatprep.subr.mxu0 %v8082_v16  ;;  %5863 = vmatprep.subr.mxu1 %v9139_v35  ;;  %v8383_v16 = vld [vmem:[%s7150_s21 + $0x34] ss:$8 sm:$0x7] }
 0x58a   : > { %v2849_v46 = vpop.f32.mrf.mxu0  ;;  %v8371_v17 = vpop.f32.mrf.mxu1 }
 0x58b   : > { %v2925_v45 = vcombine.high %v2849_v46, %v2849_v46  ;;  %v2932_v28 = vrot.slane %v2849_v46, %v7400_v56 }
 0x58c   : > { %v5827_v2 = vpop.f32.mrf.mxu1  ;;  %v2851_v22 = vpop.f32.mrf.mxu0 }
 0x58d   : > { %v2939_v54 = vrot.slane %v2925_v45, %v7400_v56  ;;  %v2940_v15 = vcombine.high %v2932_v28, %v2932_v28  ;;  %v2948_v19 = vrot.slane %v2932_v28, %v7400_v56  ;;  %v8394_v45 = vld [vmem:[%s7150_s21 + $0x7c] ss:$8 sm:$0x7]  ;;  %v3063_v10 = vcombine.high %v2851_v22, %v2851_v22 }
 0x58f   : > { %v2941_v42 = vcombine.high %v2939_v54, %v2939_v54  ;;  %v2955_v46 = vrot.slane %v2939_v54, %v7400_v56  ;;  %v2962_v2 = vrot.slane %v2940_v15, %v7400_v56  ;;  %v2970_v40 = vcombine.high %v2948_v19, %v2948_v19 }
 0x590   : > { %v2982_v28 = vadd.f32 %v8375_v5, %v2948_v19 }
 0x591   : > { %v2969_v1 = vrot.slane %v2941_v42, %v7400_v56  ;;  %v2971_v47 = vcombine.high %v2955_v46, %v2955_v46  ;;  %v2972_v29 = vcombine.high %v2962_v2, %v2962_v2  ;;  %v2983_v43 = vadd.f32 %v8380_v24, %v2962_v2 }
 0x592   : > { %v2984_v54 = vadd.f32 %v8383_v16, %v2970_v40  ;;  %v2986_v15 = vadd.f32 %v8389_v25, %v2955_v46  ;;  %v5423_v0 = vmul.f32 -1.442695, %v2982_v28  ;;  %v3070_v40 = vrot.slane %v2851_v22, %v7400_v56 }
 0x593   : > { %v2973_v27 = vcombine.high %v2969_v1, %v2969_v1  ;;  %v2985_v13 = vadd.f32 %v8386_v62, %v2972_v29  ;;  %v2987_v26 = vadd.f32 %v8394_v45, %v2969_v1  ;;  %v2988_v19 = vadd.f32 %v8397_v9, %v2971_v47 }
 0x594   : > { %6358 = vpow2.f32 %v5423_v0  ;;  %v5424_v42 = vmul.f32 -1.442695, %v2983_v43  ;;  %v5425_v6 = vmul.f32 -1.442695, %v2984_v54  ;;  %v5427_v20 = vmul.f32 -1.442695, %v2986_v15 }
 0x595   : > { %v2989_v2 = vadd.f32 %v8403_v11, %v2973_v27  ;;  %v5426_v4 = vmul.f32 -1.442695, %v2985_v13  ;;  %v5428_v46 = vmul.f32 -1.442695, %v2987_v26  ;;  %v5429_v28 = vmul.f32 -1.442695, %v2988_v19 }
 0x596   : > { %6360 = vpow2.f32 %v5424_v42  ;;  %v3077_v29 = vrot.slane %v3063_v10, %v7400_v56  ;;  %v3047_v0 = vrot.slane %v8380_v24, 1  ;;  %v3048_v43 = vrot.slane %v8383_v16, 1 }
 0x597   : > { %6362 = vpow2.f32 %v5425_v6  ;;  %v5430_v1 = vmul.f32 -1.442695, %v2989_v2  ;;  %v3050_v13 = vrot.slane %v8389_v25, 1  ;;  %v3078_v27 = vcombine.high %v3070_v40, %v3070_v40 }
 0x598   : > { %6364 = vpow2.f32 %v5426_v4  ;;  %v3086_v47 = vrot.slane %v3070_v40, %v7400_v56  ;;  %v3049_v6 = vrot.slane %v8386_v62, 1  ;;  %v3093_v26 = vrot.slane %v3077_v29, %v7400_v56 }
 0x599   : > { %6366 = vpow2.f32 %v5427_v20  ;;  %v3079_v22 = vcombine.high %v3077_v29, %v3077_v29  ;;  %v3100_v4 = vrot.slane %v3078_v27, %v7400_v56 }
 0x59a   : > { %6368 = vpow2.f32 %v5428_v46  ;;  %v3108_v10 = vcombine.high %v3086_v47, %v3086_v47  ;;  %v3120_v54 = vadd.f32 %v3086_v47, %v3046_v12  ;;  %v3124_v42 = vadd.f32 %v3093_v26, %v3050_v13 }
 0x59b   : > { %6370 = vpow2.f32 %v5429_v28  ;;  %v3110_v15 = vcombine.high %v3100_v4, %v3100_v4  ;;  %v3121_v19 = vadd.f32 %v3100_v4, %v3047_v0  ;;  %v3107_v3 = vrot.slane %v3079_v22, %v7400_v56 }
 0x59c   : > { %6372 = vpow2.f32 %v5430_v1  ;;  %v3122_v20 = vadd.f32 %v3108_v10, %v3048_v43  ;;  %v5431_v2 = vmul.f32 -1.442695, %v3120_v54  ;;  %v3051_v28 = vrot.slane %v8394_v45, 1  ;;  %v8427_v43 = vld [vmem:[%s8992_s2] ss:$0 sm:$0xff] }
 0x59d   : > { %v3123_v40 = vadd.f32 %v3110_v15, %v3049_v6  ;;  %v5432_v46 = vmul.f32 -1.442695, %v3121_v19  ;;  %v5435_v27 = vmul.f32 -1.442695, %v3124_v42  ;;  %v3052_v12 = vrot.slane %v8397_v9, 1 }
 0x59e   : > { %v5433_v31 = vmul.f32 -1.442695, %v3122_v20  ;;  %6374 = vpow2.f32 %v5431_v2  ;;  %v3109_v1 = vcombine.high %v3093_v26, %v3093_v26  ;;  %v3176_v13 = vadd.f32 %v8427_v43, %v8371_v17 }
 0x59f   : > { %6376 = vpow2.f32 %v5432_v46  ;;  %v5434_v29 = vmul.f32 -1.442695, %v3123_v40  ;;  %v3053_v47 = vrot.slane %v8403_v11, 1  ;;  %v3111_v6 = vcombine.high %v3107_v3, %v3107_v3 }
 0x5a0   : > { %6378 = vpow2.f32 %v5433_v31  ;;  %v3125_v26 = vadd.f32 %v3107_v3, %v3051_v28  ;;  %v3126_v15 = vadd.f32 %v3109_v1, %v3052_v12  ;;  %v3178_v42 = vcombine.high %v3176_v13, %v3176_v13 }
 0x5a1   : > { %v6359_v55 = vpop.eup %6358  ;;  %6380 = vpow2.f32 %v5434_v29  ;;  %v3127_v17 = vadd.f32 %v3111_v6, %v3053_v47  ;;  %v3185_v46 = vrot.slane %v3176_v13, %v7400_v56 }
 0x5a2   : > { %v3014_v61 = vadd.f32 1.0, %v6359_v55  ;;  %v5437_v28 = vmul.f32 -1.442695, %v3126_v15 }
 0x5a3   : > { %v6361_v0 = vpop.eup %6360  ;;  %v5438_v12 = vmul.f32 -1.442695, %v3127_v17  ;;  %v3193_v1 = vcombine.high %v3185_v46, %v3185_v46  ;;  %v3246_v17 = vrot.slane %v8386_v62, 2 }
 0x5a4   : > { %v6363_v22 = vpop.eup %6362  ;;  %v3015_v4 = vadd.f32 1.0, %v6361_v0  ;;  %6382 = vrcp.f32 %v3014_v61  ;;  %v5436_v0 = vmul.f32 -1.442695, %v3125_v26 }
 0x5a5   : > { %v6365_v55 = vpop.eup %6364  ;;  %v3016_v10 = vadd.f32 1.0, %v6363_v22  ;;  %6384 = vpow2.f32 %v5435_v27  ;;  %v3192_v27 = vrot.slane %v3178_v42, %v7400_v56  ;;  %v3245_v42 = vrot.slane %v8383_v16, 2 }
 0x5a6   : > { %v6367_v31 = vpop.eup %6366  ;;  %v3017_v54 = vadd.f32 1.0, %v6365_v55  ;;  %6386 = vrcp.f32 %v3015_v4  ;;  %v3201_v55 = vrot.slane %v3185_v46, %v7400_v56 }
 0x5a7   : > { %v6369_v19 = vpop.eup %6368  ;;  %v3018_v20 = vadd.f32 1.0, %v6367_v31  ;;  %6388 = vrcp.f32 %v3016_v10  ;;  %v3194_v13 = vcombine.high %v3192_v27, %v3192_v27  ;;  %v3243_v31 = vrot.slane %v8375_v5, 2 }
 0x5a8   : > { %v6371_v2 = vpop.eup %6370  ;;  %v3019_v40 = vadd.f32 1.0, %v6369_v19  ;;  %6390 = vrcp.f32 %v3017_v54  ;;  %v3215_v54 = vrot.slane %v3193_v1, %v7400_v56  ;;  %v3208_v46 = vrot.slane %v3192_v27, %v7400_v56 }
 0x5a9   : > { %v6373_v29 = vpop.eup %6372  ;;  %v3020_v61 = vadd.f32 1.0, %v6371_v2  ;;  %6392 = vrcp.f32 %v3018_v20  ;;  %v3244_v20 = vrot.slane %v8380_v24, 2  ;;  %v3222_v5 = vrot.slane %v3194_v13, %v7400_v56 }
 0x5aa   : > { %v3021_v3 = vadd.f32 1.0, %v6373_v29  ;;  %6394 = vrcp.f32 %v3019_v40  ;;  %v3247_v29 = vrot.slane %v8389_v25, 2  ;;  %v3225_v24 = vcombine.high %v3215_v54, %v3215_v54 }
 0x5ab   : > { %6396 = vrcp.f32 %v3020_v61  ;;  %v6375_v22 = vpop.eup %6374  ;;  %v3249_v25 = vrot.slane %v8397_v9, 2 }
 0x5ac   : > { %6398 = vrcp.f32 %v3021_v3  ;;  %v6377_v47 = vpop.eup %6376  ;;  %v3152_v6 = vadd.f32 1.0, %v6375_v22  ;;  %v3223_v3 = vcombine.high %v3201_v55, %v3201_v55  ;;  %v3248_v22 = vrot.slane %v8394_v45, 2 }
 0x5ad   : > { %6400 = vpow2.f32 %v5436_v0  ;;  %v6379_v4 = vpop.eup %6378  ;;  %v3153_v10 = vadd.f32 1.0, %v6377_v47 }
 0x5ae   : > { %6402 = vpow2.f32 %v5437_v28  ;;  %v6381_v26 = vpop.eup %6380  ;;  %v3154_v15 = vadd.f32 1.0, %v6379_v4 }
 0x5af   : > { %6404 = vpow2.f32 %v5438_v12  ;;  %v3155_v2 = vadd.f32 1.0, %v6381_v26 }
 0x5b0   : > { %6406 = vrcp.f32 %v3152_v6  ;;  %v3250_v6 = vrot.slane %v8403_v11, 2 }
 0x5b1   : > { %v6383_v19 = vpop.eup %6382  ;;  %6408 = vrcp.f32 %v3153_v10  ;;  %v3224_v10 = vcombine.high %v3208_v46, %v3208_v46 }
 0x5b2   : > { %v6385_v40 = vpop.eup %6384  ;;  %v3235_v61 = vmul.f32 %v6383_v19, %v3201_v55  ;;  %6410 = vrcp.f32 %v3154_v15 }
 0x5b3   : > { %v6387_v0 = vpop.eup %6386  ;;  %v3156_v28 = vadd.f32 1.0, %v6385_v40  ;;  %6412 = vrcp.f32 %v3155_v2 }
 0x5b4   : > { %v6389_v12 = vpop.eup %6388  ;;  %v3236_v1 = vmul.f32 %v6387_v0, %v3215_v54  ;;  %v3259_v16 = vadd.f32 %v3243_v31, %v3235_v61  ;;  %v3226_v54 = vcombine.high %v3222_v5, %v3222_v5 }
 0x5b5   : > { %v6391_v62 = vpop.eup %6390  ;;  %v3237_v47 = vmul.f32 %v6389_v12, %v3223_v3 }
 0x5b6   : > { %v6393_v27 = vpop.eup %6392  ;;  %v3238_v4 = vmul.f32 %v6391_v62, %v3225_v24  ;;  %v3260_v13 = vadd.f32 %v3244_v20, %v3236_v1  ;;  %6414 = vtanh.f32 %v3259_v16 }
 0x5b7   : > { %v6395_v55 = vpop.eup %6394  ;;  %v3239_v26 = vmul.f32 %v6393_v27, %v3208_v46  ;;  %v3261_v19 = vadd.f32 %v3245_v42, %v3237_v47  ;;  %6416 = vrcp.f32 %v3156_v28 }
 0x5b8   : > { %v6397_v31 = vpop.eup %6396  ;;  %v3240_v15 = vmul.f32 %v6395_v55, %v3222_v5  ;;  %v3262_v40 = vadd.f32 %v3246_v17, %v3238_v4  ;;  %6418 = vtanh.f32 %v3260_v13 }
 0x5b9   : > { %v6399_v45 = vpop.eup %6398  ;;  %v3241_v9 = vmul.f32 %v6397_v31, %v3224_v10  ;;  %v3263_v61 = vadd.f32 %v3247_v29, %v3239_v26  ;;  %6420 = vtanh.f32 %v3261_v19 }
 0x5ba   : > { %v6401_v2 = vpop.eup %6400  ;;  %v3242_v0 = vmul.f32 %v6399_v45, %v3226_v54  ;;  %v3264_v11 = vadd.f32 %v3248_v22, %v3240_v15  ;;  %6422 = vtanh.f32 %v3262_v40 }
 0x5bb   : > { %v6403_v20 = vpop.eup %6402  ;;  %v3265_v3 = vadd.f32 %v3249_v25, %v3241_v9  ;;  %6424 = vtanh.f32 %v3263_v61  ;;  %v3157_v12 = vadd.f32 1.0, %v6401_v2 }
 0x5bc   : > { %v6405_v46 = vpop.eup %6404  ;;  %v3266_v42 = vadd.f32 %v3250_v6, %v3242_v0  ;;  %6426 = vtanh.f32 %v3264_v11  ;;  %v3158_v28 = vadd.f32 1.0, %v6403_v20 }
 0x5bd   : > { %6428 = vtanh.f32 %v3265_v3  ;;  %v3159_v5 = vadd.f32 1.0, %v6405_v46  ;;  %v6407_v17 = vpop.eup %6406 }
 0x5be   : > { %6430 = vtanh.f32 %v3266_v42  ;;  %v6409_v24 = vpop.eup %6408  ;;  %v3275_v16 = vsub.f32 1.0, %v6407_v17  ;;  %v3291_v27 = vmul.f32 %v6407_v17, %v8158_v59 }
 0x5bf   : > { %6432 = vrcp.f32 %v3157_v12  ;;  %v6411_v29 = vpop.eup %6410  ;;  %v3276_v25 = vsub.f32 1.0, %v6409_v24  ;;  %v3292_v26 = vmul.f32 %v6409_v24, %v8162_v39 }
 0x5c0   : > { %6434 = vrcp.f32 %v3158_v28  ;;  %v6413_v1 = vpop.eup %6412  ;;  %v3277_v4 = vsub.f32 1.0, %v6411_v29  ;;  %v3293_v40 = vmul.f32 %v6411_v29, %v8167_v63 }
 0x5c1   : > { %6436 = vrcp.f32 %v3159_v5  ;;  %v3278_v55 = vsub.f32 1.0, %v6413_v1  ;;  %v3294_v9 = vmul.f32 %v6413_v1, %v8169_v7 }
 0x5c3   : > { %v6415_v62 = vpop.eup %6414 }
 0x5c4   : > { %v6417_v22 = vpop.eup %6416  ;;  %v3283_v47 = vmul.f32 %v6415_v62, %v3275_v16 }
 0x5c5   : > { %v6419_v6 = vpop.eup %6418  ;;  %v3279_v54 = vsub.f32 1.0, %v6417_v22  ;;  %v3295_v0 = vmul.f32 %v6417_v22, %v8173_v8 }
 0x5c6   : > { %v6421_v13 = vpop.eup %6420  ;;  %v3284_v10 = vmul.f32 %v6419_v6, %v3276_v25  ;;  %v8448_v19 = vadd.f32 %v3291_v27, %v3283_v47 }
 0x5c7   : > { %v6423_v31 = vpop.eup %6422  ;;  %v3285_v15 = vmul.f32 %v6421_v13, %v3277_v4 }
 0x5c8   : > { %v6425_v45 = vpop.eup %6424  ;;  %v3286_v59 = vmul.f32 %v6423_v31, %v3278_v55  ;;  %v8452_v61 = vadd.f32 %v3292_v26, %v3284_v10  ;;  %3307 = vst [vmem:[%s7161_s12 + $0x4] sm:$0x1] %v8448_v19 }
 0x5c9   : > { %v6427_v39 = vpop.eup %6426  ;;  %v3287_v2 = vmul.f32 %v6425_v45, %v3279_v54  ;;  %v8457_v11 = vadd.f32 %v3293_v40, %v3285_v15  ;;  %v9270_v40 = vld [vmem:[#allocation31_spill] sm:$0xff]  ;;  %v9271_v45 = vld [vmem:[#allocation41_spill] sm:$0xff] }
 0x5ca   : > { %v6429_v20 = vpop.eup %6428  ;;  %v8459_v3 = vadd.f32 %v3294_v9, %v3286_v59  ;;  %3308 = vst [vmem:[%s7161_s12 + $0xc] sm:$0x1] %v8452_v61  ;;  %v3339_v47 = vcombine.low %v8448_v19, %v8452_v61  ;;  %v9272_v59 = vld [vmem:[#allocation33_spill] sm:$0xff]  ;;  %v9273_v9 = vld [vmem:[#allocation34_spill] sm:$0xff] }
 0x5cb   : > { %v6431_v63 = vpop.eup %6430  ;;  %v8463_v12 = vadd.f32 %v3295_v0, %v3287_v2  ;;  %3309 = vst [vmem:[%s7161_s12 + $0x14] sm:$0x1] %v8457_v11  ;;  %v9275_v2 = vld [vmem:[#allocation36_spill] sm:$0xff]  ;;  %v9276_v0 = vld [vmem:[#allocation37_spill] sm:$0xff] }
 0x5cc   : > { %v6433_v7 = vpop.eup %6432  ;;  %3310 = vst [vmem:[%s7161_s12 + $0x1c] sm:$0x1] %v8459_v3  ;;  %v3340_v29 = vcombine.low %v8457_v11, %v8459_v3 }
 0x5cd   : > { %v6435_v46 = vpop.eup %6434  ;;  %v3280_v42 = vsub.f32 1.0, %v6433_v7  ;;  %3311 = vst [vmem:[%s7161_s12 + $0x24] sm:$0x1] %v8463_v12  ;;  %v3296_v24 = vmul.f32 %v6433_v7, %v8186_v23  ;;  %v6776_v7 = vld [vmem:[#allocation6 + $0x170] sm:$0xff] }
 0x5ce   : > { %v6437_v8 = vpop.eup %6436  ;;  %v3281_v28 = vsub.f32 1.0, %v6435_v46  ;;  %v3297_v16 = vmul.f32 %v6435_v46, %v8190_v41  ;;  %v3356_v4 = vrot.slane %v3340_v29, %v7400_v56 }
 0x5cf   : > { %v3282_v5 = vsub.f32 1.0, %v6437_v8  ;;  %v3288_v17 = vmul.f32 %v6427_v39, %v3280_v42  ;;  %v3298_v22 = vmul.f32 %v6437_v8, %v8192_v21  ;;  %v3349_v21 = vrot.slane %v3339_v47, %v7400_v56  ;;  %v9274_v39 = vld [vmem:[#allocation42_spill] sm:$0xff] }
 0x5d0   : > { %v3289_v1 = vmul.f32 %v6429_v20, %v3281_v28  ;;  %v9277_v20 = vld [vmem:[#allocation43_spill] sm:$0xff] }
 0x5d1   : > { %v3290_v62 = vmul.f32 %v6431_v63, %v3282_v5  ;;  %v8476_v25 = vadd.f32 %v3296_v24, %v3288_v17  ;;  %v3371_v10 = vcombine.low %v3349_v21, %v3356_v4  ;;  %v9278_v63 = vld [vmem:[#allocation44_spill] sm:$0xff]  ;;  %v8570_v17 = vld [vmem:[%s7150_s21 + $0x5] ss:$8 sm:$0x7] }
 0x5d2   : > { %v8480_v27 = vadd.f32 %v3297_v16, %v3289_v1  ;;  %v8575_v16 = vld [vmem:[%s7150_s21 + $0x1d] ss:$8 sm:$0x7] }
 0x5d3   : > { %v8482_v6 = vadd.f32 %v3298_v22, %v3290_v62  ;;  %3312 = vst [vmem:[%s7161_s12 + $0x2c] sm:$0x1] %v8476_v25  ;;  %v3341_v23 = vcombine.low %v8463_v12, %v8476_v25  ;;  %v3379_v31 = vrot.slane %v3371_v10, %v7400_v56  ;;  %v8578_v62 = vld [vmem:[%s7150_s21 + $0x35] ss:$8 sm:$0x7] }
 0x5d4   : > { %3313 = vst [vmem:[%s7161_s12 + $0x34] sm:$0x1] %v8480_v27  ;;  %v8581_v22 = vld [vmem:[%s7150_s21 + $0x4d] ss:$8 sm:$0x7] }
 0x5d5   : > { %3314 = vst [vmem:[%s7161_s12 + $0x3c] sm:$0x1] %v8482_v6  ;;  %v3342_v41 = vcombine.low %v8480_v27, %v8482_v6  ;;  %v3363_v13 = vrot.slane %v3341_v23, %v7400_v56  ;;  %v8584_v47 = vld [vmem:[%s7150_s21 + $0x65] ss:$8 sm:$0x7] }
 0x5d6   : > { %v8592_v10 = vld [vmem:[%s7150_s21 + $0x95] ss:$8 sm:$0x7] }
 0x5d7   : > { %v3370_v55 = vrot.slane %v3342_v41, %v7400_v56 }
 0x5d9   : > { %v3372_v26 = vcombine.low %v3363_v13, %v3370_v55  ;;  %v8589_v55 = vld [vmem:[%s7150_s21 + $0x7d] ss:$8 sm:$0x7] }
 0x5db   : > { %v3386_v54 = vrot.slane %v3372_v26, %v7400_v56 }
 0x5dd   : > { %v3387_v15 = vcombine.low %v3379_v31, %v3386_v54 }
 0x5df   : > { %3454 = vmatmul.mubr.f32.vlgmr.msra.gmra.mxu0 %v3387_v15  ;;  %5861 = vmatmul.mubr.f32.vlgmr.msra.gmra.mxu1 %v3387_v15 }
 0x5e0   : > { %3996 = vmatpush1.msra.mxu0 %v8210_v32  ;;  %5864 = vmatpush3.msra.mxu1 %v8213_v50  ;;  %v9251_v32 = vld [vmem:[#allocation17_spill] sm:$0xff]  ;;  %v9252_v50 = vld [vmem:[#allocation18_spill] sm:$0xff] }
 0x5e1   : > { %3997 = vmatprep.subr.mxu0 %v8216_v14  ;;  %5865 = vmatprep.subr.mxu1 %v9139_v35  ;;  %v9253_v14 = vld [vmem:[#allocation29_spill] sm:$0xff] }
 0x5e2   : > { %3998 = vmatpush1.msra.mxu0 %v8220_v18  ;;  %5866 = vmatpush3.msra.mxu1 %v8223_v37  ;;  %v9254_v18 = vld [vmem:[#allocation19_spill] sm:$0xff]  ;;  %v9255_v37 = vld [vmem:[#allocation20_spill] sm:$0xff] }
 0x5e3   : > { %3999 = vmatprep.subr.mxu0 %v8226_v48  ;;  %5867 = vmatprep.subr.mxu1 %v9139_v35  ;;  %v9256_v48 = vld [vmem:[#allocation32_spill] sm:$0xff] }
 0x5e4   : > { %4000 = vmatpush1.msra.mxu0 %v8230_v51  ;;  %5868 = vmatpush3.msra.mxu1 %v8233_v30  ;;  %v9257_v51 = vld [vmem:[#allocation21_spill] sm:$0xff]  ;;  %v9258_v30 = vld [vmem:[#allocation22_spill] sm:$0xff] }
 0x5e5   : > { %4001 = vmatprep.subr.mxu0 %v8236_v53  ;;  %5869 = vmatprep.subr.mxu1 %v9139_v35  ;;  %v9259_v53 = vld [vmem:[#allocation35_spill] sm:$0xff] }
 0x5e6   : > { %4002 = vmatpush1.msra.mxu0 %v8240_v57  ;;  %5870 = vmatpush3.msra.mxu1 %v8243_v58  ;;  %v9260_v57 = vld [vmem:[#allocation23_spill] sm:$0xff]  ;;  %v9261_v58 = vld [vmem:[#allocation24_spill] sm:$0xff] }
 0x5e7   : > { %4003 = vmatprep.subr.mxu0 %v8246_v38  ;;  %5871 = vmatprep.subr.mxu1 %v9139_v35  ;;  %v9262_v38 = vld [vmem:[#allocation38_spill] sm:$0xff] }
 0x5e8   : > { %4004 = vmatpush1.msra.mxu0 %v8250_v52  ;;  %5872 = vmatpush3.msra.mxu1 %v8253_v36  ;;  %v9263_v52 = vld [vmem:[#allocation25_spill] sm:$0xff]  ;;  %v9264_v36 = vld [vmem:[#allocation26_spill] sm:$0xff] }
 0x5e9   : > { %4005 = vmatprep.subr.mxu0 %v8256_v49  ;;  %5873 = vmatprep.subr.mxu1 %v9139_v35  ;;  %v9265_v49 = vld [vmem:[#allocation39_spill] sm:$0xff] }
 0x5ea   : > { %4006 = vmatpush1.msra.mxu0 %v8260_v33  ;;  %5874 = vmatpush3.msra.mxu1 %v8263_v34  ;;  %v9266_v33 = vld [vmem:[#allocation27_spill] sm:$0xff]  ;;  %v9267_v34 = vld [vmem:[#allocation28_spill] sm:$0xff] }
 0x5eb   : > { %4007 = vmatprep.subr.mxu0 %v8266_v60  ;;  %5875 = vmatprep.subr.mxu1 %v9139_v35  ;;  %v9268_v60 = vld [vmem:[#allocation40_spill] sm:$0xff] }
 0x5ec   : > { %4008 = vmatpush1.msra.mxu0 %v8270_v44  ;;  %5876 = vmatpush3.msra.mxu1 %v9251_v32  ;;  %v9269_v44 = vld [vmem:[#allocation30_spill] sm:$0xff] }
 0x5ed   : > { %4009 = vmatprep.subr.mxu0 %v9252_v50  ;;  %5877 = vmatprep.subr.mxu1 %v9139_v35  ;;  %v8598_v50 = vld [vmem:[%s7150_s21 + $0xad] ss:$8 sm:$0x7] }
 0x5ee   : > { %4010 = vmatpush1.msra.mxu0 %v9253_v14  ;;  %5878 = vmatpush3.msra.mxu1 %v9254_v18 }
 0x5ef   : > { %4011 = vmatprep.subr.mxu0 %v9255_v37  ;;  %5879 = vmatprep.subr.mxu1 %v9139_v35 }
 0x5f0   : > { %4012 = vmatpush1.msra.mxu0 %v9256_v48  ;;  %5880 = vmatpush3.msra.mxu1 %v9257_v51 }
 0x5f1   : > { %4013 = vmatprep.subr.mxu0 %v9258_v30  ;;  %5881 = vmatprep.subr.mxu1 %v9139_v35 }
 0x5f2   : > { %4014 = vmatpush1.msra.mxu0 %v9259_v53  ;;  %5882 = vmatpush3.msra.mxu1 %v9260_v57 }
 0x5f3   : > { %4015 = vmatprep.subr.mxu0 %v9261_v58  ;;  %5883 = vmatprep.subr.mxu1 %v9139_v35 }
 0x5f4   : > { %4016 = vmatpush1.msra.mxu0 %v9262_v38  ;;  %5884 = vmatpush3.msra.mxu1 %v9263_v52 }
 0x5f5   : > { %4017 = vmatprep.subr.mxu0 %v9264_v36  ;;  %5885 = vmatprep.subr.mxu1 %v9139_v35 }
 0x5f6   : > { %4018 = vmatpush1.msra.mxu0 %v9265_v49  ;;  %5886 = vmatpush3.msra.mxu1 %v9266_v33 }
 0x5f7   : > { %4019 = vmatprep.subr.mxu0 %v9267_v34  ;;  %5887 = vmatprep.subr.mxu1 %v9139_v35 }
 0x5f8   : > { %4020 = vmatpush1.msra.mxu0 %v9268_v60  ;;  %5888 = vmatpush3.msra.mxu1 %v9269_v44  ;;  %v3652_v44 = vrot.slane %v8570_v17, 1 }
 0x5f9   : > { %4021 = vmatprep.subr.mxu0 %v9270_v40  ;;  %5889 = vmatprep.subr.mxu1 %v9139_v35 }
 0x5fa   : > { %4022 = vmatpush1.msra.mxu0 %v9271_v45  ;;  %5890 = vmatpush3.msra.mxu1 %v9272_v59  ;;  %v3653_v59 = vrot.slane %v8575_v16, 1 }
 0x5fb   : > { %4023 = vmatprep.subr.mxu0 %v9273_v9  ;;  %5891 = vmatprep.subr.mxu1 %v9139_v35  ;;  %v3654_v9 = vrot.slane %v8578_v62, 1 }
 0x5fc   : > { %4024 = vmatpush1.msra.mxu0 %v9274_v39  ;;  %5892 = vmatpush3.msra.mxu1 %v9275_v2  ;;  %v3656_v39 = vrot.slane %v8584_v47, 1 }
 0x5fd   : > { %4025 = vmatprep.subr.mxu0 %v9276_v0  ;;  %5893 = vmatprep.subr.mxu1 %v9139_v35 }
 0x5fe   : > { %4026 = vmatpush1.msra.mxu0 %v9277_v20  ;;  %4059 = vmatprep.mubr.f32.mxu0 %v9139_v35  ;;  %v3655_v20 = vrot.slane %v8581_v22, 1 }
 0x5ff   : > { %5894 = vmatpush3.msra.mxu1 %v9278_v63  ;;  %5895 = vmatprep.mubr.msk.f32.mxu1 %vm6988_vm0, %v9139_v35 }
 0x600   : > { %4601 = vmatprep.subr.mxu0 %v6776_v7  ;;  %5898 = vmatprep.subr.mxu1 %v9139_v35 }
 0x69f   : > { %v3455_v46 = vpop.f32.mrf.mxu0  ;;  %v8566_v42 = vpop.f32.mrf.mxu1 }
 0x6a0   : > { %v3531_v8 = vcombine.high %v3455_v46, %v3455_v46  ;;  %v3538_v28 = vrot.slane %v3455_v46, %v7400_v56 }
 0x6a1   : > { %v5862_v5 = vpop.f32.mrf.mxu1  ;;  %v3457_v13 = vpop.f32.mrf.mxu0 }
 0x6a2   : > { %v3545_v24 = vrot.slane %v3531_v8, %v7400_v56  ;;  %v3546_v29 = vcombine.high %v3538_v28, %v3538_v28  ;;  %v3554_v1 = vrot.slane %v3538_v28, %v7400_v56  ;;  %v3669_v48 = vcombine.high %v3457_v13, %v3457_v13 }
 0x6a3   : > { %v3676_v33 = vrot.slane %v3457_v13, %v7400_v56 }
 0x6a4   : > { %v3547_v23 = vcombine.high %v3545_v24, %v3545_v24  ;;  %v3561_v4 = vrot.slane %v3545_v24, %v7400_v56  ;;  %v3568_v41 = vrot.slane %v3546_v29, %v7400_v56  ;;  %v3576_v21 = vcombine.high %v3554_v1, %v3554_v1 }
 0x6a5   : > { %v3588_v26 = vadd.f32 %v8570_v17, %v3554_v1  ;;  %v3683_v40 = vrot.slane %v3669_v48, %v7400_v56  ;;  %v3684_v2 = vcombine.high %v3676_v33, %v3676_v33  ;;  %v3692_v0 = vrot.slane %v3676_v33, %v7400_v56 }
 0x6a6   : > { %v3575_v31 = vrot.slane %v3547_v23, %v7400_v56  ;;  %v3577_v54 = vcombine.high %v3561_v4, %v3561_v4  ;;  %v3578_v15 = vcombine.high %v3568_v41, %v3568_v41  ;;  %v3589_v32 = vadd.f32 %v8575_v16, %v3568_v41 }
 0x6a7   : > { %v3590_v14 = vadd.f32 %v8578_v62, %v3576_v21  ;;  %v3592_v18 = vadd.f32 %v8584_v47, %v3561_v4  ;;  %v5447_v37 = vmul.f32 -1.442695, %v3588_v26  ;;  %v3699_v63 = vrot.slane %v3683_v40, %v7400_v56 }
 0x6a8   : > { %v3579_v51 = vcombine.high %v3575_v31, %v3575_v31  ;;  %v3591_v30 = vadd.f32 %v8581_v22, %v3578_v15  ;;  %v3593_v53 = vadd.f32 %v8589_v55, %v3575_v31  ;;  %v3594_v57 = vadd.f32 %v8592_v10, %v3577_v54 }
 0x6a9   : > { %6438 = vpow2.f32 %v5447_v37  ;;  %v5448_v58 = vmul.f32 -1.442695, %v3589_v32  ;;  %v5449_v38 = vmul.f32 -1.442695, %v3590_v14  ;;  %v5451_v49 = vmul.f32 -1.442695, %v3592_v18 }
 0x6aa   : > { %v3595_v52 = vadd.f32 %v8598_v50, %v3579_v51  ;;  %v5450_v36 = vmul.f32 -1.442695, %v3591_v30  ;;  %v5452_v34 = vmul.f32 -1.442695, %v3593_v53  ;;  %v5453_v60 = vmul.f32 -1.442695, %v3594_v57 }
 0x6ab   : > { %6440 = vpow2.f32 %v5448_v58  ;;  %v3685_v7 = vcombine.high %v3683_v40, %v3683_v40  ;;  %v3706_v46 = vrot.slane %v3684_v2, %v7400_v56  ;;  %v3714_v8 = vcombine.high %v3692_v0, %v3692_v0 }
 0x6ac   : > { %6442 = vpow2.f32 %v5449_v38  ;;  %v5454_v45 = vmul.f32 -1.442695, %v3595_v52  ;;  %v3726_v28 = vadd.f32 %v3692_v0, %v3652_v44  ;;  %v3730_v1 = vadd.f32 %v3699_v63, %v3656_v39 }
 0x6ad   : > { %6444 = vpow2.f32 %v5450_v36  ;;  %v3716_v5 = vcombine.high %v3706_v46, %v3706_v46  ;;  %v3727_v24 = vadd.f32 %v3706_v46, %v3653_v59  ;;  %v3728_v29 = vadd.f32 %v3714_v8, %v3654_v9 }
 0x6ae   : > { %6446 = vpow2.f32 %v5451_v49  ;;  %v5455_v23 = vmul.f32 -1.442695, %v3726_v28  ;;  %v3713_v4 = vrot.slane %v3685_v7, %v7400_v56  ;;  %v3657_v31 = vrot.slane %v8589_v55, 1 }
 0x6af   : > { %6448 = vpow2.f32 %v5452_v34  ;;  %v3729_v41 = vadd.f32 %v3716_v5, %v3655_v20  ;;  %v5456_v21 = vmul.f32 -1.442695, %v3727_v24  ;;  %v5457_v13 = vmul.f32 -1.442695, %v3728_v29 }
 0x6b0   : > { %6450 = vpow2.f32 %v5453_v60  ;;  %v5459_v15 = vmul.f32 -1.442695, %v3730_v1  ;;  %v3658_v14 = vrot.slane %v8592_v10, 1  ;;  %v3715_v18 = vcombine.high %v3699_v63, %v3699_v63 }
 0x6b1   : > { %6452 = vpow2.f32 %v5454_v45  ;;  %v5458_v54 = vmul.f32 -1.442695, %v3729_v41  ;;  %v3782_v48 = vadd.f32 %v8427_v43, %v8566_v42  ;;  %v3659_v51 = vrot.slane %v8598_v50, 1 }
 0x6b2   : > { %6454 = vpow2.f32 %v5455_v23  ;;  %v3717_v30 = vcombine.high %v3713_v4, %v3713_v4  ;;  %v3731_v52 = vadd.f32 %v3713_v4, %v3657_v31  ;;  %v3732_v33 = vadd.f32 %v3715_v18, %v3658_v14 }
 0x6b3   : > { %6456 = vpow2.f32 %v5456_v21  ;;  %v3784_v44 = vcombine.high %v3782_v48, %v3782_v48  ;;  %v3791_v45 = vrot.slane %v3782_v48, %v7400_v56  ;;  %v3849_v4 = vrot.slane %v8570_v17, 2 }
 0x6b4   : > { %6458 = vpow2.f32 %v5457_v13  ;;  %v3733_v43 = vadd.f32 %v3717_v30, %v3659_v51  ;;  %v5460_v39 = vmul.f32 -1.442695, %v3731_v52  ;;  %v5461_v0 = vmul.f32 -1.442695, %v3732_v33 }
 0x6b5   : > { %6460 = vpow2.f32 %v5458_v54  ;;  %v3798_v20 = vrot.slane %v3784_v44, %v7400_v56  ;;  %v3799_v7 = vcombine.high %v3791_v45, %v3791_v45  ;;  %v3807_v29 = vrot.slane %v3791_v45, %v7400_v56 }
 0x6b6   : > { %v6439_v26 = vpop.eup %6438  ;;  %v5462_v63 = vmul.f32 -1.442695, %v3733_v43  ;;  %v3851_v31 = vrot.slane %v8578_v62, 2  ;;  %v3852_v54 = vrot.slane %v8581_v22, 2  ;;  %v3853_v14 = vrot.slane %v8584_v47, 2 }
 0x6b7   : > { %v3620_v32 = vadd.f32 1.0, %v6439_v26  ;;  %v3800_v24 = vcombine.high %v3798_v20, %v3798_v20  ;;  %v3821_v41 = vrot.slane %v3799_v7, %v7400_v56  ;;  %v3850_v26 = vrot.slane %v8575_v16, 2 }
 0x6b8   : > { %v6441_v37 = vpop.eup %6440  ;;  %v3814_v18 = vrot.slane %v3798_v20, %v7400_v56  ;;  %v3829_v51 = vcombine.high %v3807_v29, %v3807_v29  ;;  %v3855_v47 = vrot.slane %v8592_v10, 2 }
 0x6b9   : > { %v6443_v53 = vpop.eup %6442  ;;  %v3621_v57 = vadd.f32 1.0, %v6441_v37  ;;  %6462 = vrcp.f32 %v3620_v32  ;;  %v3828_v17 = vrot.slane %v3800_v24, %v7400_v56  ;;  %v3831_v16 = vcombine.high %v3821_v41, %v3821_v41 }
 0x6ba   : > { %v6445_v58 = vpop.eup %6444  ;;  %v3622_v38 = vadd.f32 1.0, %v6443_v53  ;;  %6464 = vpow2.f32 %v5459_v15 }
 0x6bb   : > { %v6447_v36 = vpop.eup %6446  ;;  %v3623_v49 = vadd.f32 1.0, %v6445_v58  ;;  %6466 = vrcp.f32 %v3621_v57  ;;  %v3854_v58 = vrot.slane %v8589_v55, 2 }
 0x6bc   : > { %v6449_v34 = vpop.eup %6448  ;;  %v3624_v60 = vadd.f32 1.0, %v6447_v36  ;;  %6468 = vrcp.f32 %v3622_v38  ;;  %v3856_v36 = vrot.slane %v8598_v50, 2 }
 0x6bd   : > { %v6451_v42 = vpop.eup %6450  ;;  %v3625_v40 = vadd.f32 1.0, %v6449_v34  ;;  %6470 = vrcp.f32 %v3623_v49 }
 0x6be   : > { %v6453_v59 = vpop.eup %6452  ;;  %v3626_v9 = vadd.f32 1.0, %v6451_v42  ;;  %6472 = vrcp.f32 %v3624_v60  ;;  %v3830_v60 = vcombine.high %v3814_v18, %v3814_v18 }
 0x6bf   : > { %v3627_v2 = vadd.f32 1.0, %v6453_v59  ;;  %6474 = vrcp.f32 %v3625_v40  ;;  %v6455_v46 = vpop.eup %6454  ;;  %v3832_v40 = vcombine.high %v3828_v17, %v3828_v17 }
 0x6c0   : > { %6476 = vrcp.f32 %v3626_v9  ;;  %v6457_v8 = vpop.eup %6456  ;;  %v3758_v28 = vadd.f32 1.0, %v6455_v46 }
 0x6c1   : > { %6478 = vrcp.f32 %v3627_v2  ;;  %v6459_v5 = vpop.eup %6458  ;;  %v3759_v1 = vadd.f32 1.0, %v6457_v8 }
 0x6c2   : > { %6480 = vpow2.f32 %v5460_v39  ;;  %v6461_v23 = vpop.eup %6460  ;;  %v3760_v21 = vadd.f32 1.0, %v6459_v5 }
 0x6c3   : > { %6482 = vpow2.f32 %v5461_v0  ;;  %v3761_v15 = vadd.f32 1.0, %v6461_v23 }
 0x6c4   : > { %6484 = vpow2.f32 %v5462_v63 }
 0x6c5   : > { %6486 = vrcp.f32 %v3758_v28 }
 0x6c6   : > { %v6463_v13 = vpop.eup %6462  ;;  %6488 = vrcp.f32 %v3759_v1 }
 0x6c7   : > { %v6465_v32 = vpop.eup %6464  ;;  %v3841_v37 = vmul.f32 %v6463_v13, %v3807_v29  ;;  %6490 = vrcp.f32 %v3760_v21 }
 0x6c8   : > { %v6467_v48 = vpop.eup %6466  ;;  %v3762_v30 = vadd.f32 1.0, %v6465_v32  ;;  %6492 = vrcp.f32 %v3761_v15 }
 0x6c9   : > { %v6469_v53 = vpop.eup %6468  ;;  %v3842_v57 = vmul.f32 %v6467_v48, %v3821_v41  ;;  %v3865_v62 = vadd.f32 %v3849_v4, %v3841_v37 }
 0x6ca   : > { %v6471_v22 = vpop.eup %6470  ;;  %v3843_v38 = vmul.f32 %v6469_v53, %v3829_v51 }
 0x6cb   : > { %v6473_v52 = vpop.eup %6472  ;;  %v3844_v49 = vmul.f32 %v6471_v22, %v3831_v16  ;;  %v3866_v33 = vadd.f32 %v3850_v26, %v3842_v57  ;;  %6494 = vtanh.f32 %v3865_v62 }
 0x6cc   : > { %v6475_v34 = vpop.eup %6474  ;;  %v3845_v44 = vmul.f32 %v6473_v52, %v3814_v18  ;;  %v3867_v43 = vadd.f32 %v3851_v31, %v3843_v38  ;;  %6496 = vrcp.f32 %v3762_v30 }
 0x6cd   : > { %v6477_v42 = vpop.eup %6476  ;;  %v3846_v45 = vmul.f32 %v6475_v34, %v3828_v17  ;;  %v3868_v59 = vadd.f32 %v3852_v54, %v3844_v49  ;;  %6498 = vtanh.f32 %v3866_v33 }
 0x6ce   : > { %v6479_v55 = vpop.eup %6478  ;;  %v3847_v10 = vmul.f32 %v6477_v42, %v3830_v60  ;;  %v3869_v9 = vadd.f32 %v3853_v14, %v3845_v44  ;;  %6500 = vtanh.f32 %v3867_v43 }
 0x6cf   : > { %v6481_v39 = vpop.eup %6480  ;;  %v3848_v2 = vmul.f32 %v6479_v55, %v3832_v40  ;;  %v3870_v50 = vadd.f32 %v3854_v58, %v3846_v45  ;;  %6502 = vtanh.f32 %v3868_v59 }
 0x6d0   : > { %v6483_v0 = vpop.eup %6482  ;;  %v3871_v20 = vadd.f32 %v3855_v47, %v3847_v10  ;;  %6504 = vtanh.f32 %v3869_v9  ;;  %v3763_v63 = vadd.f32 1.0, %v6481_v39 }
 0x6d1   : > { %v6485_v7 = vpop.eup %6484  ;;  %v3872_v46 = vadd.f32 %v3856_v36, %v3848_v2  ;;  %6506 = vtanh.f32 %v3870_v50  ;;  %v3764_v8 = vadd.f32 1.0, %v6483_v0 }
 0x6d2   : > { %6508 = vtanh.f32 %v3871_v20  ;;  %v3765_v28 = vadd.f32 1.0, %v6485_v7  ;;  %v6487_v5 = vpop.eup %6486 }
 0x6d3   : > { %6510 = vtanh.f32 %v3872_v46  ;;  %v6489_v24 = vpop.eup %6488  ;;  %v3881_v23 = vsub.f32 1.0, %v6487_v5  ;;  %v3897_v26 = vmul.f32 %v6487_v5, %v8448_v19  ;;  %v6778_v5 = vld [vmem:[#allocation6 + $0x178] sm:$0xff] }
 0x6d4   : > { %6512 = vrcp.f32 %v3763_v63  ;;  %v6491_v29 = vpop.eup %6490  ;;  %v3882_v21 = vsub.f32 1.0, %v6489_v24  ;;  %v3898_v18 = vmul.f32 %v6489_v24, %v8452_v61  ;;  %v6779_v24 = vld [vmem:[#allocation6 + $0x158] sm:$0xff] }
 0x6d5   : > { %6514 = vrcp.f32 %v3764_v8  ;;  %v6493_v1 = vpop.eup %6492  ;;  %v3883_v54 = vsub.f32 1.0, %v6491_v29  ;;  %v3899_v30 = vmul.f32 %v6491_v29, %v8457_v11  ;;  %v6780_v29 = vld [vmem:[#allocation6 + $0x150] sm:$0xff] }
 0x6d6   : > { %6516 = vrcp.f32 %v3765_v28  ;;  %v3884_v32 = vsub.f32 1.0, %v6493_v1  ;;  %v3900_v16 = vmul.f32 %v6493_v1, %v8459_v3  ;;  %v6777_v28 = vld [vmem:[#allocation6 + $0x168] sm:$0xff]  ;;  %v6781_v1 = vld [vmem:[#allocation6 + $0x160] sm:$0xff] }
 0x6d8   : > { %v6495_v4 = vpop.eup %6494 }
 0x6d9   : > { %v6497_v41 = vpop.eup %6496  ;;  %v3889_v13 = vmul.f32 %v6495_v4, %v3881_v23  ;;  %v6782_v23 = vld [vmem:[#allocation6 + $0x140] sm:$0xff]  ;;  %v6783_v4 = vld [vmem:[#allocation6 + $0x138] sm:$0xff] }
 0x6da   : > { %v6499_v31 = vpop.eup %6498  ;;  %v3885_v17 = vsub.f32 1.0, %v6497_v41  ;;  %v3901_v22 = vmul.f32 %v6497_v41, %v8463_v12  ;;  %v6784_v41 = vld [vmem:[#allocation6 + $0x148] sm:$0xff] }
 0x6db   : > { %v6501_v15 = vpop.eup %6500  ;;  %v3890_v14 = vmul.f32 %v6499_v31, %v3882_v21  ;;  %v8638_v37 = vadd.f32 %v3897_v26, %v3889_v13  ;;  %v6785_v21 = vld [vmem:[#allocation6 + $0x128] sm:$0xff]  ;;  %v6786_v13 = vld [vmem:[#allocation6 + $0x120] sm:$0xff]  ;;  %v6787_v26 = vld [vmem:[#allocation6 + $0x130] sm:$0xff] }
 0x6dc   : > { %v6503_v48 = vpop.eup %6502  ;;  %v3891_v51 = vmul.f32 %v6501_v15, %v3883_v54  ;;  %v6788_v31 = vld [vmem:[#allocation6 + $0x110] sm:$0xff]  ;;  %v6789_v54 = vld [vmem:[#allocation6 + $0x108] sm:$0xff]  ;;  %v6790_v15 = vld [vmem:[#allocation6 + $0x118] sm:$0xff] }
 0x6dd   : > { %v6505_v53 = vpop.eup %6504  ;;  %v3892_v19 = vmul.f32 %v6503_v48, %v3884_v32  ;;  %v8642_v57 = vadd.f32 %v3898_v18, %v3890_v14  ;;  %3913 = vst [vmem:[%s7161_s12 + $0x5] sm:$0x1] %v8638_v37  ;;  %v6791_v32 = vld [vmem:[#allocation6 + $0xf8] sm:$0xff]  ;;  %v6792_v14 = vld [vmem:[#allocation6 + $0xf0] sm:$0xff]  ;;  %v6793_v18 = vld [vmem:[#allocation6 + $0x100] sm:$0xff] }
 0x6de   : > { %v6507_v61 = vpop.eup %6506  ;;  %v3893_v62 = vmul.f32 %v6505_v53, %v3885_v17  ;;  %v8647_v58 = vadd.f32 %v3899_v30, %v3891_v51  ;;  %v6794_v48 = vld [vmem:[#allocation6 + $0xe0] sm:$0xff]  ;;  %v6795_v17 = vld [vmem:[#allocation6 + $0xd8] sm:$0xff]  ;;  %v6796_v51 = vld [vmem:[#allocation6 + $0xe8] sm:$0xff] }
 0x6df   : > { %v6509_v47 = vpop.eup %6508  ;;  %v8649_v38 = vadd.f32 %v3900_v16, %v3892_v19  ;;  %3914 = vst [vmem:[%s7161_s12 + $0xd] sm:$0x1] %v8642_v57  ;;  %v3945_v10 = vcombine.low %v8638_v37, %v8642_v57  ;;  %v6797_v30 = vld [vmem:[#allocation6 + $0xc8] sm:$0xff]  ;;  %v6798_v53 = vld [vmem:[#allocation6 + $0xc0] sm:$0xff]  ;;  %v6799_v19 = vld [vmem:[#allocation6 + $0xd0] sm:$0xff] }
 0x6e0   : > { %v6511_v11 = vpop.eup %6510  ;;  %v8653_v52 = vadd.f32 %v3901_v22, %v3893_v62  ;;  %3915 = vst [vmem:[%s7161_s12 + $0x15] sm:$0x1] %v8647_v58  ;;  %v6800_v16 = vld [vmem:[#allocation6 + $0xb0] sm:$0xff]  ;;  %v6802_v62 = vld [vmem:[#allocation6 + $0xb8] sm:$0xff] }
 0x6e1   : > { %v6513_v3 = vpop.eup %6512  ;;  %3916 = vst [vmem:[%s7161_s12 + $0x1d] sm:$0x1] %v8649_v38  ;;  %v3946_v43 = vcombine.low %v8647_v58, %v8649_v38  ;;  %v6803_v22 = vld [vmem:[#allocation6 + $0x98] sm:$0xff] }
 0x6e2   : > { %v6515_v36 = vpop.eup %6514  ;;  %v3886_v49 = vsub.f32 1.0, %v6513_v3  ;;  %3917 = vst [vmem:[%s7161_s12 + $0x25] sm:$0x1] %v8653_v52  ;;  %v3902_v44 = vmul.f32 %v6513_v3, %v8476_v25  ;;  %v6806_v3 = vld [vmem:[#allocation6 + $0x80] sm:$0xff] }
 0x6e3   : > { %v6517_v12 = vpop.eup %6516  ;;  %v3887_v33 = vsub.f32 1.0, %v6515_v36  ;;  %v3903_v40 = vmul.f32 %v6515_v36, %v8480_v27  ;;  %v3962_v2 = vrot.slane %v3946_v43, %v7400_v56  ;;  %v6807_v36 = vld [vmem:[#allocation6 + $0x78] sm:$0xff] }
 0x6e4   : > { %v3888_v34 = vsub.f32 1.0, %v6517_v12  ;;  %v3894_v60 = vmul.f32 %v6507_v61, %v3886_v49  ;;  %v3904_v59 = vmul.f32 %v6517_v12, %v8482_v6  ;;  %v3955_v6 = vrot.slane %v3945_v10, %v7400_v56  ;;  %v6801_v61 = vld [vmem:[#allocation6 + $0xa8] sm:$0xff]  ;;  %v6814_v43 = vld [vmem:[#allocation6 + $0x58] sm:$0xff] }
 0x6e5   : > { %v3895_v42 = vmul.f32 %v6509_v47, %v3887_v33  ;;  %v6804_v47 = vld [vmem:[#allocation6 + $0x90] sm:$0xff]  ;;  %v6808_v49 = vld [vmem:[#allocation6 + $0x88] sm:$0xff]  ;;  %v6810_v33 = vld [vmem:[#allocation6 + $0x60] sm:$0xff] }
 0x6e6   : > { %v3896_v45 = vmul.f32 %v6511_v11, %v3888_v34  ;;  %v8666_v55 = vadd.f32 %v3902_v44, %v3894_v60  ;;  %v3977_v20 = vcombine.low %v3955_v6, %v3962_v2  ;;  %v6805_v11 = vld [vmem:[#allocation6 + $0xa0] sm:$0xff]  ;;  %v6809_v12 = vld [vmem:[#allocation6 + $0x68] sm:$0xff]  ;;  %v6811_v34 = vld [vmem:[#allocation6 + $0x70] sm:$0xff] }
 0x6e7   : > { %v8670_v9 = vadd.f32 %v3903_v40, %v3895_v42  ;;  %v6812_v60 = vld [vmem:[#allocation6 + $0x50] sm:$0xff]  ;;  %v6813_v44 = vld [vmem:[#allocation6 + $0x48] sm:$0xff]  ;;  %v6815_v42 = vld [vmem:[#allocation6 + $0x38] sm:$0xff] }
 0x6e8   : > { %v8672_v39 = vadd.f32 %v3904_v59, %v3896_v45  ;;  %3918 = vst [vmem:[%s7161_s12 + $0x2d] sm:$0x1] %v8666_v55  ;;  %v3947_v25 = vcombine.low %v8653_v52, %v8666_v55  ;;  %v3985_v7 = vrot.slane %v3977_v20, %v7400_v56  ;;  %v6816_v40 = vld [vmem:[#allocation6 + $0x30] sm:$0xff]  ;;  %v6817_v45 = vld [vmem:[#allocation6 + $0x40] sm:$0xff]  ;;  %v6819_v10 = vld [vmem:[#allocation6 + $0x18] sm:$0xff] }
 0x6e9   : > { %3919 = vst [vmem:[%s7161_s12 + $0x35] sm:$0x1] %v8670_v9  ;;  %v6818_v59 = vld [vmem:[#allocation6 + $0x20] sm:$0xff]  ;;  %v6821_v2 = vld [vmem:[#allocation6 + $0x8] sm:$0xff]  ;;  %v6823_v6 = vld [vmem:[#allocation6 + $0x10] sm:$0xff] }
 0x6ea   : > { %3920 = vst [vmem:[%s7161_s12 + $0x3d] sm:$0x1] %v8672_v39  ;;  %v3948_v27 = vcombine.low %v8670_v9, %v8672_v39  ;;  %v3969_v50 = vrot.slane %v3947_v25, %v7400_v56  ;;  %v6820_v25 = vld [vmem:[#allocation6 + $0x28] sm:$0xff] }
 0x6ec   : > { %v3976_v0 = vrot.slane %v3948_v27, %v7400_v56  ;;  %v6822_v27 = vld [vmem:[#allocation6] sm:$0xff] }
 0x6ee   : > { %v3978_v63 = vcombine.low %v3969_v50, %v3976_v0 }
 0x6f0   : > { %v3992_v46 = vrot.slane %v3978_v63, %v7400_v56 }
 0x6f2   : > { %v3993_v8 = vcombine.low %v3985_v7, %v3992_v46  ;;  %v8712_v46 = vld [vmem:[%s7150_s21 + $0x6] ss:$8 sm:$0x7] }
 0x6f4   : > { %4060 = vmatmul.mubr.f32.vlgmr.msra.gmra.mxu0 %v3993_v8  ;;  %5896 = vmatmul.mubr.f32.vlgmr.msra.gmra.mxu1 %v3993_v8 }
 0x6f5   : > { %4602 = vmatpush1.msra.mxu0 %v6777_v28  ;;  %5899 = vmatpush3.msra.mxu1 %v6778_v5 }
 0x6f6   : > { %4603 = vmatprep.subr.mxu0 %v6779_v24  ;;  %5900 = vmatprep.subr.mxu1 %v9139_v35  ;;  %v8717_v24 = vld [vmem:[%s7150_s21 + $0x1e] ss:$8 sm:$0x7] }
 0x6f7   : > { %4604 = vmatpush1.msra.mxu0 %v6780_v29  ;;  %5901 = vmatpush3.msra.mxu1 %v6781_v1  ;;  %v8723_v29 = vld [vmem:[%s7150_s21 + $0x4e] ss:$8 sm:$0x7] }
 0x6f8   : > { %4605 = vmatprep.subr.mxu0 %v6782_v23  ;;  %5902 = vmatprep.subr.mxu1 %v9139_v35  ;;  %v8726_v1 = vld [vmem:[%s7150_s21 + $0x66] ss:$8 sm:$0x7] }
 0x6f9   : > { %4606 = vmatpush1.msra.mxu0 %v6783_v4  ;;  %5903 = vmatpush3.msra.mxu1 %v6784_v41 }
 0x6fa   : > { %4607 = vmatprep.subr.mxu0 %v6785_v21  ;;  %5904 = vmatprep.subr.mxu1 %v9139_v35 }
 0x6fb   : > { %4608 = vmatpush1.msra.mxu0 %v6786_v13  ;;  %5905 = vmatpush3.msra.mxu1 %v6787_v26  ;;  %v8731_v26 = vld [vmem:[%s7150_s21 + $0x7e] ss:$8 sm:$0x7] }
 0x6fc   : > { %4609 = vmatprep.subr.mxu0 %v6788_v31  ;;  %5906 = vmatprep.subr.mxu1 %v9139_v35  ;;  %v8734_v31 = vld [vmem:[%s7150_s21 + $0x96] ss:$8 sm:$0x7] }
 0x6fd   : > { %4610 = vmatpush1.msra.mxu0 %v6789_v54  ;;  %5907 = vmatpush3.msra.mxu1 %v6790_v15 }
 0x6fe   : > { %4611 = vmatprep.subr.mxu0 %v6791_v32  ;;  %5908 = vmatprep.subr.mxu1 %v9139_v35 }
 0x6ff   : > { %4612 = vmatpush1.msra.mxu0 %v6792_v14  ;;  %5909 = vmatpush3.msra.mxu1 %v6793_v18 }
 0x700   : > { %4613 = vmatprep.subr.mxu0 %v6794_v48  ;;  %5910 = vmatprep.subr.mxu1 %v9139_v35  ;;  %v8740_v48 = vld [vmem:[%s7150_s21 + $0xae] ss:$8 sm:$0x7] }
 0x701   : > { %4614 = vmatpush1.msra.mxu0 %v6795_v17  ;;  %5911 = vmatpush3.msra.mxu1 %v6796_v51 }
 0x702   : > { %4615 = vmatprep.subr.mxu0 %v6797_v30  ;;  %5912 = vmatprep.subr.mxu1 %v9139_v35 }
 0x703   : > { %4616 = vmatpush1.msra.mxu0 %v6798_v53  ;;  %5913 = vmatpush3.msra.mxu1 %v6799_v19 }
 0x704   : > { %4617 = vmatprep.subr.mxu0 %v6800_v16  ;;  %5914 = vmatprep.subr.mxu1 %v9139_v35 }
 0x705   : > { %4618 = vmatpush1.msra.mxu0 %v6801_v61  ;;  %5915 = vmatpush3.msra.mxu1 %v6802_v62 }
 0x706   : > { %4619 = vmatprep.subr.mxu0 %v6803_v22  ;;  %5916 = vmatprep.subr.mxu1 %v9139_v35 }
 0x707   : > { %4620 = vmatpush1.msra.mxu0 %v6804_v47  ;;  %5917 = vmatpush3.msra.mxu1 %v6805_v11 }
 0x708   : > { %4621 = vmatprep.subr.mxu0 %v6806_v3  ;;  %5918 = vmatprep.subr.mxu1 %v9139_v35 }
 0x709   : > { %4622 = vmatpush1.msra.mxu0 %v6807_v36  ;;  %5919 = vmatpush3.msra.mxu1 %v6808_v49 }
 0x70a   : > { %4623 = vmatprep.subr.mxu0 %v6809_v12  ;;  %5920 = vmatprep.subr.mxu1 %v9139_v35 }
 0x70b   : > { %4624 = vmatpush1.msra.mxu0 %v6810_v33  ;;  %5921 = vmatpush3.msra.mxu1 %v6811_v34  ;;  %v4258_v34 = vrot.slane %v8712_v46, 1 }
 0x70c   : > { %4625 = vmatprep.subr.mxu0 %v6812_v60  ;;  %5922 = vmatprep.subr.mxu1 %v9139_v35 }
 0x70d   : > { %4626 = vmatpush1.msra.mxu0 %v6813_v44  ;;  %5923 = vmatpush3.msra.mxu1 %v6814_v43  ;;  %v4259_v43 = vrot.slane %v8717_v24, 1 }
 0x70e   : > { %4627 = vmatprep.subr.mxu0 %v6815_v42  ;;  %5924 = vmatprep.subr.mxu1 %v9139_v35 }
 0x70f   : > { %4628 = vmatpush1.msra.mxu0 %v6816_v40  ;;  %5925 = vmatpush3.msra.mxu1 %v6817_v45  ;;  %v4262_v40 = vrot.slane %v8726_v1, 1 }
 0x710   : > { %4629 = vmatprep.subr.mxu0 %v6818_v59  ;;  %5926 = vmatprep.subr.mxu1 %v9139_v35 }
 0x711   : > { %4630 = vmatpush1.msra.mxu0 %v6819_v10  ;;  %5927 = vmatpush3.msra.mxu1 %v6820_v25  ;;  %v4261_v10 = vrot.slane %v8723_v29, 1 }
 0x712   : > { %4631 = vmatprep.subr.mxu0 %v6821_v2  ;;  %5928 = vmatprep.subr.mxu1 %v9139_v35 }
 0x713   : > { %4632 = vmatpush1.msra.mxu0 %v6822_v27  ;;  %4665 = vmatprep.mubr.f32.mxu0 %v9139_v35 }
 0x714   : > { %5929 = vmatpush3.msra.mxu1 %v6823_v6  ;;  %5930 = vmatprep.mubr.msk.f32.mxu1 %vm6988_vm0, %v9139_v35  ;;  %v8720_v35 = vld [vmem:[%s7150_s21 + $0x36] ss:$8 sm:$0x7] }
 0x715   : > { %v4260_v42 = vrot.slane %v8720_v35, 1 }
 0x7b4   : > { %v4061_v50 = vpop.f32.mrf.mxu0  ;;  %v8708_v0 = vpop.f32.mrf.mxu1 }
 0x7b5   : > { %v4137_v20 = vcombine.high %v4061_v50, %v4061_v50  ;;  %v4144_v63 = vrot.slane %v4061_v50, %v7400_v56 }
 0x7b6   : > { %v5897_v7 = vpop.f32.mrf.mxu1  ;;  %v4063_v13 = vpop.f32.mrf.mxu0 }
 0x7b7   : > { %v4151_v8 = vrot.slane %v4137_v20, %v7400_v56  ;;  %v4152_v28 = vcombine.high %v4144_v63, %v4144_v63  ;;  %v4160_v5 = vrot.slane %v4144_v63, %v7400_v56  ;;  %v4275_v53 = vcombine.high %v4063_v13, %v4063_v13 }
 0x7b8   : > { %v4282_v49 = vrot.slane %v4063_v13, %v7400_v56  ;;  %v4263_v13 = vrot.slane %v8731_v26, 1 }
 0x7b9   : > { %v4153_v23 = vcombine.high %v4151_v8, %v4151_v8  ;;  %v4167_v4 = vrot.slane %v4151_v8, %v7400_v56  ;;  %v4174_v41 = vrot.slane %v4152_v28, %v7400_v56  ;;  %v4182_v21 = vcombine.high %v4160_v5, %v4160_v5 }
 0x7ba   : > { %v4194_v54 = vadd.f32 %v8712_v46, %v4160_v5  ;;  %v4289_v60 = vrot.slane %v4275_v53, %v7400_v56  ;;  %v4290_v45 = vcombine.high %v4282_v49, %v4282_v49  ;;  %v4298_v59 = vrot.slane %v4282_v49, %v7400_v56 }
 0x7bb   : > { %v4181_v15 = vrot.slane %v4153_v23, %v7400_v56  ;;  %v4183_v32 = vcombine.high %v4167_v4, %v4167_v4  ;;  %v4184_v14 = vcombine.high %v4174_v41, %v4174_v41  ;;  %v4195_v18 = vadd.f32 %v8717_v24, %v4174_v41 }
 0x7bc   : > { %v4196_v17 = vadd.f32 %v8720_v35, %v4182_v21  ;;  %v4198_v51 = vadd.f32 %v8726_v1, %v4167_v4  ;;  %v5471_v30 = vmul.f32 -1.442695, %v4194_v54  ;;  %v4305_v25 = vrot.slane %v4289_v60, %v7400_v56 }
 0x7bd   : > { %v4185_v19 = vcombine.high %v4181_v15, %v4181_v15  ;;  %v4197_v16 = vadd.f32 %v8723_v29, %v4184_v14  ;;  %v4199_v61 = vadd.f32 %v8731_v26, %v4181_v15  ;;  %v4200_v62 = vadd.f32 %v8734_v31, %v4183_v32 }
 0x7be   : > { %6518 = vpow2.f32 %v5471_v30  ;;  %v5472_v22 = vmul.f32 -1.442695, %v4195_v18  ;;  %v5473_v47 = vmul.f32 -1.442695, %v4196_v17  ;;  %v5475_v36 = vmul.f32 -1.442695, %v4198_v51 }
 0x7bf   : > { %v4201_v11 = vadd.f32 %v8740_v48, %v4185_v19  ;;  %v5474_v3 = vmul.f32 -1.442695, %v4197_v16  ;;  %v5476_v12 = vmul.f32 -1.442695, %v4199_v61  ;;  %v5477_v33 = vmul.f32 -1.442695, %v4200_v62 }
 0x7c0   : > { %6520 = vpow2.f32 %v5472_v22  ;;  %v4291_v2 = vcombine.high %v4289_v60, %v4289_v60  ;;  %v4312_v27 = vrot.slane %v4290_v45, %v7400_v56  ;;  %v4320_v6 = vcombine.high %v4298_v59, %v4298_v59  ;;  %v8764_v51 = vld [vmem:[%s8992_s2] ss:$0 sm:$0xff] }
 0x7c1   : > { %6522 = vpow2.f32 %v5473_v47  ;;  %v5478_v44 = vmul.f32 -1.442695, %v4201_v11  ;;  %v4332_v50 = vadd.f32 %v4298_v59, %v4258_v34  ;;  %v4336_v8 = vadd.f32 %v4305_v25, %v4262_v40 }
 0x7c2   : > { %6524 = vpow2.f32 %v5474_v3  ;;  %v4322_v20 = vcombine.high %v4312_v27, %v4312_v27  ;;  %v4333_v63 = vadd.f32 %v4312_v27, %v4259_v43  ;;  %v4334_v7 = vadd.f32 %v4320_v6, %v4260_v42 }
 0x7c3   : > { %6526 = vpow2.f32 %v5475_v36  ;;  %v5479_v28 = vmul.f32 -1.442695, %v4332_v50  ;;  %v4319_v5 = vrot.slane %v4291_v2, %v7400_v56  ;;  %v5483_v15 = vmul.f32 -1.442695, %v4336_v8 }
 0x7c4   : > { %6528 = vpow2.f32 %v5476_v12  ;;  %v4335_v23 = vadd.f32 %v4322_v20, %v4261_v10  ;;  %v5480_v4 = vmul.f32 -1.442695, %v4333_v63  ;;  %v5481_v41 = vmul.f32 -1.442695, %v4334_v7 }
 0x7c5   : > { %6530 = vpow2.f32 %v5477_v33  ;;  %v4264_v14 = vrot.slane %v8734_v31, 1  ;;  %v4321_v18 = vcombine.high %v4305_v25, %v4305_v25  ;;  %v4388_v30 = vadd.f32 %v8764_v51, %v8708_v0 }
 0x7c6   : > { %6532 = vpow2.f32 %v5478_v44  ;;  %v5482_v54 = vmul.f32 -1.442695, %v4335_v23  ;;  %v4265_v53 = vrot.slane %v8740_v48, 1  ;;  %v4323_v19 = vcombine.high %v4319_v5, %v4319_v5 }
 0x7c7   : > { %6534 = vpow2.f32 %v5479_v28  ;;  %v4337_v47 = vadd.f32 %v4319_v5, %v4263_v13  ;;  %v4338_v36 = vadd.f32 %v4321_v18, %v4264_v14  ;;  %v4390_v33 = vcombine.high %v4388_v30, %v4388_v30 }
 0x7c8   : > { %6536 = vpow2.f32 %v5480_v4  ;;  %v4339_v0 = vadd.f32 %v4323_v19, %v4265_v53  ;;  %v4397_v44 = vrot.slane %v4388_v30, %v7400_v56  ;;  %v4455_v5 = vrot.slane %v8712_v46, 2 }
 0x7c9   : > { %6538 = vpow2.f32 %v5481_v41  ;;  %v5484_v40 = vmul.f32 -1.442695, %v4337_v47  ;;  %v5485_v59 = vmul.f32 -1.442695, %v4338_v36  ;;  %v4404_v10 = vrot.slane %v4390_v33, %v7400_v56 }
 0x7ca   : > { %6540 = vpow2.f32 %v5482_v54  ;;  %v5486_v25 = vmul.f32 -1.442695, %v4339_v0  ;;  %v4405_v2 = vcombine.high %v4397_v44, %v4397_v44  ;;  %v4413_v7 = vrot.slane %v4397_v44, %v7400_v56 }
 0x7cb   : > { %v6519_v21 = vpop.eup %6518  ;;  %v4406_v63 = vcombine.high %v4404_v10, %v4404_v10  ;;  %v4457_v13 = vrot.slane %v8720_v35, 2  ;;  %v4458_v54 = vrot.slane %v8723_v29, 2  ;;  %v4459_v14 = vrot.slane %v8726_v1, 2 }
 0x7cc   : > { %v4226_v32 = vadd.f32 1.0, %v6519_v21  ;;  %v4427_v23 = vrot.slane %v4405_v2, %v7400_v56  ;;  %v4456_v21 = vrot.slane %v8717_v24, 2  ;;  %v4420_v18 = vrot.slane %v4404_v10, %v7400_v56 }
 0x7cd   : > { %v6521_v17 = vpop.eup %6520  ;;  %v4434_v46 = vrot.slane %v4406_v63, %v7400_v56  ;;  %v4435_v53 = vcombine.high %v4413_v7, %v4413_v7  ;;  %v4461_v1 = vrot.slane %v8734_v31, 2 }
 0x7ce   : > { %v6523_v16 = vpop.eup %6522  ;;  %v4227_v61 = vadd.f32 1.0, %v6521_v17  ;;  %6542 = vrcp.f32 %v4226_v32  ;;  %v4437_v24 = vcombine.high %v4427_v23, %v4427_v23 }
 0x7cf   : > { %v6525_v62 = vpop.eup %6524  ;;  %v4228_v22 = vadd.f32 1.0, %v6523_v16  ;;  %6544 = vpow2.f32 %v5483_v15 }
 0x7d0   : > { %v6527_v11 = vpop.eup %6526  ;;  %v4229_v3 = vadd.f32 1.0, %v6525_v62  ;;  %6546 = vrcp.f32 %v4227_v61  ;;  %v4460_v62 = vrot.slane %v8731_v26, 2 }
 0x7d1   : > { %v6529_v49 = vpop.eup %6528  ;;  %v4230_v12 = vadd.f32 1.0, %v6527_v11  ;;  %6548 = vrcp.f32 %v4228_v22  ;;  %v4462_v11 = vrot.slane %v8740_v48, 2 }
 0x7d2   : > { %v6531_v34 = vpop.eup %6530  ;;  %v4231_v60 = vadd.f32 1.0, %v6529_v49  ;;  %6550 = vrcp.f32 %v4229_v3 }
 0x7d3   : > { %v6533_v43 = vpop.eup %6532  ;;  %v4232_v42 = vadd.f32 1.0, %v6531_v34  ;;  %6552 = vrcp.f32 %v4230_v12  ;;  %v4436_v12 = vcombine.high %v4420_v18, %v4420_v18 }
 0x7d4   : > { %v4233_v45 = vadd.f32 1.0, %v6533_v43  ;;  %6554 = vrcp.f32 %v4231_v60  ;;  %v6535_v27 = vpop.eup %6534  ;;  %v4438_v60 = vcombine.high %v4434_v46, %v4434_v46 }
 0x7d5   : > { %6556 = vrcp.f32 %v4232_v42  ;;  %v6537_v6 = vpop.eup %6536  ;;  %v4364_v50 = vadd.f32 1.0, %v6535_v27 }
 0x7d6   : > { %6558 = vrcp.f32 %v4233_v45  ;;  %v6539_v20 = vpop.eup %6538  ;;  %v4365_v8 = vadd.f32 1.0, %v6537_v6 }
 0x7d7   : > { %6560 = vpow2.f32 %v5484_v40  ;;  %v6541_v28 = vpop.eup %6540  ;;  %v4366_v4 = vadd.f32 1.0, %v6539_v20 }
 0x7d8   : > { %6562 = vpow2.f32 %v5485_v59  ;;  %v4367_v15 = vadd.f32 1.0, %v6541_v28 }
 0x7d9   : > { %6564 = vpow2.f32 %v5486_v25 }
 0x7da   : > { %6566 = vrcp.f32 %v4364_v50 }
 0x7db   : > { %v6543_v41 = vpop.eup %6542  ;;  %6568 = vrcp.f32 %v4365_v8 }
 0x7dc   : > { %v6545_v32 = vpop.eup %6544  ;;  %v4447_v17 = vmul.f32 %v6543_v41, %v4413_v7  ;;  %6570 = vrcp.f32 %v4366_v4 }
 0x7dd   : > { %v6547_v30 = vpop.eup %6546  ;;  %v4368_v19 = vadd.f32 1.0, %v6545_v32  ;;  %6572 = vrcp.f32 %v4367_v15 }
 0x7de   : > { %v6549_v16 = vpop.eup %6548  ;;  %v4448_v61 = vmul.f32 %v6547_v30, %v4427_v23  ;;  %v4471_v35 = vadd.f32 %v4455_v5, %v4447_v17 }
 0x7df   : > { %v6551_v29 = vpop.eup %6550  ;;  %v4449_v22 = vmul.f32 %v6549_v16, %v4435_v53 }
 0x7e0   : > { %v6553_v47 = vpop.eup %6552  ;;  %v4450_v3 = vmul.f32 %v6551_v29, %v4437_v24  ;;  %v4472_v36 = vadd.f32 %v4456_v21, %v4448_v61  ;;  %6574 = vtanh.f32 %v4471_v35 }
 0x7e1   : > { %v6555_v49 = vpop.eup %6554  ;;  %v4451_v33 = vmul.f32 %v6553_v47, %v4420_v18  ;;  %v4473_v0 = vadd.f32 %v4457_v13, %v4449_v22  ;;  %6576 = vrcp.f32 %v4368_v19 }
 0x7e2   : > { %v6557_v34 = vpop.eup %6556  ;;  %v4452_v44 = vmul.f32 %v6555_v49, %v4434_v46  ;;  %v4474_v43 = vadd.f32 %v4458_v54, %v4450_v3  ;;  %6578 = vtanh.f32 %v4472_v36 }
 0x7e3   : > { %v6559_v26 = vpop.eup %6558  ;;  %v4453_v31 = vmul.f32 %v6557_v34, %v4436_v12  ;;  %v4475_v42 = vadd.f32 %v4459_v14, %v4451_v33  ;;  %6580 = vtanh.f32 %v4473_v0 }
 0x7e4   : > { %v6561_v40 = vpop.eup %6560  ;;  %v4454_v45 = vmul.f32 %v6559_v26, %v4438_v60  ;;  %v4476_v48 = vadd.f32 %v4460_v62, %v4452_v44  ;;  %6582 = vtanh.f32 %v4474_v43 }
 0x7e5   : > { %v6563_v59 = vpop.eup %6562  ;;  %v4477_v10 = vadd.f32 %v4461_v1, %v4453_v31  ;;  %6584 = vtanh.f32 %v4475_v42  ;;  %v4369_v25 = vadd.f32 1.0, %v6561_v40 }
 0x7e6   : > { %v6565_v2 = vpop.eup %6564  ;;  %v4478_v27 = vadd.f32 %v4462_v11, %v4454_v45  ;;  %6586 = vtanh.f32 %v4476_v48  ;;  %v4370_v6 = vadd.f32 1.0, %v6563_v59 }
 0x7e7   : > { %6588 = vtanh.f32 %v4477_v10  ;;  %v4371_v50 = vadd.f32 1.0, %v6565_v2  ;;  %v6567_v20 = vpop.eup %6566 }
 0x7e8   : > { %6590 = vtanh.f32 %v4478_v27  ;;  %v6569_v63 = vpop.eup %6568  ;;  %v4487_v28 = vsub.f32 1.0, %v6567_v20  ;;  %v4503_v21 = vmul.f32 %v6567_v20, %v8638_v37 }
 0x7e9   : > { %6592 = vrcp.f32 %v4369_v25  ;;  %v6571_v7 = vpop.eup %6570  ;;  %v4488_v4 = vsub.f32 1.0, %v6569_v63  ;;  %v4504_v18 = vmul.f32 %v6569_v63, %v8642_v57 }
 0x7ea   : > { %6594 = vrcp.f32 %v4370_v6  ;;  %v6573_v8 = vpop.eup %6572  ;;  %v4489_v54 = vsub.f32 1.0, %v6571_v7  ;;  %v4505_v19 = vmul.f32 %v6571_v7, %v8647_v58 }
 0x7eb   : > { %6596 = vrcp.f32 %v4371_v50  ;;  %v4490_v32 = vsub.f32 1.0, %v6573_v8  ;;  %v4506_v24 = vmul.f32 %v6573_v8, %v8649_v38 }
 0x7ed   : > { %v6575_v5 = vpop.eup %6574 }
 0x7ee   : > { %v6577_v23 = vpop.eup %6576  ;;  %v4495_v41 = vmul.f32 %v6575_v5, %v4487_v28  ;;  %v8841_v28 = vld [vmem:[%s7150_s21 + $0x7] ss:$8 sm:$0x7] }
 0x7ef   : > { %v6579_v13 = vpop.eup %6578  ;;  %v4491_v46 = vsub.f32 1.0, %v6577_v23  ;;  %v4507_v29 = vmul.f32 %v6577_v23, %v8653_v52 }
 0x7f0   : > { %v6581_v15 = vpop.eup %6580  ;;  %v4496_v14 = vmul.f32 %v6579_v13, %v4488_v4  ;;  %v8785_v17 = vadd.f32 %v4503_v21, %v4495_v41  ;;  %v8846_v41 = vld [vmem:[%s7150_s21 + $0x1f] ss:$8 sm:$0x7] }
 0x7f1   : > { %v6583_v30 = vpop.eup %6582  ;;  %v4497_v53 = vmul.f32 %v6581_v15, %v4489_v54  ;;  %v8849_v21 = vld [vmem:[%s7150_s21 + $0x37] ss:$8 sm:$0x7] }
 0x7f2   : > { %v6585_v16 = vpop.eup %6584  ;;  %v4498_v37 = vmul.f32 %v6583_v30, %v4490_v32  ;;  %v8789_v61 = vadd.f32 %v4504_v18, %v4496_v14  ;;  %4519 = vst [vmem:[%s7161_s12 + $0x6] sm:$0x1] %v8785_v17  ;;  %v8852_v13 = vld [vmem:[%s7150_s21 + $0x4f] ss:$8 sm:$0x7] }
 0x7f3   : > { %v6587_v57 = vpop.eup %6586  ;;  %v4499_v35 = vmul.f32 %v6585_v16, %v4491_v46  ;;  %v8794_v62 = vadd.f32 %v4505_v19, %v4497_v53  ;;  %v8855_v54 = vld [vmem:[%s7150_s21 + $0x67] ss:$8 sm:$0x7] }
 0x7f4   : > { %v6589_v1 = vpop.eup %6588  ;;  %v8796_v22 = vadd.f32 %v4506_v24, %v4498_v37  ;;  %4520 = vst [vmem:[%s7161_s12 + $0xe] sm:$0x1] %v8789_v61  ;;  %v4551_v31 = vcombine.low %v8785_v17, %v8789_v61  ;;  %v8860_v46 = vld [vmem:[%s7150_s21 + $0x7f] ss:$8 sm:$0x7] }
 0x7f5   : > { %v6591_v58 = vpop.eup %6590  ;;  %v8800_v47 = vadd.f32 %v4507_v29, %v4499_v35  ;;  %4521 = vst [vmem:[%s7161_s12 + $0x16] sm:$0x1] %v8794_v62  ;;  %v8863_v53 = vld [vmem:[%s7150_s21 + $0x97] ss:$8 sm:$0x7] }
 0x7f6   : > { %v6593_v38 = vpop.eup %6592  ;;  %4522 = vst [vmem:[%s7161_s12 + $0x1e] sm:$0x1] %v8796_v22  ;;  %v4552_v0 = vcombine.low %v8794_v62, %v8796_v22  ;;  %v8869_v35 = vld [vmem:[%s7150_s21 + $0xaf] ss:$8 sm:$0x7]  ;;  %s6883_s21 = sshll.u32 %s6990_s3, 4  ;;  %s6884_s21 = int_to_ptr.vmem [resolvable:$false] %s6883_s21 }
 0x7f7   : > { %v6595_v11 = vpop.eup %6594  ;;  %v4492_v3 = vsub.f32 1.0, %v6593_v38  ;;  %4523 = vst [vmem:[%s7161_s12 + $0x26] sm:$0x1] %v8800_v47  ;;  %v4508_v33 = vmul.f32 %v6593_v38, %v8666_v55  ;;  %s6885_s1 = scalar_lea.vmem %s6884_s21, 2048  ;;  %p6886_p12 = scmp.lt.s32.totalorder %s8923_s16, %s6884_s21 }
 0x7f8   : > { %v6597_v52 = vpop.eup %6596  ;;  %v4493_v36 = vsub.f32 1.0, %v6595_v11  ;;  %v4509_v60 = vmul.f32 %v6595_v11, %v8670_v9  ;;  %v4568_v45 = vrot.slane %v4552_v0, %v7400_v56  ;;  %p6887_p13 = scmp.lt.s32.totalorder %s6885_s1, %s6879_s11 }
 0x7f9   : > { %v4494_v49 = vsub.f32 1.0, %v6597_v52  ;;  %v4500_v12 = vmul.f32 %v6587_v57, %v4492_v3  ;;  %v4510_v43 = vmul.f32 %v6597_v52, %v8672_v39  ;;  %v4561_v39 = vrot.slane %v4551_v31, %v7400_v56 }
 0x7fa   : > { %v4501_v34 = vmul.f32 %v6589_v1, %v4493_v36  ;;  %v4864_v31 = vrot.slane %v8841_v28, 1  ;;  %p6888_p0 = por %p6887_p13, %p6886_p12 }
 0x7fb   : > { %v4502_v44 = vmul.f32 %v6591_v58, %v4494_v49  ;;  %v8813_v26 = vadd.f32 %v4508_v33, %v4500_v12  ;;  %v4583_v10 = vcombine.low %v4561_v39, %v4568_v45  ;;  %v4866_v39 = vrot.slane %v8849_v21, 1 }
 0x7fc   : > { %v8817_v42 = vadd.f32 %v4509_v60, %v4501_v34  ;;  %p6889_p1 = pnand %p6888_p0, %p6882_p9 }
 0x7fd   : > { %v8819_v40 = vadd.f32 %v4510_v43, %v4502_v44  ;;  %4524 = vst [vmem:[%s7161_s12 + $0x2e] sm:$0x1] %v8813_v26  ;;  %v4553_v55 = vcombine.low %v8800_v47, %v8813_v26  ;;  %v4591_v2 = vrot.slane %v4583_v10, %v7400_v56 }
 0x7fe   : > { %4525 = vst [vmem:[%s7161_s12 + $0x36] sm:$0x1] %v8817_v42 }
 0x7ff   : > { %4526 = vst [vmem:[%s7161_s12 + $0x3e] sm:$0x1] %v8819_v40  ;;  %v4554_v9 = vcombine.low %v8817_v42, %v8819_v40  ;;  %v4575_v48 = vrot.slane %v4553_v55, %v7400_v56 }
 0x801   : > { %v4582_v59 = vrot.slane %v4554_v9, %v7400_v56  ;;  %v4865_v9 = vrot.slane %v8846_v41, 1 }
 0x803   : > { %v4584_v25 = vcombine.low %v4575_v48, %v4582_v59  ;;  %v4868_v48 = vrot.slane %v8855_v54, 1 }
 0x805   : > { %v4598_v27 = vrot.slane %v4584_v25, %v7400_v56  ;;  %v4867_v25 = vrot.slane %v8852_v13, 1 }
 0x807   : > { %v4599_v6 = vcombine.low %v4591_v2, %v4598_v27 }
 0x809   : > { %4666 = vmatmul.mubr.f32.vlgmr.msra.gmra.mxu0 %v4599_v6  ;;  %5931 = vmatmul.mubr.f32.vlgmr.msra.gmra.mxu1 %v4599_v6 }
 0x8c9   : > { %v4667_v50 = vpop.f32.mrf.mxu0  ;;  %v8837_v20 = vpop.f32.mrf.mxu1 }
 0x8ca   : > { %v4743_v63 = vcombine.high %v4667_v50, %v4667_v50  ;;  %v4750_v7 = vrot.slane %v4667_v50, %v7400_v56 }
 0x8cb   : > { %v5932_v8 = vpop.f32.mrf.mxu1  ;;  %v4669_v30 = vpop.f32.mrf.mxu0 }
 0x8cc   : > { %v4757_v5 = vrot.slane %v4743_v63, %v7400_v56  ;;  %v4758_v23 = vcombine.high %v4750_v7, %v4750_v7  ;;  %v4766_v4 = vrot.slane %v4750_v7, %v7400_v56  ;;  %v4881_v38 = vcombine.high %v4669_v30, %v4669_v30 }
 0x8cd   : > { %v4888_v60 = vrot.slane %v4669_v30, %v7400_v56 }
 0x8ce   : > { %v4759_v15 = vcombine.high %v4757_v5, %v4757_v5  ;;  %v4773_v32 = vrot.slane %v4757_v5, %v7400_v56  ;;  %v4780_v14 = vrot.slane %v4758_v23, %v7400_v56  ;;  %v4788_v18 = vcombine.high %v4766_v4, %v4766_v4 }
 0x8cf   : > { %v4800_v19 = vadd.f32 %v8841_v28, %v4766_v4  ;;  %v4895_v55 = vrot.slane %v4881_v38, %v7400_v56  ;;  %v4896_v59 = vcombine.high %v4888_v60, %v4888_v60  ;;  %v4904_v10 = vrot.slane %v4888_v60, %v7400_v56 }
 0x8d0   : > { %v4787_v16 = vrot.slane %v4759_v15, %v7400_v56  ;;  %v4789_v37 = vcombine.high %v4773_v32, %v4773_v32  ;;  %v4790_v24 = vcombine.high %v4780_v14, %v4780_v14  ;;  %v4801_v57 = vadd.f32 %v8846_v41, %v4780_v14 }
 0x8d1   : > { %v4802_v29 = vadd.f32 %v8849_v21, %v4788_v18  ;;  %v4804_v1 = vadd.f32 %v8855_v54, %v4773_v32  ;;  %v5495_v58 = vmul.f32 -1.442695, %v4800_v19  ;;  %v4911_v2 = vrot.slane %v4895_v55, %v7400_v56 }
 0x8d2   : > { %v4791_v11 = vcombine.high %v4787_v16, %v4787_v16  ;;  %v4803_v3 = vadd.f32 %v8852_v13, %v4790_v24  ;;  %v4805_v52 = vadd.f32 %v8860_v46, %v4787_v16  ;;  %v4806_v36 = vadd.f32 %v8863_v53, %v4789_v37 }
 0x8d3   : > { %6598 = vpow2.f32 %v5495_v58  ;;  %v5496_v49 = vmul.f32 -1.442695, %v4801_v57  ;;  %v5497_v12 = vmul.f32 -1.442695, %v4802_v29  ;;  %v5499_v34 = vmul.f32 -1.442695, %v4804_v1 }
 0x8d4   : > { %v4807_v33 = vadd.f32 %v8869_v35, %v4791_v11  ;;  %v5498_v0 = vmul.f32 -1.442695, %v4803_v3  ;;  %v5500_v44 = vmul.f32 -1.442695, %v4805_v52  ;;  %v5501_v43 = vmul.f32 -1.442695, %v4806_v36 }
 0x8d5   : > { %6600 = vpow2.f32 %v5496_v49  ;;  %v4897_v27 = vcombine.high %v4895_v55, %v4895_v55  ;;  %v4918_v6 = vrot.slane %v4896_v59, %v7400_v56  ;;  %v4926_v50 = vcombine.high %v4904_v10, %v4904_v10 }
 0x8d6   : > { %6602 = vpow2.f32 %v5497_v12  ;;  %v5502_v45 = vmul.f32 -1.442695, %v4807_v33  ;;  %v4938_v63 = vadd.f32 %v4904_v10, %v4864_v31  ;;  %v4942_v23 = vadd.f32 %v4911_v2, %v4868_v48 }
 0x8d7   : > { %6604 = vpow2.f32 %v5498_v0  ;;  %v4928_v7 = vcombine.high %v4918_v6, %v4918_v6  ;;  %v4939_v8 = vadd.f32 %v4918_v6, %v4865_v9  ;;  %v4940_v5 = vadd.f32 %v4926_v50, %v4866_v39 }
 0x8d8   : > { %6606 = vpow2.f32 %v5499_v34  ;;  %v5503_v4 = vmul.f32 -1.442695, %v4938_v63  ;;  %v4925_v15 = vrot.slane %v4897_v27, %v7400_v56  ;;  %v4869_v19 = vrot.slane %v8860_v46, 1 }
 0x8d9   : > { %6608 = vpow2.f32 %v5500_v44  ;;  %v4941_v32 = vadd.f32 %v4928_v7, %v4867_v25  ;;  %v5504_v14 = vmul.f32 -1.442695, %v4939_v8  ;;  %v5505_v18 = vmul.f32 -1.442695, %v4940_v5 }
 0x8da   : > { %6610 = vpow2.f32 %v5501_v43  ;;  %v5507_v37 = vmul.f32 -1.442695, %v4942_v23  ;;  %v4870_v57 = vrot.slane %v8863_v53, 1  ;;  %v4927_v29 = vcombine.high %v4911_v2, %v4911_v2 }
 0x8db   : > { %6612 = vpow2.f32 %v5502_v45  ;;  %v5506_v16 = vmul.f32 -1.442695, %v4941_v32  ;;  %v4994_v58 = vadd.f32 %v8764_v51, %v8837_v20  ;;  %v4871_v38 = vrot.slane %v8869_v35, 1 }
 0x8dc   : > { %6614 = vpow2.f32 %v5503_v4  ;;  %v4929_v11 = vcombine.high %v4925_v15, %v4925_v15  ;;  %v4943_v12 = vadd.f32 %v4925_v15, %v4869_v19  ;;  %v4944_v34 = vadd.f32 %v4927_v29, %v4870_v57 }
 0x8dd   : > { %6616 = vpow2.f32 %v5504_v14  ;;  %v4996_v43 = vcombine.high %v4994_v58, %v4994_v58  ;;  %v5003_v55 = vrot.slane %v4994_v58, %v7400_v56  ;;  %v5061_v4 = vrot.slane %v8841_v28, 2 }
 0x8de   : > { %6618 = vpow2.f32 %v5505_v18  ;;  %v4945_v51 = vadd.f32 %v4929_v11, %v4871_v38  ;;  %v5508_v39 = vmul.f32 -1.442695, %v4943_v12  ;;  %v5509_v59 = vmul.f32 -1.442695, %v4944_v34 }
 0x8df   : > { %6620 = vpow2.f32 %v5506_v16  ;;  %v5010_v10 = vrot.slane %v4996_v43, %v7400_v56  ;;  %v5011_v2 = vcombine.high %v5003_v55, %v5003_v55  ;;  %v5019_v8 = vrot.slane %v5003_v55, %v7400_v56 }
 0x8e0   : > { %v6599_v30 = vpop.eup %6598  ;;  %v5510_v25 = vmul.f32 -1.442695, %v4945_v51  ;;  %v5062_v18 = vrot.slane %v8846_v41, 2  ;;  %v5064_v19 = vrot.slane %v8852_v13, 2  ;;  %v5068_v12 = vrot.slane %v8869_v35, 2 }
 0x8e1   : > { %v4832_v24 = vadd.f32 1.0, %v6599_v30  ;;  %v5012_v7 = vcombine.high %v5010_v10, %v5010_v10  ;;  %v5033_v15 = vrot.slane %v5011_v2, %v7400_v56  ;;  %v5063_v30 = vrot.slane %v8849_v21, 2 }
 0x8e2   : > { %v6601_v1 = vpop.eup %6600  ;;  %v5026_v57 = vrot.slane %v5010_v10, %v7400_v56  ;;  %v5041_v58 = vcombine.high %v5019_v8, %v5019_v8 }
 0x8e3   : > { %v6603_v3 = vpop.eup %6602  ;;  %v4833_v52 = vadd.f32 1.0, %v6601_v1  ;;  %6622 = vrcp.f32 %v4832_v24  ;;  %v5065_v24 = vrot.slane %v8855_v54, 2  ;;  %v5040_v28 = vrot.slane %v5012_v7, %v7400_v56 }
 0x8e4   : > { %v6605_v36 = vpop.eup %6604  ;;  %v4834_v49 = vadd.f32 1.0, %v6603_v3  ;;  %6624 = vpow2.f32 %v5507_v37  ;;  %v5043_v41 = vcombine.high %v5033_v15, %v5033_v15  ;;  %v5067_v54 = vrot.slane %v8863_v53, 2 }
 0x8e5   : > { %v6607_v33 = vpop.eup %6606  ;;  %v4835_v0 = vadd.f32 1.0, %v6605_v36  ;;  %6626 = vrcp.f32 %v4833_v52  ;;  %v5066_v52 = vrot.slane %v8860_v46, 2 }
 0x8e6   : > { %v6609_v60 = vpop.eup %6608  ;;  %v4836_v44 = vadd.f32 1.0, %v6607_v33  ;;  %6628 = vrcp.f32 %v4834_v49 }
 0x8e7   : > { %v6611_v20 = vpop.eup %6610  ;;  %v4837_v31 = vadd.f32 1.0, %v6609_v60  ;;  %6630 = vrcp.f32 %v4835_v0  ;;  %v5042_v60 = vcombine.high %v5026_v57, %v5026_v57 }
 0x8e8   : > { %v6613_v45 = vpop.eup %6612  ;;  %v4838_v9 = vadd.f32 1.0, %v6611_v20  ;;  %6632 = vrcp.f32 %v4836_v44  ;;  %v5044_v20 = vcombine.high %v5040_v28, %v5040_v28 }
 0x8e9   : > { %v4839_v48 = vadd.f32 1.0, %v6613_v45  ;;  %6634 = vrcp.f32 %v4837_v31  ;;  %v6615_v27 = vpop.eup %6614 }
 0x8ea   : > { %6636 = vrcp.f32 %v4838_v9  ;;  %v6617_v6 = vpop.eup %6616  ;;  %v4970_v50 = vadd.f32 1.0, %v6615_v27 }
 0x8eb   : > { %6638 = vrcp.f32 %v4839_v48  ;;  %v6619_v63 = vpop.eup %6618  ;;  %v4971_v5 = vadd.f32 1.0, %v6617_v6 }
 0x8ec   : > { %6640 = vpow2.f32 %v5508_v39  ;;  %v6621_v23 = vpop.eup %6620  ;;  %v4972_v32 = vadd.f32 1.0, %v6619_v63 }
 0x8ed   : > { %6642 = vpow2.f32 %v5509_v59  ;;  %v4973_v16 = vadd.f32 1.0, %v6621_v23 }
 0x8ee   : > { %6644 = vpow2.f32 %v5510_v25 }
 0x8ef   : > { %6646 = vrcp.f32 %v4970_v50 }
 0x8f0   : > { %v6623_v14 = vpop.eup %6622  ;;  %6648 = vrcp.f32 %v4971_v5 }
 0x8f1   : > { %v6625_v37 = vpop.eup %6624  ;;  %v5053_v29 = vmul.f32 %v6623_v14, %v5019_v8  ;;  %6650 = vrcp.f32 %v4972_v32 }
 0x8f2   : > { %v6627_v1 = vpop.eup %6626  ;;  %v4974_v38 = vadd.f32 1.0, %v6625_v37  ;;  %6652 = vrcp.f32 %v4973_v16 }
 0x8f3   : > { %v6629_v11 = vpop.eup %6628  ;;  %v5054_v3 = vmul.f32 %v6627_v1, %v5033_v15  ;;  %v5077_v21 = vadd.f32 %v5061_v4, %v5053_v29 }
 0x8f4   : > { %v6631_v13 = vpop.eup %6630  ;;  %v5055_v36 = vmul.f32 %v6629_v11, %v5041_v58 }
 0x8f5   : > { %v6633_v49 = vpop.eup %6632  ;;  %v5056_v33 = vmul.f32 %v6631_v13, %v5043_v41  ;;  %v5078_v0 = vadd.f32 %v5062_v18, %v5054_v3  ;;  %6654 = vtanh.f32 %v5077_v21 }
 0x8f6   : > { %v6635_v34 = vpop.eup %6634  ;;  %v5057_v44 = vmul.f32 %v6633_v49, %v5026_v57  ;;  %v5079_v43 = vadd.f32 %v5063_v30, %v5055_v36  ;;  %6656 = vrcp.f32 %v4974_v38 }
 0x8f7   : > { %v6637_v51 = vpop.eup %6636  ;;  %v5058_v31 = vmul.f32 %v6635_v34, %v5040_v28  ;;  %v5080_v55 = vadd.f32 %v5064_v19, %v5056_v33  ;;  %6658 = vtanh.f32 %v5078_v0 }
 0x8f8   : > { %v6639_v46 = vpop.eup %6638  ;;  %v5059_v53 = vmul.f32 %v6637_v51, %v5042_v60  ;;  %v5081_v45 = vadd.f32 %v5065_v24, %v5057_v44  ;;  %6660 = vtanh.f32 %v5079_v43 }
 0x8f9   : > { %v6641_v9 = vpop.eup %6640  ;;  %v5060_v39 = vmul.f32 %v6639_v46, %v5044_v20  ;;  %v5082_v35 = vadd.f32 %v5066_v52, %v5058_v31  ;;  %6662 = vtanh.f32 %v5080_v55 }
 0x8fa   : > { %v6643_v48 = vpop.eup %6642  ;;  %v5083_v59 = vadd.f32 %v5067_v54, %v5059_v53  ;;  %6664 = vtanh.f32 %v5081_v45  ;;  %v4975_v10 = vadd.f32 1.0, %v6641_v9 }
 0x8fb   : > { %v6645_v25 = vpop.eup %6644  ;;  %v5084_v2 = vadd.f32 %v5068_v12, %v5060_v39  ;;  %6666 = vtanh.f32 %v5082_v35  ;;  %v4976_v27 = vadd.f32 1.0, %v6643_v48 }
 0x8fc   : > { %6668 = vtanh.f32 %v5083_v59  ;;  %v4977_v6 = vadd.f32 1.0, %v6645_v25  ;;  %v6647_v50 = vpop.eup %6646 }
 0x8fd   : > { %6670 = vtanh.f32 %v5084_v2  ;;  %v6649_v63 = vpop.eup %6648  ;;  %v5093_v5 = vsub.f32 1.0, %v6647_v50  ;;  %v5109_v14 = vmul.f32 %v6647_v50, %v8785_v17 }
 0x8fe   : > { %6672 = vrcp.f32 %v4975_v10  ;;  %v6651_v7 = vpop.eup %6650  ;;  %v5094_v15 = vsub.f32 1.0, %v6649_v63  ;;  %v5110_v24 = vmul.f32 %v6649_v63, %v8789_v61 }
 0x8ff   : > { %6674 = vrcp.f32 %v4976_v27  ;;  %v6653_v8 = vpop.eup %6652  ;;  %v5095_v30 = vsub.f32 1.0, %v6651_v7  ;;  %v5111_v58 = vmul.f32 %v6651_v7, %v8794_v62 }
 0x900   : > { %6676 = vrcp.f32 %v4977_v6  ;;  %v5096_v16 = vsub.f32 1.0, %v6653_v8  ;;  %v5112_v17 = vmul.f32 %v6653_v8, %v8796_v22 }
 0x902   : > { %v6655_v23 = vpop.eup %6654 }
 0x903   : > { %v6657_v4 = vpop.eup %6656  ;;  %v5101_v32 = vmul.f32 %v6655_v23, %v5093_v5 }
 0x904   : > { %v6659_v18 = vpop.eup %6658  ;;  %v5097_v1 = vsub.f32 1.0, %v6657_v4  ;;  %v5113_v61 = vmul.f32 %v6657_v4, %v8800_v47 }
 0x905   : > { %v6661_v19 = vpop.eup %6660  ;;  %v5102_v37 = vmul.f32 %v6659_v18, %v5094_v15  ;;  %v5117_v57 = vadd.f32 %v5109_v14, %v5101_v32 }
 0x906   : > { %v6663_v29 = vpop.eup %6662  ;;  %v5103_v28 = vmul.f32 %v6661_v19, %v5095_v30 }
 0x907   : > { %v6665_v38 = vpop.eup %6664  ;;  %v5104_v11 = vmul.f32 %v6663_v29, %v5096_v16  ;;  %v5118_v41 = vadd.f32 %v5110_v24, %v5102_v37  ;;  %5125 = vst [vmem:[%s7161_s12 + $0x7] sm:$0x1] %v5117_v57 }
 0x908   : > { %v6667_v3 = vpop.eup %6666  ;;  %v5105_v21 = vmul.f32 %v6665_v38, %v5097_v1  ;;  %v5119_v13 = vadd.f32 %v5111_v58, %v5103_v28 }
 0x909   : > { %v6669_v52 = vpop.eup %6668  ;;  %v5120_v54 = vadd.f32 %v5112_v17, %v5104_v11  ;;  %5126 = vst [vmem:[%s7161_s12 + $0xf] sm:$0x1] %v5118_v41  ;;  %v5141_v46 = vcombine.low %v5117_v57, %v5118_v41 }
 0x90a   : > { %v6671_v62 = vpop.eup %6670  ;;  %v5121_v36 = vadd.f32 %v5113_v61, %v5105_v21  ;;  %5127 = vst [vmem:[%s7161_s12 + $0x17] sm:$0x1] %v5119_v13 }
 0x90b   : > { %v6673_v49 = vpop.eup %6672  ;;  %5128 = vst [vmem:[%s7161_s12 + $0x1f] sm:$0x1] %v5120_v54  ;;  %v5142_v44 = vcombine.low %v5119_v13, %v5120_v54 }
 0x90c   : > { %v6675_v22 = vpop.eup %6674  ;;  %v5098_v12 = vsub.f32 1.0, %v6673_v49  ;;  %5129 = vst [vmem:[%s7161_s12 + $0x27] sm:$0x1] %v5121_v36  ;;  %v5114_v60 = vmul.f32 %v6673_v49, %v8813_v26 }
 0x90d   : > { %v6677_v33 = vpop.eup %6676  ;;  %v5099_v0 = vsub.f32 1.0, %v6675_v22  ;;  %v5115_v51 = vmul.f32 %v6675_v22, %v8817_v42  ;;  %v5158_v9 = vrot.slane %v5142_v44, %v7400_v56 }
 0x90e   : > { %v5100_v34 = vsub.f32 1.0, %v6677_v33  ;;  %v5106_v47 = vmul.f32 %v6667_v3, %v5098_v12  ;;  %v5116_v31 = vmul.f32 %v6677_v33, %v8819_v40  ;;  %v5151_v40 = vrot.slane %v5141_v46, %v7400_v56 }
 0x90f   : > { %v5107_v43 = vmul.f32 %v6669_v52, %v5099_v0 }
 0x910   : > { %v5108_v20 = vmul.f32 %v6671_v62, %v5100_v34  ;;  %v5122_v55 = vadd.f32 %v5114_v60, %v5106_v47 }
 0x911   : > { %v5123_v53 = vadd.f32 %v5115_v51, %v5107_v43 }
 0x912   : > { %v5124_v26 = vadd.f32 %v5116_v31, %v5108_v20  ;;  %5130 = vst [vmem:[%s7161_s12 + $0x2f] sm:$0x1] %v5122_v55  ;;  %v5143_v45 = vcombine.low %v5121_v36, %v5122_v55 }
 0x913   : > { %5131 = vst [vmem:[%s7161_s12 + $0x37] sm:$0x1] %v5123_v53 }
 0x914   : > { %5132 = vst [vmem:[%s7161_s12 + $0x3f] sm:$0x1] %v5124_v26  ;;  %v5144_v42 = vcombine.low %v5123_v53, %v5124_v26 }
 0x915   : > { %6892 = shalt.err (!%p6889_p1)
}
 0x916   : > { %s6893_s12 = scalar_lea.hbm %s8930_s27, 1024  ;;  %s6897_s25 = scalar_lea.hbm %s9279_s22, 6144 }
 0x917   : > { %p6894_p4 = scmp.ne.s32.totalorder %s8930_s27, %s6893_s12  ;;  %p6898_p11 = scmp.lt.s32.totalorder %s8930_s27, %s9279_s22 }
 0x918   : > { %p6899_p5 = scmp.lt.s32.totalorder %s6897_s25, %s6893_s12 }
 0x919   : > { %p6895_p6 = pnand %p6894_p4, %p9280_p7 }
 0x91a   : > { %p6900_p2 = por %p6899_p5, %p6898_p11 }
 0x91b   : > { %p6896_p10 = pneg %p6895_p6 }
 0x91d   : > { %p6901_p3 = pnand %p6900_p2, %p6896_p10 }
 0x91f   : > { %6904 = shalt.err (!%p6901_p3)
}
 0x920   : > { %s6991_s4 = smov 128   ;;  %s6992_s30 = smov 384   ;;  %v5165_v39 = vrot.slane %v5143_v45, %v7400_v56  ;;  %v5172_v35 = vrot.slane %v5144_v42, %v7400_v56  ;;  %v5173_v48 = vcombine.low %v5151_v40, %v5158_v9 }
 0x921   : > { %s6993_s9 = smov 8  }
 0x922   : > { %5944 = dma.vmem_to_hbm [thread:$0]  (%p9280_p7), %s8923_s16, 1024, %s8930_s27, %s5193_s7, %s6991_s4, %s6992_s30, %s6993_s9   ;;  %v5174_v59 = vcombine.low %v5165_v39, %v5172_v35  ;;  %v5181_v10 = vrot.slane %v5173_v48, %v7400_v56 }
 0x924   : > { %v5188_v25 = vrot.slane %v5174_v59, %v7400_v56 }
 0x926   : > { %v5189_v2 = vcombine.low %v5181_v10, %v5188_v25 }
 0x928   : > { %5191 = vst [vmem:[#allocation2] sm:$0xff] %v5189_v2 }
 0x929 PF: > { %s9281_s10 = sld [smem:[#allocation14_spill]] }
 0x92a   : > { %s9282_s24 = sld [smem:[#allocation12_spill]] }
 0x92b   : > { %s9283_s29 = sld [smem:[#allocation15_spill]] }
 0x92f   : > { %p5961_p8 = scmp.ge.s32.totalorder %s9281_s10, 2 }
 0x930   : > { %s5223_s26 = sand.u32 1, %s9282_s24  }
 0x931   : > { %p9284_p9 = scmp.ne.s32.totalorder %s9283_s29, 0  ;;  %s5224_s8 = scalar_lea.sflag [#allocation5], %s5223_s26 }
 0x933   : > { %p5955_p7 = pnand %p5961_p8, %p9284_p9 }
 0x935   : > { %p5956_p12 = pneg %p5955_p7 }
 0x937   : > { %6946 = dma.done.wait (%p5956_p12), %s5224_s8, 1024  }
 0x938   : > { %6948 = vsyncadd (%p5956_p12), %s5224_s8, 4294966272  ;;  %s20_s19 = sadd.s32 1, %s9281_s10   ;;  %s9285_s15 = sld [smem:[#allocation13_spill]] }
 0x939   : > { %p17_p13 = scmp.ge.s32.totalorder %s20_s19, 8   ;;  %s9286_s6 = sld [smem:[#allocation16_spill]] }
 0x93a   : > { %s9287_s12 = smov %s6955_s13  ;;  %s9288_s13 = smov %s6959_s14 }
 0x93b   : > { %s9289_s14 = smov %s7135_s17  ;;  %s9290_s16 = smov %s6975_s18 }
 0x93c   : > { %s9292_s18 = smov %s9298_s20  ;;  %19 = sbr.rel (!%p17_p13) target bundleno = 11 (0xb), region = 148 }
 0x93f   : > { %s9291_s17 = smov %s9286_s6 }
 0x941   :  { %5229 = vsyncpa [#allocation4], 1 }
 0x942   :  { %5231 = vsyncpa [#allocation4 + $0x1], 1 }
 0x943   :  { %5232 = vsyncpa [#allocation7], 1 }
 0x944   :  { %5233 = vsyncpa [#allocation5], 1 }
 0x945   :  { %5235 = vsyncpa [#allocation5 + $0x1], 1 }

</bundles_post_ra>
